<compile_context>
chip_gen: v6e
topology: v6e:2x2x1
jax: 0.10.0
libtpu: 0.0.40
codegen_flags: <defaults>
</compile_context>

<pallas_src>
import jax
import jax.numpy as jnp
from jax.experimental import pallas as pl
from jax.experimental.pallas import tpu as pltpu

NH = 256      # nh in the PyTorch module
NZ = 128      # opt.nz
EPS = 1e-5    # BatchNorm eps


# --------------------------------------------------------------------------
# Pallas kernels
# --------------------------------------------------------------------------

def _mm_scale_bias_relu_kernel(a_ref, w_ref, s_ref, t_ref, o_ref):
    # relu((A @ W) * s + t) for one batch element: conv-as-matmul with folded
    # bias/BatchNorm. bf16 operands, f32 accumulation + epilogue.
    acc = jnp.dot(a_ref[0], w_ref[...], preferred_element_type=jnp.float32)
    o_ref[0] = jnp.maximum(acc * s_ref[...] + t_ref[...], 0.0).astype(o_ref.dtype)


def conv_mm_bn_relu(a, w, s, t, *, out_dtype):
    """Per-batch fused matmul + folded-BN + ReLU.  a: (B,M,K) bf16, w: (K,N) bf16."""
    B, M, K = a.shape
    N = w.shape[1]
    flops = 2 * B * M * K * N
    bytes_accessed = (a.size * a.dtype.itemsize + w.size * w.dtype.itemsize
                      + B * M * N * jnp.dtype(out_dtype).itemsize)
    return pl.pallas_call(
        _mm_scale_bias_relu_kernel,
        out_shape=jax.ShapeDtypeStruct((B, M, N), out_dtype),
        grid=(B,),
        in_specs=[
            pl.BlockSpec((1, M, K), lambda b: (b, 0, 0)),
            pl.BlockSpec((K, N), lambda b: (0, 0)),
            pl.BlockSpec((1, N), lambda b: (0, 0)),
            pl.BlockSpec((1, N), lambda b: (0, 0)),
        ],
        out_specs=pl.BlockSpec((1, M, N), lambda b: (b, 0, 0)),
        compiler_params=pltpu.CompilerParams(dimension_semantics=("parallel",)),
        cost_estimate=pl.CostEstimate(flops=flops, transcendentals=0,
                                      bytes_accessed=bytes_accessed),
    )(a, w, s.reshape(1, N), t.reshape(1, N))


def _conv3x3_s2_bn_relu_kernel(ph_ref, w_ref, s_ref, t_ref, o_ref):
    # 3x3 stride-2 pad-1 conv for one batch element, accumulated over the 9
    # (kh, kw) taps -- no im2col.  ph_ref: (1, 4, Ho+1, Wo+1, C) f32 phase
    # planes (index 2*(row parity) + col parity of the padded input);
    # w_ref: (9, C, N) bf16; s/t: (1, N) f32; o_ref: (1, Ho*Wo, N) bf16.
    _, _, hh, wh, c = ph_ref.shape
    n = w_ref.shape[2]
    ho, wo = hh - 1, wh - 1
    acc = jnp.zeros((ho * wo, n), jnp.float32)
    for kh in range(3):
        for kw in range(3):
            p = (kh % 2) * 2 + (kw % 2)
            dh, dw = kh // 2, kw // 2
            xt = ph_ref[0, p, dh:dh + ho, dw:dw + wo, :]        # (Ho, Wo, C) f32
            xt = xt.reshape(ho * wo, c).astype(jnp.bfloat16)    # lane-safe flatten
            acc = acc + jnp.dot(xt, w_ref[kh * 3 + kw],
                                preferred_element_type=jnp.float32)
    o_ref[0] = jnp.maximum(acc * s_ref[...] + t_ref[...], 0.0).astype(o_ref.dtype)


def conv3x3_s2_bn_relu(x, w_hwio, s, t):
    """3x3 stride-2 pad-1 conv + folded BN + ReLU without materializing im2col.

    x: (B, H, W, C) f32 NHWC, w_hwio: (3, 3, C, N) bf16.  Returns (B, H/2, W/2, N) bf16.
    """
    B, H, W, C = x.shape
    N = w_hwio.shape[3]
    Ho, Wo = H // 2, W // 2
    xp = jnp.pad(x, ((0, 0), (1, 1), (1, 1), (0, 0)))
    # Four stride-2 phase planes of the padded input: same total footprint as x.
    ph = jnp.stack([xp[:, pe::2, pw::2, :] for pe in (0, 1) for pw in (0, 1)],
                   axis=1)                                      # (B,4,Ho+1,Wo+1,C)
    w9 = w_hwio.reshape(9, C, N)
    flops = 2 * B * Ho * Wo * 9 * C * N
    bytes_accessed = (ph.size * ph.dtype.itemsize + w9.size * w9.dtype.itemsize
                      + B * Ho * Wo * N * 2)
    out = pl.pallas_call(
        _conv3x3_s2_bn_relu_kernel,
        out_shape=jax.ShapeDtypeStruct((B, Ho * Wo, N), jnp.bfloat16),
        grid=(B,),
        in_specs=[
            pl.BlockSpec((1, 4, Ho + 1, Wo + 1, C), lambda b: (b, 0, 0, 0, 0)),
            pl.BlockSpec((9, C, N), lambda b: (0, 0, 0)),
            pl.BlockSpec((1, N), lambda b: (0, 0)),
            pl.BlockSpec((1, N), lambda b: (0, 0)),
        ],
        out_specs=pl.BlockSpec((1, Ho * Wo, N), lambda b: (b, 0, 0)),
        compiler_params=pltpu.CompilerParams(dimension_semantics=("parallel",)),
        cost_estimate=pl.CostEstimate(flops=flops, transcendentals=0,
                                      bytes_accessed=bytes_accessed),
    )(ph, w9, s.reshape(1, N), t.reshape(1, N))
    return out.reshape(B, Ho, Wo, N)


def _mm_bias_relu_kernel(a_ref, w_ref, t_ref, o_ref):
    # relu(A @ W + b) -- final 4x4 valid conv as a matmul (no dummy scale).
    acc = jnp.dot(a_ref[...], w_ref[...], preferred_element_type=jnp.float32)
    o_ref[...] = jnp.maximum(acc + t_ref[...], 0.0).astype(o_ref.dtype)


def mm_bias_relu(a, w, bias):
    """a: (M, K) bf16, w: (K, N) bf16, bias: (N,) f32 -> (M, N) f32."""
    M, K = a.shape
    N = w.shape[1]
    return pl.pallas_call(
        _mm_bias_relu_kernel,
        out_shape=jax.ShapeDtypeStruct((M, N), jnp.float32),
        grid=(1,),
        in_specs=[
            pl.BlockSpec((M, K), lambda i: (0, 0)),
            pl.BlockSpec((K, N), lambda i: (0, 0)),
            pl.BlockSpec((1, N), lambda i: (0, 0)),
        ],
        out_specs=pl.BlockSpec((M, N), lambda i: (0, 0)),
        compiler_params=pltpu.CompilerParams(dimension_semantics=("parallel",)),
        cost_estimate=pl.CostEstimate(
            flops=2 * M * K * N, transcendentals=0,
            bytes_accessed=a.size * a.dtype.itemsize + w.size * w.dtype.itemsize
                           + M * N * 4),
    )(a, w, bias.reshape(1, N))


# --------------------------------------------------------------------------
# Glue: tiny im2col (conv1 / conv3 only), BatchNorm folding, parameter setup
# --------------------------------------------------------------------------

def im2col(x, k, stride, pad):
    # x: (B, H, W, C) -> (B, Ho*Wo, k*k*C); K ordered (kh, kw, c_in), matching
    # HWIO conv weights reshaped to (k*k*C_in, C_out).  Only used where the
    # expansion is tiny (conv1: C_in=1; conv3: 8x8 spatial).
    B, H, W, C = x.shape
    if pad:
        x = jnp.pad(x, ((0, 0), (pad, pad), (pad, pad), (0, 0)))
    Ho = (H + 2 * pad - k) // stride + 1
    Wo = (W + 2 * pad - k) // stride + 1
    cols = []
    for kh in range(k):
        for kw in range(k):
            cols.append(x[:, kh:kh + stride * (Ho - 1) + 1:stride,
                           kw:kw + stride * (Wo - 1) + 1:stride, :])
    patches = jnp.concatenate(cols, axis=-1)
    return patches.reshape(B, Ho * Wo, k * k * C), Ho, Wo


def fold_bn(bias, gamma, beta, rmean, rvar):
    s = gamma / jnp.sqrt(rvar + EPS)
    t = (bias - rmean) * s + beta
    return s, t


def init_params(key):
    ks = jax.random.split(key, 8)

    def he(k, shape, fan_in):
        w = jax.random.normal(k, shape, jnp.float32) * jnp.sqrt(2.0 / fan_in)
        return w.astype(jnp.bfloat16)          # bf16 MXU operands

    p = {}
    # conv1: 1 -> NH, 3x3, stride 2, pad 1 (+bias, BN, ReLU)      weights in HWIO
    p["w1"] = he(ks[0], (3, 3, 1, NH), 9)
    p["b1"] = 0.01 * jax.random.normal(ks[1], (NH,), jnp.float32)
    # conv2: NH -> NH, 3x3, stride 2, pad 1
    p["w2"] = he(ks[2], (3, 3, NH, NH), 9 * NH)
    p["b2"] = 0.01 * jax.random.normal(ks[3], (NH,), jnp.float32)
    # conv3: NH -> NH, 3x3, stride 2, pad 1
    p["w3"] = he(ks[4], (3, 3, NH, NH), 9 * NH)
    p["b3"] = 0.01 * jax.random.normal(ks[5], (NH,), jnp.float32)
    # conv4: NH -> NZ, 4x4, stride 1, pad 0 (no BN, ReLU after)
    p["w4"] = he(ks[6], (4, 4, NH, NZ), 16 * NH)
    p["b4"] = 0.01 * jax.random.normal(ks[7], (NZ,), jnp.float32)
    # BatchNorm (inference): gamma=1, beta=0, running stats (0, 1)
    for n in ("1", "2", "3"):
        p["g" + n] = jnp.ones((NH,), jnp.float32)
        p["beta" + n] = jnp.zeros((NH,), jnp.float32)
        p["rm" + n] = jnp.zeros((NH,), jnp.float32)
        p["rv" + n] = jnp.ones((NH,), jnp.float32)
    return p


# --------------------------------------------------------------------------
# Forward pass
# --------------------------------------------------------------------------

def feature_net(x_nchw, p):
    B = x_nchw.shape[0]
    x = jnp.transpose(x_nchw, (0, 2, 3, 1))               # NCHW -> NHWC (B,32,32,1)

    # conv1 + BN + ReLU: C_in=1 so im2col is only (B,256,9) -- one fused matmul.
    s1, t1 = fold_bn(p["b1"], p["g1"], p["beta1"], p["rm1"], p["rv1"])
    a1, H1, W1 = im2col(x, 3, 2, 1)                        # (B, 256, 9)
    h1 = conv_mm_bn_relu(a1.astype(jnp.bfloat16), p["w1"].reshape(9, NH),
                         s1, t1, out_dtype=jnp.float32)    # (B, 256, NH)
    h1 = h1.reshape(B, H1, W1, NH)                         # (B, 16, 16, NH)

    # conv2 + BN + ReLU: phase-split 9-tap accumulation in-kernel (no im2col).
    s2, t2 = fold_bn(p["b2"], p["g2"], p["beta2"], p["rm2"], p["rv2"])
    h2 = conv3x3_s2_bn_relu(h1, p["w2"], s2, t2)           # (B, 8, 8, NH) bf16

    # conv3 + BN + ReLU: im2col here is tiny (B*16 x 2304), single fused matmul.
    s3, t3 = fold_bn(p["b3"], p["g3"], p["beta3"], p["rm3"], p["rv3"])
    a3, H3, W3 = im2col(h2, 3, 2, 1)                       # (B, 16, 9*NH) bf16
    h3 = conv_mm_bn_relu(a3, p["w3"].reshape(9 * NH, NH), s3, t3,
                         out_dtype=jnp.bfloat16)           # (B, 16, NH)

    # conv4 (4x4, valid) + ReLU  -> (B,1,1,NZ); torch.squeeze -> (B, NZ)
    a4 = h3.reshape(B, H3 * W3 * NH)                       # (B, 4096) bf16
    h4 = mm_bias_relu(a4, p["w4"].reshape(H3 * W3 * NH, NZ), p["b4"])
    return h4                                              # (B, NZ) f32


if __name__ == "__main__":
    key = jax.random.PRNGKey(0)
    kp, kx = jax.random.split(key)
    params = init_params(kp)
    # PyTorch-style NCHW input: batch=2, 1 channel, 32x32 spatial
    x = jax.random.normal(kx, (2, 1, 32, 32), jnp.float32)
    out = jax.jit(feature_net)(x, params)
    out = jax.block_until_ready(out)
    assert out.shape == (2, NZ), out.shape
    assert bool(jnp.all(jnp.isfinite(out)))
    print("KERNEL_OK")
</pallas_src>

<mosaic_0001>
module attributes {stable_mosaic.version = 11 : i64} {
  func.func @_mm_scale_bias_relu_kernel(%arg0: i32, %arg1: memref<1x256x9xbf16, #tpu.memory_space<vmem>>, %arg2: memref<9x256xbf16, #tpu.memory_space<vmem>>, %arg3: memref<1x256xf32, #tpu.memory_space<vmem>>, %arg4: memref<1x256xf32, #tpu.memory_space<vmem>>, %arg5: memref<1x256x256xf32, #tpu.memory_space<vmem>>) attributes {dimension_semantics = [#tpu.dimension_semantics<parallel>], iteration_bounds = array<i64: 2>, scalar_prefetch = 0 : i64, scratch_operands = 0 : i64, tpu.core_type = #tpu.core_type<tc>, window_params = [{transform_indices = @transform_0, window_bounds = array<i64: 1, 256, 9>}, {pipeline_mode = #tpu.pipeline_mode<synchronous>, transform_indices = @transform_1, window_bounds = array<i64: 9, 256>}, {pipeline_mode = #tpu.pipeline_mode<synchronous>, transform_indices = @transform_2, window_bounds = array<i64: 1, 256>}, {pipeline_mode = #tpu.pipeline_mode<synchronous>, transform_indices = @transform_3, window_bounds = array<i64: 1, 256>}, {transform_indices = @transform_4, window_bounds = array<i64: 1, 256, 256>}]} {
    %c0 = arith.constant 0 : index
    %c0_0 = arith.constant 0 : index
    %c0_1 = arith.constant 0 : index
    %0 = vector.load %arg1[%c0, %c0_0, %c0_1] : memref<1x256x9xbf16, #tpu.memory_space<vmem>>, vector<1x256x9xbf16>
    %1 = vector.shape_cast %0 : vector<1x256x9xbf16> to vector<256x9xbf16>
    %c0_2 = arith.constant 0 : index
    %c0_3 = arith.constant 0 : index
    %2 = vector.load %arg2[%c0_2, %c0_3] : memref<9x256xbf16, #tpu.memory_space<vmem>>, vector<9x256xbf16>
    %cst = arith.constant dense<0.000000e+00> : vector<256x256xf32>
    %3 = tpu.matmul %1, %2, %cst {dimension_numbers = #tpu.dot_dimension_numbers<[1], [0], [0], [1], [0, 0, 1, 1], [], []>} : vector<256x9xbf16>, vector<9x256xbf16>, vector<256x256xf32> -> vector<256x256xf32>
    %c0_4 = arith.constant 0 : index
    %c0_5 = arith.constant 0 : index
    %4 = vector.load %arg3[%c0_4, %c0_5] : memref<1x256xf32, #tpu.memory_space<vmem>>, vector<1x256xf32>
    %5 = vector.broadcast %4 : vector<1x256xf32> to vector<256x256xf32>
    %6 = arith.mulf %3, %5 : vector<256x256xf32>
    %c0_6 = arith.constant 0 : index
    %c0_7 = arith.constant 0 : index
    %7 = vector.load %arg4[%c0_6, %c0_7] : memref<1x256xf32, #tpu.memory_space<vmem>>, vector<1x256xf32>
    %8 = vector.broadcast %7 : vector<1x256xf32> to vector<256x256xf32>
    %9 = arith.addf %6, %8 : vector<256x256xf32>
    %cst_8 = arith.constant 0.000000e+00 : f32
    %10 = vector.broadcast %cst_8 : f32 to vector<256x256xf32>
    %11 = arith.maximumf %9, %10 : vector<256x256xf32>
    %c0_9 = arith.constant 0 : index
    %c0_10 = arith.constant 0 : index
    %c0_11 = arith.constant 0 : index
    %12 = vector.load %arg5[%c0_9, %c0_10, %c0_11] : memref<1x256x256xf32, #tpu.memory_space<vmem>>, vector<1x256x256xf32>
    %13 = vector.shape_cast %12 : vector<1x256x256xf32> to vector<256x256xf32>
    %14 = vector.shape_cast %11 : vector<256x256xf32> to vector<1x256x256xf32>
    tpu.vector_store %arg5[%c0_9, %c0_10, %c0_11], %14 {strides = array<i32>} : memref<1x256x256xf32, #tpu.memory_space<vmem>>, vector<1x256x256xf32>,
    return
  }
  func.func @transform_0(%arg0: i32) -> (i32, i32, i32) {
    %c0_i32 = arith.constant 0 : i32
    %c0_i32_0 = arith.constant 0 : i32
    %c0_i32_1 = arith.constant 0 : i32
    return %arg0, %c0_i32, %c0_i32_0 : i32, i32, i32
  }
  func.func @transform_1(%arg0: i32) -> (i32, i32) {
    %c0_i32 = arith.constant 0 : i32
    %c0_i32_0 = arith.constant 0 : i32
    %c0_i32_1 = arith.constant 0 : i32
    return %c0_i32, %c0_i32_0 : i32, i32
  }
  func.func @transform_2(%arg0: i32) -> (i32, i32) {
    %c0_i32 = arith.constant 0 : i32
    %c0_i32_0 = arith.constant 0 : i32
    %c0_i32_1 = arith.constant 0 : i32
    return %c0_i32, %c0_i32_0 : i32, i32
  }
  func.func @transform_3(%arg0: i32) -> (i32, i32) {
    %c0_i32 = arith.constant 0 : i32
    %c0_i32_0 = arith.constant 0 : i32
    %c0_i32_1 = arith.constant 0 : i32
    return %c0_i32, %c0_i32_0 : i32, i32
  }
  func.func @transform_4(%arg0: i32) -> (i32, i32, i32) {
    %c0_i32 = arith.constant 0 : i32
    %c0_i32_0 = arith.constant 0 : i32
    %c0_i32_1 = arith.constant 0 : i32
    return %arg0, %c0_i32, %c0_i32_0 : i32, i32, i32
  }
}

module attributes {stable_mosaic.version = 11 : i64} {
  func.func @_conv3x3_s2_bn_relu_kernel(%arg0: i32, %arg1: memref<1x4x9x9x256xf32, #tpu.memory_space<vmem>>, %arg2: memref<9x256x256xbf16, #tpu.memory_space<vmem>>, %arg3: memref<1x256xf32, #tpu.memory_space<vmem>>, %arg4: memref<1x256xf32, #tpu.memory_space<vmem>>, %arg5: memref<1x64x256xbf16, #tpu.memory_space<vmem>>) attributes {dimension_semantics = [#tpu.dimension_semantics<parallel>], iteration_bounds = array<i64: 2>, scalar_prefetch = 0 : i64, scratch_operands = 0 : i64, tpu.core_type = #tpu.core_type<tc>, window_params = [{transform_indices = @transform_0, window_bounds = array<i64: 1, 4, 9, 9, 256>}, {pipeline_mode = #tpu.pipeline_mode<synchronous>, transform_indices = @transform_1, window_bounds = array<i64: 9, 256, 256>}, {pipeline_mode = #tpu.pipeline_mode<synchronous>, transform_indices = @transform_2, window_bounds = array<i64: 1, 256>}, {pipeline_mode = #tpu.pipeline_mode<synchronous>, transform_indices = @transform_3, window_bounds = array<i64: 1, 256>}, {transform_indices = @transform_4, window_bounds = array<i64: 1, 64, 256>}]} {
    %cst = arith.constant 0.000000e+00 : f32
    %0 = vector.broadcast %cst : f32 to vector<64x256xf32>
    %c0 = arith.constant 0 : index
    %c0_0 = arith.constant 0 : index
    %c0_1 = arith.constant 0 : index
    %c0_2 = arith.constant 0 : index
    %c0_3 = arith.constant 0 : index
    %1 = vector.load %arg1[%c0, %c0_0, %c0_1, %c0_2, %c0_3] : memref<1x4x9x9x256xf32, #tpu.memory_space<vmem>>, vector<1x1x8x8x256xf32>
    %2 = vector.shape_cast %1 : vector<1x1x8x8x256xf32> to vector<8x8x256xf32>
    %3 = vector.shape_cast %2 : vector<8x8x256xf32> to vector<64x256xf32>
    %4 = arith.truncf %3 : vector<64x256xf32> to vector<64x256xbf16>
    %c0_4 = arith.constant 0 : index
    %c0_5 = arith.constant 0 : index
    %c0_6 = arith.constant 0 : index
    %5 = vector.load %arg2[%c0_4, %c0_5, %c0_6] : memref<9x256x256xbf16, #tpu.memory_space<vmem>>, vector<1x256x256xbf16>
    %6 = vector.shape_cast %5 : vector<1x256x256xbf16> to vector<256x256xbf16>
    %cst_7 = arith.constant dense<0.000000e+00> : vector<64x256xf32>
    %7 = tpu.matmul %4, %6, %cst_7 {dimension_numbers = #tpu.dot_dimension_numbers<[1], [0], [0], [1], [0, 0, 1, 1], [], []>} : vector<64x256xbf16>, vector<256x256xbf16>, vector<64x256xf32> -> vector<64x256xf32>
    %8 = arith.addf %0, %7 : vector<64x256xf32>
    %c0_8 = arith.constant 0 : index
    %c1 = arith.constant 1 : index
    %c0_9 = arith.constant 0 : index
    %c0_10 = arith.constant 0 : index
    %c0_11 = arith.constant 0 : index
    %9 = vector.load %arg1[%c0_8, %c1, %c0_9, %c0_10, %c0_11] : memref<1x4x9x9x256xf32, #tpu.memory_space<vmem>>, vector<1x1x8x8x256xf32>
    %10 = vector.shape_cast %9 : vector<1x1x8x8x256xf32> to vector<8x8x256xf32>
    %11 = vector.shape_cast %10 : vector<8x8x256xf32> to vector<64x256xf32>
    %12 = arith.truncf %11 : vector<64x256xf32> to vector<64x256xbf16>
    %c1_12 = arith.constant 1 : index
    %c0_13 = arith.constant 0 : index
    %c0_14 = arith.constant 0 : index
    %13 = vector.load %arg2[%c1_12, %c0_13, %c0_14] : memref<9x256x256xbf16, #tpu.memory_space<vmem>>, vector<1x256x256xbf16>
    %14 = vector.shape_cast %13 : vector<1x256x256xbf16> to vector<256x256xbf16>
    %cst_15 = arith.constant dense<0.000000e+00> : vector<64x256xf32>
    %15 = tpu.matmul %12, %14, %cst_15 {dimension_numbers = #tpu.dot_dimension_numbers<[1], [0], [0], [1], [0, 0, 1, 1], [], []>} : vector<64x256xbf16>, vector<256x256xbf16>, vector<64x256xf32> -> vector<64x256xf32>
    %16 = arith.addf %8, %15 : vector<64x256xf32>
    %c0_16 = arith.constant 0 : index
    %c0_17 = arith.constant 0 : index
    %c0_18 = arith.constant 0 : index
    %c1_19 = arith.constant 1 : index
    %c0_20 = arith.constant 0 : index
    %17 = vector.load %arg1[%c0_16, %c0_17, %c0_18, %c1_19, %c0_20] : memref<1x4x9x9x256xf32, #tpu.memory_space<vmem>>, vector<1x1x8x8x256xf32>
    %18 = vector.shape_cast %17 : vector<1x1x8x8x256xf32> to vector<8x8x256xf32>
    %19 = vector.shape_cast %18 : vector<8x8x256xf32> to vector<64x256xf32>
    %20 = arith.truncf %19 : vector<64x256xf32> to vector<64x256xbf16>
    %c2 = arith.constant 2 : index
    %c0_21 = arith.constant 0 : index
    %c0_22 = arith.constant 0 : index
    %21 = vector.load %arg2[%c2, %c0_21, %c0_22] : memref<9x256x256xbf16, #tpu.memory_space<vmem>>, vector<1x256x256xbf16>
    %22 = vector.shape_cast %21 : vector<1x256x256xbf16> to vector<256x256xbf16>
    %cst_23 = arith.constant dense<0.000000e+00> : vector<64x256xf32>
    %23 = tpu.matmul %20, %22, %cst_23 {dimension_numbers = #tpu.dot_dimension_numbers<[1], [0], [0], [1], [0, 0, 1, 1], [], []>} : vector<64x256xbf16>, vector<256x256xbf16>, vector<64x256xf32> -> vector<64x256xf32>
    %24 = arith.addf %16, %23 : vector<64x256xf32>
    %c0_24 = arith.constant 0 : index
    %c2_25 = arith.constant 2 : index
    %c0_26 = arith.constant 0 : index
    %c0_27 = arith.constant 0 : index
    %c0_28 = arith.constant 0 : index
    %25 = vector.load %arg1[%c0_24, %c2_25, %c0_26, %c0_27, %c0_28] : memref<1x4x9x9x256xf32, #tpu.memory_space<vmem>>, vector<1x1x8x8x256xf32>
    %26 = vector.shape_cast %25 : vector<1x1x8x8x256xf32> to vector<8x8x256xf32>
    %27 = vector.shape_cast %26 : vector<8x8x256xf32> to vector<64x256xf32>
    %28 = arith.truncf %27 : vector<64x256xf32> to vector<64x256xbf16>
    %c3 = arith.constant 3 : index
    %c0_29 = arith.constant 0 : index
    %c0_30 = arith.constant 0 : index
    %29 = vector.load %arg2[%c3, %c0_29, %c0_30] : memref<9x256x256xbf16, #tpu.memory_space<vmem>>, vector<1x256x256xbf16>
    %30 = vector.shape_cast %29 : vector<1x256x256xbf16> to vector<256x256xbf16>
    %cst_31 = arith.constant dense<0.000000e+00> : vector<64x256xf32>
    %31 = tpu.matmul %28, %30, %cst_31 {dimension_numbers = #tpu.dot_dimension_numbers<[1], [0], [0], [1], [0, 0, 1, 1], [], []>} : vector<64x256xbf16>, vector<256x256xbf16>, vector<64x256xf32> -> vector<64x256xf32>
    %32 = arith.addf %24, %31 : vector<64x256xf32>
    %c0_32 = arith.constant 0 : index
    %c3_33 = arith.constant 3 : index
    %c0_34 = arith.constant 0 : index
    %c0_35 = arith.constant 0 : index
    %c0_36 = arith.constant 0 : index
    %33 = vector.load %arg1[%c0_32, %c3_33, %c0_34, %c0_35, %c0_36] : memref<1x4x9x9x256xf32, #tpu.memory_space<vmem>>, vector<1x1x8x8x256xf32>
    %34 = vector.shape_cast %33 : vector<1x1x8x8x256xf32> to vector<8x8x256xf32>
    %35 = vector.shape_cast %34 : vector<8x8x256xf32> to vector<64x256xf32>
    %36 = arith.truncf %35 : vector<64x256xf32> to vector<64x256xbf16>
    %c4 = arith.constant 4 : index
    %c0_37 = arith.constant 0 : index
    %c0_38 = arith.constant 0 : index
    %37 = vector.load %arg2[%c4, %c0_37, %c0_38] : memref<9x256x256xbf16, #tpu.memory_space<vmem>>, vector<1x256x256xbf16>
    %38 = vector.shape_cast %37 : vector<1x256x256xbf16> to vector<256x256xbf16>
    %cst_39 = arith.constant dense<0.000000e+00> : vector<64x256xf32>
    %39 = tpu.matmul %36, %38, %cst_39 {dimension_numbers = #tpu.dot_dimension_numbers<[1], [0], [0], [1], [0, 0, 1, 1], [], []>} : vector<64x256xbf16>, vector<256x256xbf16>, vector<64x256xf32> -> vector<64x256xf32>
    %40 = arith.addf %32, %39 : vector<64x256xf32>
    %c0_40 = arith.constant 0 : index
    %c2_41 = arith.constant 2 : index
    %c0_42 = arith.constant 0 : index
    %c1_43 = arith.constant 1 : index
    %c0_44 = arith.constant 0 : index
    %41 = vector.load %arg1[%c0_40, %c2_41, %c0_42, %c1_43, %c0_44] : memref<1x4x9x9x256xf32, #tpu.memory_space<vmem>>, vector<1x1x8x8x256xf32>
    %42 = vector.shape_cast %41 : vector<1x1x8x8x256xf32> to vector<8x8x256xf32>
    %43 = vector.shape_cast %42 : vector<8x8x256xf32> to vector<64x256xf32>
    %44 = arith.truncf %43 : vector<64x256xf32> to vector<64x256xbf16>
    %c5 = arith.constant 5 : index
    %c0_45 = arith.constant 0 : index
    %c0_46 = arith.constant 0 : index
    %45 = vector.load %arg2[%c5, %c0_45, %c0_46] : memref<9x256x256xbf16, #tpu.memory_space<vmem>>, vector<1x256x256xbf16>
    %46 = vector.shape_cast %45 : vector<1x256x256xbf16> to vector<256x256xbf16>
    %cst_47 = arith.constant dense<0.000000e+00> : vector<64x256xf32>
    %47 = tpu.matmul %44, %46, %cst_47 {dimension_numbers = #tpu.dot_dimension_numbers<[1], [0], [0], [1], [0, 0, 1, 1], [], []>} : vector<64x256xbf16>, vector<256x256xbf16>, vector<64x256xf32> -> vector<64x256xf32>
    %48 = arith.addf %40, %47 : vector<64x256xf32>
    %c0_48 = arith.constant 0 : index
    %c0_49 = arith.constant 0 : index
    %c1_50 = arith.constant 1 : index
    %c0_51 = arith.constant 0 : index
    %c0_52 = arith.constant 0 : index
    %49 = vector.load %arg1[%c0_48, %c0_49, %c1_50, %c0_51, %c0_52] : memref<1x4x9x9x256xf32, #tpu.memory_space<vmem>>, vector<1x1x8x8x256xf32>
    %50 = vector.shape_cast %49 : vector<1x1x8x8x256xf32> to vector<8x8x256xf32>
    %51 = vector.shape_cast %50 : vector<8x8x256xf32> to vector<64x256xf32>
    %52 = arith.truncf %51 : vector<64x256xf32> to vector<64x256xbf16>
    %c6 = arith.constant 6 : index
    %c0_53 = arith.constant 0 : index
    %c0_54 = arith.constant 0 : index
    %53 = vector.load %arg2[%c6, %c0_53, %c0_54] : memref<9x256x256xbf16, #tpu.memory_space<vmem>>, vector<1x256x256xbf16>
    %54 = vector.shape_cast %53 : vector<1x256x256xbf16> to vector<256x256xbf16>
    %cst_55 = arith.constant dense<0.000000e+00> : vector<64x256xf32>
    %55 = tpu.matmul %52, %54, %cst_55 {dimension_numbers = #tpu.dot_dimension_numbers<[1], [0], [0], [1], [0, 0, 1, 1], [], []>} : vector<64x256xbf16>, vector<256x256xbf16>, vector<64x256xf32> -> vector<64x256xf32>
    %56 = arith.addf %48, %55 : vector<64x256xf32>
    %c0_56 = arith.constant 0 : index
    %c1_57 = arith.constant 1 : index
    %c1_58 = arith.constant 1 : index
    %c0_59 = arith.constant 0 : index
    %c0_60 = arith.constant 0 : index
    %57 = vector.load %arg1[%c0_56, %c1_57, %c1_58, %c0_59, %c0_60] : memref<1x4x9x9x256xf32, #tpu.memory_space<vmem>>, vector<1x1x8x8x256xf32>
    %58 = vector.shape_cast %57 : vector<1x1x8x8x256xf32> to vector<8x8x256xf32>
    %59 = vector.shape_cast %58 : vector<8x8x256xf32> to vector<64x256xf32>
    %60 = arith.truncf %59 : vector<64x256xf32> to vector<64x256xbf16>
    %c7 = arith.constant 7 : index
    %c0_61 = arith.constant 0 : index
    %c0_62 = arith.constant 0 : index
    %61 = vector.load %arg2[%c7, %c0_61, %c0_62] : memref<9x256x256xbf16, #tpu.memory_space<vmem>>, vector<1x256x256xbf16>
    %62 = vector.shape_cast %61 : vector<1x256x256xbf16> to vector<256x256xbf16>
    %cst_63 = arith.constant dense<0.000000e+00> : vector<64x256xf32>
    %63 = tpu.matmul %60, %62, %cst_63 {dimension_numbers = #tpu.dot_dimension_numbers<[1], [0], [0], [1], [0, 0, 1, 1], [], []>} : vector<64x256xbf16>, vector<256x256xbf16>, vector<64x256xf32> -> vector<64x256xf32>
    %64 = arith.addf %56, %63 : vector<64x256xf32>
    %c0_64 = arith.constant 0 : index
    %c0_65 = arith.constant 0 : index
    %c1_66 = arith.constant 1 : index
    %c1_67 = arith.constant 1 : index
    %c0_68 = arith.constant 0 : index
    %65 = vector.load %arg1[%c0_64, %c0_65, %c1_66, %c1_67, %c0_68] : memref<1x4x9x9x256xf32, #tpu.memory_space<vmem>>, vector<1x1x8x8x256xf32>
    %66 = vector.shape_cast %65 : vector<1x1x8x8x256xf32> to vector<8x8x256xf32>
    %67 = vector.shape_cast %66 : vector<8x8x256xf32> to vector<64x256xf32>
    %68 = arith.truncf %67 : vector<64x256xf32> to vector<64x256xbf16>
    %c8 = arith.constant 8 : index
    %c0_69 = arith.constant 0 : index
    %c0_70 = arith.constant 0 : index
    %69 = vector.load %arg2[%c8, %c0_69, %c0_70] : memref<9x256x256xbf16, #tpu.memory_space<vmem>>, vector<1x256x256xbf16>
    %70 = vector.shape_cast %69 : vector<1x256x256xbf16> to vector<256x256xbf16>
    %cst_71 = arith.constant dense<0.000000e+00> : vector<64x256xf32>
    %71 = tpu.matmul %68, %70, %cst_71 {dimension_numbers = #tpu.dot_dimension_numbers<[1], [0], [0], [1], [0, 0, 1, 1], [], []>} : vector<64x256xbf16>, vector<256x256xbf16>, vector<64x256xf32> -> vector<64x256xf32>
    %72 = arith.addf %64, %71 : vector<64x256xf32>
    %c0_72 = arith.constant 0 : index
    %c0_73 = arith.constant 0 : index
    %73 = vector.load %arg3[%c0_72, %c0_73] : memref<1x256xf32, #tpu.memory_space<vmem>>, vector<1x256xf32>
    %74 = vector.broadcast %73 : vector<1x256xf32> to vector<64x256xf32>
    %75 = arith.mulf %72, %74 : vector<64x256xf32>
    %c0_74 = arith.constant 0 : index
    %c0_75 = arith.constant 0 : index
    %76 = vector.load %arg4[%c0_74, %c0_75] : memref<1x256xf32, #tpu.memory_space<vmem>>, vector<1x256xf32>
    %77 = vector.broadcast %76 : vector<1x256xf32> to vector<64x256xf32>
    %78 = arith.addf %75, %77 : vector<64x256xf32>
    %cst_76 = arith.constant 0.000000e+00 : f32
    %79 = vector.broadcast %cst_76 : f32 to vector<64x256xf32>
    %80 = arith.maximumf %78, %79 : vector<64x256xf32>
    %81 = arith.truncf %80 : vector<64x256xf32> to vector<64x256xbf16>
    %c0_77 = arith.constant 0 : index
    %c0_78 = arith.constant 0 : index
    %c0_79 = arith.constant 0 : index
    %82 = vector.load %arg5[%c0_77, %c0_78, %c0_79] : memref<1x64x256xbf16, #tpu.memory_space<vmem>>, vector<1x64x256xbf16>
    %83 = vector.shape_cast %82 : vector<1x64x256xbf16> to vector<64x256xbf16>
    %84 = vector.shape_cast %81 : vector<64x256xbf16> to vector<1x64x256xbf16>
    tpu.vector_store %arg5[%c0_77, %c0_78, %c0_79], %84 {strides = array<i32>} : memref<1x64x256xbf16, #tpu.memory_space<vmem>>, vector<1x64x256xbf16>,
    return
  }
  func.func @transform_0(%arg0: i32) -> (i32, i32, i32, i32, i32) {
    %c0_i32 = arith.constant 0 : i32
    %c0_i32_0 = arith.constant 0 : i32
    %c0_i32_1 = arith.constant 0 : i32
    %c0_i32_2 = arith.constant 0 : i32
    %c0_i32_3 = arith.constant 0 : i32
    return %arg0, %c0_i32, %c0_i32_0, %c0_i32_1, %c0_i32_2 : i32, i32, i32, i32, i32
  }
  func.func @transform_1(%arg0: i32) -> (i32, i32, i32) {
    %c0_i32 = arith.constant 0 : i32
    %c0_i32_0 = arith.constant 0 : i32
    %c0_i32_1 = arith.constant 0 : i32
    %c0_i32_2 = arith.constant 0 : i32
    return %c0_i32, %c0_i32_0, %c0_i32_1 : i32, i32, i32
  }
  func.func @transform_2(%arg0: i32) -> (i32, i32) {
    %c0_i32 = arith.constant 0 : i32
    %c0_i32_0 = arith.constant 0 : i32
    %c0_i32_1 = arith.constant 0 : i32
    return %c0_i32, %c0_i32_0 : i32, i32
  }
  func.func @transform_3(%arg0: i32) -> (i32, i32) {
    %c0_i32 = arith.constant 0 : i32
    %c0_i32_0 = arith.constant 0 : i32
    %c0_i32_1 = arith.constant 0 : i32
    return %c0_i32, %c0_i32_0 : i32, i32
  }
  func.func @transform_4(%arg0: i32) -> (i32, i32, i32) {
    %c0_i32 = arith.constant 0 : i32
    %c0_i32_0 = arith.constant 0 : i32
    %c0_i32_1 = arith.constant 0 : i32
    return %arg0, %c0_i32, %c0_i32_0 : i32, i32, i32
  }
}

module attributes {stable_mosaic.version = 11 : i64} {
  func.func @_mm_scale_bias_relu_kernel(%arg0: i32, %arg1: memref<1x16x2304xbf16, #tpu.memory_space<vmem>>, %arg2: memref<2304x256xbf16, #tpu.memory_space<vmem>>, %arg3: memref<1x256xf32, #tpu.memory_space<vmem>>, %arg4: memref<1x256xf32, #tpu.memory_space<vmem>>, %arg5: memref<1x16x256xbf16, #tpu.memory_space<vmem>>) attributes {dimension_semantics = [#tpu.dimension_semantics<parallel>], iteration_bounds = array<i64: 2>, scalar_prefetch = 0 : i64, scratch_operands = 0 : i64, tpu.core_type = #tpu.core_type<tc>, window_params = [{transform_indices = @transform_0, window_bounds = array<i64: 1, 16, 2304>}, {pipeline_mode = #tpu.pipeline_mode<synchronous>, transform_indices = @transform_1, window_bounds = array<i64: 2304, 256>}, {pipeline_mode = #tpu.pipeline_mode<synchronous>, transform_indices = @transform_2, window_bounds = array<i64: 1, 256>}, {pipeline_mode = #tpu.pipeline_mode<synchronous>, transform_indices = @transform_3, window_bounds = array<i64: 1, 256>}, {transform_indices = @transform_4, window_bounds = array<i64: 1, 16, 256>}]} {
    %c0 = arith.constant 0 : index
    %c0_0 = arith.constant 0 : index
    %c0_1 = arith.constant 0 : index
    %0 = vector.load %arg1[%c0, %c0_0, %c0_1] : memref<1x16x2304xbf16, #tpu.memory_space<vmem>>, vector<1x16x2304xbf16>
    %1 = vector.shape_cast %0 : vector<1x16x2304xbf16> to vector<16x2304xbf16>
    %c0_2 = arith.constant 0 : index
    %c0_3 = arith.constant 0 : index
    %2 = vector.load %arg2[%c0_2, %c0_3] : memref<2304x256xbf16, #tpu.memory_space<vmem>>, vector<2304x256xbf16>
    %cst = arith.constant dense<0.000000e+00> : vector<16x256xf32>
    %3 = tpu.matmul %1, %2, %cst {dimension_numbers = #tpu.dot_dimension_numbers<[1], [0], [0], [1], [0, 0, 1, 1], [], []>} : vector<16x2304xbf16>, vector<2304x256xbf16>, vector<16x256xf32> -> vector<16x256xf32>
    %c0_4 = arith.constant 0 : index
    %c0_5 = arith.constant 0 : index
    %4 = vector.load %arg3[%c0_4, %c0_5] : memref<1x256xf32, #tpu.memory_space<vmem>>, vector<1x256xf32>
    %5 = vector.broadcast %4 : vector<1x256xf32> to vector<16x256xf32>
    %6 = arith.mulf %3, %5 : vector<16x256xf32>
    %c0_6 = arith.constant 0 : index
    %c0_7 = arith.constant 0 : index
    %7 = vector.load %arg4[%c0_6, %c0_7] : memref<1x256xf32, #tpu.memory_space<vmem>>, vector<1x256xf32>
    %8 = vector.broadcast %7 : vector<1x256xf32> to vector<16x256xf32>
    %9 = arith.addf %6, %8 : vector<16x256xf32>
    %cst_8 = arith.constant 0.000000e+00 : f32
    %10 = vector.broadcast %cst_8 : f32 to vector<16x256xf32>
    %11 = arith.maximumf %9, %10 : vector<16x256xf32>
    %12 = arith.truncf %11 : vector<16x256xf32> to vector<16x256xbf16>
    %c0_9 = arith.constant 0 : index
    %c0_10 = arith.constant 0 : index
    %c0_11 = arith.constant 0 : index
    %13 = vector.load %arg5[%c0_9, %c0_10, %c0_11] : memref<1x16x256xbf16, #tpu.memory_space<vmem>>, vector<1x16x256xbf16>
    %14 = vector.shape_cast %13 : vector<1x16x256xbf16> to vector<16x256xbf16>
    %15 = vector.shape_cast %12 : vector<16x256xbf16> to vector<1x16x256xbf16>
    tpu.vector_store %arg5[%c0_9, %c0_10, %c0_11], %15 {strides = array<i32>} : memref<1x16x256xbf16, #tpu.memory_space<vmem>>, vector<1x16x256xbf16>,
    return
  }
  func.func @transform_0(%arg0: i32) -> (i32, i32, i32) {
    %c0_i32 = arith.constant 0 : i32
    %c0_i32_0 = arith.constant 0 : i32
    %c0_i32_1 = arith.constant 0 : i32
    return %arg0, %c0_i32, %c0_i32_0 : i32, i32, i32
  }
  func.func @transform_1(%arg0: i32) -> (i32, i32) {
    %c0_i32 = arith.constant 0 : i32
    %c0_i32_0 = arith.constant 0 : i32
    %c0_i32_1 = arith.constant 0 : i32
    return %c0_i32, %c0_i32_0 : i32, i32
  }
  func.func @transform_2(%arg0: i32) -> (i32, i32) {
    %c0_i32 = arith.constant 0 : i32
    %c0_i32_0 = arith.constant 0 : i32
    %c0_i32_1 = arith.constant 0 : i32
    return %c0_i32, %c0_i32_0 : i32, i32
  }
  func.func @transform_3(%arg0: i32) -> (i32, i32) {
    %c0_i32 = arith.constant 0 : i32
    %c0_i32_0 = arith.constant 0 : i32
    %c0_i32_1 = arith.constant 0 : i32
    return %c0_i32, %c0_i32_0 : i32, i32
  }
  func.func @transform_4(%arg0: i32) -> (i32, i32, i32) {
    %c0_i32 = arith.constant 0 : i32
    %c0_i32_0 = arith.constant 0 : i32
    %c0_i32_1 = arith.constant 0 : i32
    return %arg0, %c0_i32, %c0_i32_0 : i32, i32, i32
  }
}

module attributes {stable_mosaic.version = 11 : i64} {
  func.func @_mm_bias_relu_kernel(%arg0: i32, %arg1: memref<2x4096xbf16, #tpu.memory_space<vmem>>, %arg2: memref<4096x128xbf16, #tpu.memory_space<vmem>>, %arg3: memref<1x128xf32, #tpu.memory_space<vmem>>, %arg4: memref<2x128xf32, #tpu.memory_space<vmem>>) attributes {dimension_semantics = [#tpu.dimension_semantics<parallel>], iteration_bounds = array<i64: 1>, scalar_prefetch = 0 : i64, scratch_operands = 0 : i64, tpu.core_type = #tpu.core_type<tc>, window_params = [{pipeline_mode = #tpu.pipeline_mode<synchronous>, transform_indices = @transform_0, window_bounds = array<i64: 2, 4096>}, {pipeline_mode = #tpu.pipeline_mode<synchronous>, transform_indices = @transform_1, window_bounds = array<i64: 4096, 128>}, {pipeline_mode = #tpu.pipeline_mode<synchronous>, transform_indices = @transform_2, window_bounds = array<i64: 1, 128>}, {pipeline_mode = #tpu.pipeline_mode<synchronous>, transform_indices = @transform_3, window_bounds = array<i64: 2, 128>}]} {
    %c0 = arith.constant 0 : index
    %c0_0 = arith.constant 0 : index
    %0 = vector.load %arg1[%c0, %c0_0] : memref<2x4096xbf16, #tpu.memory_space<vmem>>, vector<2x4096xbf16>
    %c0_1 = arith.constant 0 : index
    %c0_2 = arith.constant 0 : index
    %1 = vector.load %arg2[%c0_1, %c0_2] : memref<4096x128xbf16, #tpu.memory_space<vmem>>, vector<4096x128xbf16>
    %cst = arith.constant dense<0.000000e+00> : vector<2x128xf32>
    %2 = tpu.matmul %0, %1, %cst {dimension_numbers = #tpu.dot_dimension_numbers<[1], [0], [0], [1], [0, 0, 1, 1], [], []>} : vector<2x4096xbf16>, vector<4096x128xbf16>, vector<2x128xf32> -> vector<2x128xf32>
    %c0_3 = arith.constant 0 : index
    %c0_4 = arith.constant 0 : index
    %3 = vector.load %arg3[%c0_3, %c0_4] : memref<1x128xf32, #tpu.memory_space<vmem>>, vector<1x128xf32>
    %4 = vector.broadcast %3 : vector<1x128xf32> to vector<2x128xf32>
    %5 = arith.addf %2, %4 : vector<2x128xf32>
    %cst_5 = arith.constant 0.000000e+00 : f32
    %6 = vector.broadcast %cst_5 : f32 to vector<2x128xf32>
    %7 = arith.maximumf %5, %6 : vector<2x128xf32>
    %c0_6 = arith.constant 0 : index
    %c0_7 = arith.constant 0 : index
    %8 = vector.load %arg4[%c0_6, %c0_7] : memref<2x128xf32, #tpu.memory_space<vmem>>, vector<2x128xf32>
    tpu.vector_store %arg4[%c0_6, %c0_7], %7 {strides = array<i32>} : memref<2x128xf32, #tpu.memory_space<vmem>>, vector<2x128xf32>,
    return
  }
  func.func @transform_0(%arg0: i32) -> (i32, i32) {
    %c0_i32 = arith.constant 0 : i32
    %c0_i32_0 = arith.constant 0 : i32
    %c0_i32_1 = arith.constant 0 : i32
    return %c0_i32, %c0_i32_0 : i32, i32
  }
  func.func @transform_1(%arg0: i32) -> (i32, i32) {
    %c0_i32 = arith.constant 0 : i32
    %c0_i32_0 = arith.constant 0 : i32
    %c0_i32_1 = arith.constant 0 : i32
    return %c0_i32, %c0_i32_0 : i32, i32
  }
  func.func @transform_2(%arg0: i32) -> (i32, i32) {
    %c0_i32 = arith.constant 0 : i32
    %c0_i32_0 = arith.constant 0 : i32
    %c0_i32_1 = arith.constant 0 : i32
    return %c0_i32, %c0_i32_0 : i32, i32
  }
  func.func @transform_3(%arg0: i32) -> (i32, i32) {
    %c0_i32 = arith.constant 0 : i32
    %c0_i32_0 = arith.constant 0 : i32
    %c0_i32_1 = arith.constant 0 : i32
    return %c0_i32, %c0_i32_0 : i32, i32
  }
}

</mosaic_0001>

<bundles_post_ra>
// kernel: feature_net.4
= control target key start
LH: loop header
LB: loop body
LE: loop exit
PB: predicated region body
PF: predicated region fallthrough
CT: control target
= control target key end

     0   :  { %s1021_s15 = smov 0   ;;  %s1290_s0 = inlined_call_operand.vmem [shape: bf16[2,256,9], index: 0, kind: input, shape index: {}]   ;;  %s1291_s1 = inlined_call_operand.vmem [shape: bf16[9,256], index: 1, kind: input, shape index: {}]   ;;  %s1292_s2 = inlined_call_operand.vmem [shape: f32[1,256], index: 2, kind: input, shape index: {}]   ;;  %s1293_s3 = inlined_call_operand.vmem [shape: f32[1,256], index: 3, kind: input, shape index: {}]   ;;  %s1294_s4 = inlined_call_operand.vmem [shape: f32[2,256,256], index: 4, kind: output, shape index: {}]  }
   0x1 LB: > { %s908_s16 = sadd.s32 4294967295, %s992_s15   ;;  %p912_p0 = scmp.ge.s32.totalorder %s992_s15, 1  ;;  %s992_s15 = sphi %s1021_s15, %s14_s15  }
   0x2   : > { %p162_p1 = scmp.lt.s32.totalorder %s992_s15, 3 }
   0x4   : > { %p163_p2 = pnand %p912_p0, %p162_p1 }
   0x5   : > { %p188_p3 = scmp.lt.s32.totalorder (!%p163_p2), %s908_s16, 1 }
   0x6   : > { %166 = sbr.rel (%p163_p2) target bundleno = 283 (0x11b), region = 36 }
   0xb   : > { %v967_v0 = vld [vmem:[%s1291_s1 + $0x4] ss:$8 sps:$4 sm:$0x1f]   ;;  %vm370_vm0 = vcmask 1043456   ;;  %vm371_vm1 = vcmask 1044480   ;;  %v994_v2 = vmov 65535   ;;  %v575_v24 = vlaneseq }
   0xc   : > { %v969_v1 = vld [vmem:[%s1291_s1] ss:$8 sps:$4 sm:$0x1f]   ;;  %v372_v3 = vsel %vm370_vm0, 4294967295, %v994_v2  ;;  %v995_v5 = vmov 0   ;;  %s1296_s16 = smov (!%p188_p3, %s908_s16), 1 }
   0xd   : > { %v373_v4 = vsel %vm371_vm1, %v372_v3, 0  ;;  %412 = vmatprep.mubr.bf16.mxu0 %v995_v5  ;;  %492 = vmatprep.mubr.bf16.mxu1 %v995_v5  ;;  %s953_s21 = sshll.u32 %s1296_s16, 7  ;;  %vm321_vm2 = vcmask 72704   ;;  %v576_v25 = vshrl.u32 %v575_v24, 7  ;;  %v573_v27 = vld [vmem:[%s1292_s2] sm:$0x3] }
   0xe   : > { %v378_v6 = vand.u32 %v967_v0, %v373_v4  ;;  %v375_v7 = vand.u32 %v969_v1, %v373_v4  ;;  %s1041_s24 = scalar_lea.vmem %s1290_s0, %s953_s21  ;;  %v649_v29 = vld [vmem:[%s1293_s3] sm:$0x3]  ;;  %s954_s29 = sshll.u32 %s1296_s16, 9 }
   0xf   : > { %v970_v8 = vld [vmem:[%s1041_s24] sm:$0xff]   ;;  %v972_v10 = vld [vmem:[%s1041_s24 + $0x8] sm:$0xff]   ;;  %v974_v12 = vld [vmem:[%s1041_s24 + $0x10] sm:$0xff]   ;;  %v577_v26 = vsub.s32 0, %v576_v25  ;;  %v581_v28 = vsub.s32 1, %v576_v25  ;;  %s1097_s6 = scalar_lea.vmem %s1294_s4, %s954_s29 }
  0x10   : > { %394 = vmatprep.subr.bf16.mxu0 %v378_v6  ;;  %955 = vmatprep.subr.bf16.mxu1 %v378_v6  ;;  %v971_v9 = vld [vmem:[%s1041_s24 + $0x40] sm:$0xff]   ;;  %v973_v11 = vld [vmem:[%s1041_s24 + $0x48] sm:$0xff]   ;;  %v975_v13 = vld [vmem:[%s1041_s24 + $0x50] sm:$0xff]  }
  0x11   : > { %395 = vmatpush1.bf16.msra.mxu0 %v375_v7  ;;  %956 = vmatpush1.bf16.msra.mxu1 %v375_v7  ;;  %v976_v14 = vld [vmem:[%s1041_s24 + $0x18] sm:$0xff]   ;;  %v978_v16 = vld [vmem:[%s1041_s24 + $0x20] sm:$0xff]   ;;  %v980_v18 = vld [vmem:[%s1041_s24 + $0x28] sm:$0xff]   ;;  %v1081_v30 = vrot.slane %v573_v27, %v577_v26  ;;  %v1083_v31 = vrot.slane %v649_v29, %v577_v26  ;;  %v1085_v32 = vrot.slane %v573_v27, %v581_v28 }
  0x12   : > { %v977_v15 = vld [vmem:[%s1041_s24 + $0x58] sm:$0xff]   ;;  %v979_v17 = vld [vmem:[%s1041_s24 + $0x60] sm:$0xff]   ;;  %v981_v19 = vld [vmem:[%s1041_s24 + $0x68] sm:$0xff]   ;;  %v1089_v36 = vrot.slane %v649_v29, %v581_v28 }
  0x13   : > { %v982_v20 = vld [vmem:[%s1041_s24 + $0x30] sm:$0xff]   ;;  %v984_v22 = vld [vmem:[%s1041_s24 + $0x38] sm:$0xff]  }
  0x14   : > { %935 = vmatmul.mubr.msk.bf16.vlgmr.msra.gmra.mxu0 %vm321_vm2, %v970_v8  ;;  %943 = vmatmul.mubr.msk.bf16.vlgmr.msra.gmra.mxu1 %vm321_vm2, %v971_v9  ;;  %v983_v21 = vld [vmem:[%s1041_s24 + $0x70] sm:$0xff]   ;;  %v985_v23 = vld [vmem:[%s1041_s24 + $0x78] sm:$0xff]  }
  0x15   : > { %422 = vmatprep.mubr.bf16.mxu0 %v995_v5  ;;  %502 = vmatprep.mubr.bf16.mxu1 %v995_v5 }
  0x1c   : > { %936 = vmatmul.mubr.msk.bf16.gmra.mxu0 %vm321_vm2, %v972_v10  ;;  %944 = vmatmul.mubr.msk.bf16.gmra.mxu1 %vm321_vm2, %v973_v11 }
  0x1d   : > { %432 = vmatprep.mubr.bf16.mxu0 %v995_v5  ;;  %512 = vmatprep.mubr.bf16.mxu1 %v995_v5 }
  0x24   : > { %937 = vmatmul.mubr.msk.bf16.gmra.mxu0 %vm321_vm2, %v974_v12  ;;  %945 = vmatmul.mubr.msk.bf16.gmra.mxu1 %vm321_vm2, %v975_v13 }
  0x25   : > { %442 = vmatprep.mubr.bf16.mxu0 %v995_v5  ;;  %522 = vmatprep.mubr.bf16.mxu1 %v995_v5 }
  0x2c   : > { %938 = vmatmul.mubr.msk.bf16.gmra.mxu0 %vm321_vm2, %v976_v14  ;;  %946 = vmatmul.mubr.msk.bf16.gmra.mxu1 %vm321_vm2, %v977_v15 }
  0x2d   : > { %452 = vmatprep.mubr.bf16.mxu0 %v995_v5  ;;  %532 = vmatprep.mubr.bf16.mxu1 %v995_v5 }
  0x34   : > { %939 = vmatmul.mubr.msk.bf16.gmra.mxu0 %vm321_vm2, %v978_v16  ;;  %947 = vmatmul.mubr.msk.bf16.gmra.mxu1 %vm321_vm2, %v979_v17 }
  0x35   : > { %462 = vmatprep.mubr.bf16.mxu0 %v995_v5  ;;  %542 = vmatprep.mubr.bf16.mxu1 %v995_v5 }
  0x3c   : > { %940 = vmatmul.mubr.msk.bf16.gmra.mxu0 %vm321_vm2, %v980_v18  ;;  %948 = vmatmul.mubr.msk.bf16.gmra.mxu1 %vm321_vm2, %v981_v19 }
  0x3d   : > { %472 = vmatprep.mubr.bf16.mxu0 %v995_v5  ;;  %552 = vmatprep.mubr.bf16.mxu1 %v995_v5 }
  0x44   : > { %941 = vmatmul.mubr.msk.bf16.gmra.mxu0 %vm321_vm2, %v982_v20  ;;  %949 = vmatmul.mubr.msk.bf16.gmra.mxu1 %vm321_vm2, %v983_v21 }
  0x45   : > { %482 = vmatprep.mubr.bf16.mxu0 %v995_v5  ;;  %562 = vmatprep.mubr.bf16.mxu1 %v995_v5 }
  0x4c   : > { %942 = vmatmul.mubr.msk.bf16.gmra.mxu0 %vm321_vm2, %v984_v22  ;;  %950 = vmatmul.mubr.msk.bf16.gmra.mxu1 %vm321_vm2, %v985_v23 }
  0xd4   : > { %v414_v33 = vpop.f32.mrf.mxu0  ;;  %v494_v35 = vpop.f32.mrf.mxu1 }
  0xd5   : > { %v585_v34 = vmul.f32 %v1081_v30, %v414_v33  ;;  %v617_v37 = vmul.f32 %v1081_v30, %v494_v35 }
  0xd6   : > { %v416_v38 = vpop.f32.mrf.mxu0  ;;  %v496_v41 = vpop.f32.mrf.mxu1 }
  0xd7   : > { %v661_v39 = vadd.f32 %v1083_v31, %v585_v34  ;;  %v586_v40 = vmul.f32 %v1085_v32, %v416_v38  ;;  %v693_v42 = vadd.f32 %v1083_v31, %v617_v37  ;;  %v618_v43 = vmul.f32 %v1085_v32, %v496_v41 }
  0xd8   : > { %v418_v44 = vpop.f32.mrf.mxu0  ;;  %v498_v48 = vpop.f32.mrf.mxu1 }
  0xd9   : > { %v725_v45 = vmax.f32 %v661_v39, 0.0  ;;  %v662_v46 = vadd.f32 %v1089_v36, %v586_v40  ;;  %v587_v47 = vmul.f32 %v1081_v30, %v418_v44  ;;  %v757_v49 = vmax.f32 %v693_v42, 0.0 }
  0xda   : > { %v694_v50 = vadd.f32 %v1089_v36, %v618_v43  ;;  %v619_v51 = vmul.f32 %v1081_v30, %v498_v48  ;;  %v420_v52 = vpop.f32.mrf.mxu0  ;;  %v500_v56 = vpop.f32.mrf.mxu1 }
  0xdb   : > { %789 = vst [vmem:[%s1097_s6] sm:$0xff] %v725_v45  ;;  %v726_v53 = vmax.f32 %v662_v46, 0.0  ;;  %v663_v54 = vadd.f32 %v1083_v31, %v587_v47  ;;  %v588_v55 = vmul.f32 %v1085_v32, %v420_v52  ;;  %821 = vst [vmem:[%s1097_s6 + $0x100] sm:$0xff] %v757_v49  ;;  %v620_v59 = vmul.f32 %v1085_v32, %v500_v56 }
  0xdc   : > { %v758_v57 = vmax.f32 %v694_v50, 0.0  ;;  %v695_v58 = vadd.f32 %v1083_v31, %v619_v51  ;;  %v424_v60 = vpop.f32.mrf.mxu0  ;;  %v504_v0 = vpop.f32.mrf.mxu1 }
  0xdd   : > { %790 = vst [vmem:[%s1097_s6 + $0x8] sm:$0xff] %v726_v53  ;;  %v727_v61 = vmax.f32 %v663_v54, 0.0  ;;  %v664_v62 = vadd.f32 %v1089_v36, %v588_v55  ;;  %v589_v63 = vmul.f32 %v1081_v30, %v424_v60  ;;  %v696_v2 = vadd.f32 %v1089_v36, %v620_v59 }
  0xde   : > { %822 = vst [vmem:[%s1097_s6 + $0x108] sm:$0xff] %v758_v57  ;;  %v759_v1 = vmax.f32 %v695_v58, 0.0  ;;  %v621_v3 = vmul.f32 %v1081_v30, %v504_v0  ;;  %v426_v4 = vpop.f32.mrf.mxu0  ;;  %v506_v8 = vpop.f32.mrf.mxu1 }
  0xdf   : > { %791 = vst [vmem:[%s1097_s6 + $0x10] sm:$0xff] %v727_v61  ;;  %v728_v5 = vmax.f32 %v664_v62, 0.0  ;;  %v665_v6 = vadd.f32 %v1083_v31, %v589_v63  ;;  %v590_v7 = vmul.f32 %v1085_v32, %v426_v4  ;;  %v760_v9 = vmax.f32 %v696_v2, 0.0 }
  0xe0   : > { %823 = vst [vmem:[%s1097_s6 + $0x110] sm:$0xff] %v759_v1  ;;  %v697_v10 = vadd.f32 %v1083_v31, %v621_v3  ;;  %v622_v11 = vmul.f32 %v1085_v32, %v506_v8  ;;  %v428_v12 = vpop.f32.mrf.mxu0  ;;  %v508_v16 = vpop.f32.mrf.mxu1 }
  0xe1   : > { %792 = vst [vmem:[%s1097_s6 + $0x18] sm:$0xff] %v728_v5  ;;  %v729_v13 = vmax.f32 %v665_v6, 0.0  ;;  %v666_v14 = vadd.f32 %v1089_v36, %v590_v7  ;;  %v591_v15 = vmul.f32 %v1081_v30, %v428_v12  ;;  %824 = vst [vmem:[%s1097_s6 + $0x118] sm:$0xff] %v760_v9  ;;  %v623_v19 = vmul.f32 %v1081_v30, %v508_v16 }
  0xe2   : > { %v761_v17 = vmax.f32 %v697_v10, 0.0  ;;  %v698_v18 = vadd.f32 %v1089_v36, %v622_v11  ;;  %v430_v20 = vpop.f32.mrf.mxu0  ;;  %v510_v24 = vpop.f32.mrf.mxu1 }
  0xe3   : > { %793 = vst [vmem:[%s1097_s6 + $0x20] sm:$0xff] %v729_v13  ;;  %v730_v21 = vmax.f32 %v666_v14, 0.0  ;;  %v667_v22 = vadd.f32 %v1083_v31, %v591_v15  ;;  %v592_v23 = vmul.f32 %v1085_v32, %v430_v20  ;;  %v699_v26 = vadd.f32 %v1083_v31, %v623_v19 }
  0xe4   : > { %825 = vst [vmem:[%s1097_s6 + $0x120] sm:$0xff] %v761_v17  ;;  %v762_v25 = vmax.f32 %v698_v18, 0.0  ;;  %v624_v27 = vmul.f32 %v1085_v32, %v510_v24  ;;  %v434_v28 = vpop.f32.mrf.mxu0  ;;  %v514_v35 = vpop.f32.mrf.mxu1 }
  0xe5   : > { %794 = vst [vmem:[%s1097_s6 + $0x28] sm:$0xff] %v730_v21  ;;  %v731_v29 = vmax.f32 %v667_v22, 0.0  ;;  %v668_v33 = vadd.f32 %v1089_v36, %v592_v23  ;;  %v593_v34 = vmul.f32 %v1081_v30, %v434_v28  ;;  %v763_v37 = vmax.f32 %v699_v26, 0.0 }
  0xe6   : > { %826 = vst [vmem:[%s1097_s6 + $0x128] sm:$0xff] %v762_v25  ;;  %v700_v38 = vadd.f32 %v1089_v36, %v624_v27  ;;  %v625_v39 = vmul.f32 %v1081_v30, %v514_v35  ;;  %v436_v40 = vpop.f32.mrf.mxu0  ;;  %v516_v44 = vpop.f32.mrf.mxu1 }
  0xe7   : > { %795 = vst [vmem:[%s1097_s6 + $0x30] sm:$0xff] %v731_v29  ;;  %v732_v41 = vmax.f32 %v668_v33, 0.0  ;;  %v669_v42 = vadd.f32 %v1083_v31, %v593_v34  ;;  %v594_v43 = vmul.f32 %v1085_v32, %v436_v40  ;;  %827 = vst [vmem:[%s1097_s6 + $0x130] sm:$0xff] %v763_v37  ;;  %v626_v47 = vmul.f32 %v1085_v32, %v516_v44 }
  0xe8   : > { %v764_v45 = vmax.f32 %v700_v38, 0.0  ;;  %v701_v46 = vadd.f32 %v1083_v31, %v625_v39  ;;  %v438_v48 = vpop.f32.mrf.mxu0  ;;  %v518_v52 = vpop.f32.mrf.mxu1 }
  0xe9   : > { %796 = vst [vmem:[%s1097_s6 + $0x38] sm:$0xff] %v732_v41  ;;  %v733_v49 = vmax.f32 %v669_v42, 0.0  ;;  %v670_v50 = vadd.f32 %v1089_v36, %v594_v43  ;;  %v595_v51 = vmul.f32 %v1081_v30, %v438_v48  ;;  %v702_v54 = vadd.f32 %v1089_v36, %v626_v47 }
  0xea   : > { %828 = vst [vmem:[%s1097_s6 + $0x138] sm:$0xff] %v764_v45  ;;  %v765_v53 = vmax.f32 %v701_v46, 0.0  ;;  %v627_v55 = vmul.f32 %v1081_v30, %v518_v52  ;;  %v440_v56 = vpop.f32.mrf.mxu0  ;;  %v520_v60 = vpop.f32.mrf.mxu1 }
  0xeb   : > { %797 = vst [vmem:[%s1097_s6 + $0x40] sm:$0xff] %v733_v49  ;;  %v734_v57 = vmax.f32 %v670_v50, 0.0  ;;  %v671_v58 = vadd.f32 %v1083_v31, %v595_v51  ;;  %v596_v59 = vmul.f32 %v1085_v32, %v440_v56  ;;  %v766_v61 = vmax.f32 %v702_v54, 0.0 }
  0xec   : > { %829 = vst [vmem:[%s1097_s6 + $0x140] sm:$0xff] %v765_v53  ;;  %v703_v62 = vadd.f32 %v1083_v31, %v627_v55  ;;  %v628_v63 = vmul.f32 %v1085_v32, %v520_v60  ;;  %v444_v0 = vpop.f32.mrf.mxu0  ;;  %v524_v4 = vpop.f32.mrf.mxu1 }
  0xed   : > { %798 = vst [vmem:[%s1097_s6 + $0x48] sm:$0xff] %v734_v57  ;;  %v735_v1 = vmax.f32 %v671_v58, 0.0  ;;  %v672_v2 = vadd.f32 %v1089_v36, %v596_v59  ;;  %v597_v3 = vmul.f32 %v1081_v30, %v444_v0  ;;  %830 = vst [vmem:[%s1097_s6 + $0x148] sm:$0xff] %v766_v61  ;;  %v629_v7 = vmul.f32 %v1081_v30, %v524_v4 }
  0xee   : > { %v767_v5 = vmax.f32 %v703_v62, 0.0  ;;  %v704_v6 = vadd.f32 %v1089_v36, %v628_v63  ;;  %v446_v8 = vpop.f32.mrf.mxu0  ;;  %v526_v12 = vpop.f32.mrf.mxu1 }
  0xef   : > { %799 = vst [vmem:[%s1097_s6 + $0x50] sm:$0xff] %v735_v1  ;;  %v736_v9 = vmax.f32 %v672_v2, 0.0  ;;  %v673_v10 = vadd.f32 %v1083_v31, %v597_v3  ;;  %v598_v11 = vmul.f32 %v1085_v32, %v446_v8  ;;  %v705_v14 = vadd.f32 %v1083_v31, %v629_v7 }
  0xf0   : > { %831 = vst [vmem:[%s1097_s6 + $0x150] sm:$0xff] %v767_v5  ;;  %v768_v13 = vmax.f32 %v704_v6, 0.0  ;;  %v630_v15 = vmul.f32 %v1085_v32, %v526_v12  ;;  %v448_v16 = vpop.f32.mrf.mxu0  ;;  %v528_v20 = vpop.f32.mrf.mxu1 }
  0xf1   : > { %800 = vst [vmem:[%s1097_s6 + $0x58] sm:$0xff] %v736_v9  ;;  %v737_v17 = vmax.f32 %v673_v10, 0.0  ;;  %v674_v18 = vadd.f32 %v1089_v36, %v598_v11  ;;  %v599_v19 = vmul.f32 %v1081_v30, %v448_v16  ;;  %v769_v21 = vmax.f32 %v705_v14, 0.0 }
  0xf2   : > { %832 = vst [vmem:[%s1097_s6 + $0x158] sm:$0xff] %v768_v13  ;;  %v706_v22 = vadd.f32 %v1089_v36, %v630_v15  ;;  %v631_v23 = vmul.f32 %v1081_v30, %v528_v20  ;;  %v450_v24 = vpop.f32.mrf.mxu0  ;;  %v530_v28 = vpop.f32.mrf.mxu1 }
  0xf3   : > { %801 = vst [vmem:[%s1097_s6 + $0x60] sm:$0xff] %v737_v17  ;;  %v738_v25 = vmax.f32 %v674_v18, 0.0  ;;  %v675_v26 = vadd.f32 %v1083_v31, %v599_v19  ;;  %v600_v27 = vmul.f32 %v1085_v32, %v450_v24  ;;  %833 = vst [vmem:[%s1097_s6 + $0x160] sm:$0xff] %v769_v21  ;;  %v632_v34 = vmul.f32 %v1085_v32, %v530_v28 }
  0xf4   : > { %v770_v29 = vmax.f32 %v706_v22, 0.0  ;;  %v707_v33 = vadd.f32 %v1083_v31, %v631_v23  ;;  %v454_v35 = vpop.f32.mrf.mxu0  ;;  %v534_v40 = vpop.f32.mrf.mxu1 }
  0xf5   : > { %802 = vst [vmem:[%s1097_s6 + $0x68] sm:$0xff] %v738_v25  ;;  %v739_v37 = vmax.f32 %v675_v26, 0.0  ;;  %v676_v38 = vadd.f32 %v1089_v36, %v600_v27  ;;  %v601_v39 = vmul.f32 %v1081_v30, %v454_v35  ;;  %v708_v42 = vadd.f32 %v1089_v36, %v632_v34 }
  0xf6   : > { %834 = vst [vmem:[%s1097_s6 + $0x168] sm:$0xff] %v770_v29  ;;  %v771_v41 = vmax.f32 %v707_v33, 0.0  ;;  %v633_v43 = vmul.f32 %v1081_v30, %v534_v40  ;;  %v456_v44 = vpop.f32.mrf.mxu0  ;;  %v536_v48 = vpop.f32.mrf.mxu1 }
  0xf7   : > { %803 = vst [vmem:[%s1097_s6 + $0x70] sm:$0xff] %v739_v37  ;;  %v740_v45 = vmax.f32 %v676_v38, 0.0  ;;  %v677_v46 = vadd.f32 %v1083_v31, %v601_v39  ;;  %v602_v47 = vmul.f32 %v1085_v32, %v456_v44  ;;  %v772_v49 = vmax.f32 %v708_v42, 0.0 }
  0xf8   : > { %835 = vst [vmem:[%s1097_s6 + $0x170] sm:$0xff] %v771_v41  ;;  %v709_v50 = vadd.f32 %v1083_v31, %v633_v43  ;;  %v634_v51 = vmul.f32 %v1085_v32, %v536_v48  ;;  %v458_v52 = vpop.f32.mrf.mxu0  ;;  %v538_v56 = vpop.f32.mrf.mxu1 }
  0xf9   : > { %804 = vst [vmem:[%s1097_s6 + $0x78] sm:$0xff] %v740_v45  ;;  %v741_v53 = vmax.f32 %v677_v46, 0.0  ;;  %v678_v54 = vadd.f32 %v1089_v36, %v602_v47  ;;  %v603_v55 = vmul.f32 %v1081_v30, %v458_v52  ;;  %836 = vst [vmem:[%s1097_s6 + $0x178] sm:$0xff] %v772_v49  ;;  %v635_v59 = vmul.f32 %v1081_v30, %v538_v56 }
  0xfa   : > { %v773_v57 = vmax.f32 %v709_v50, 0.0  ;;  %v710_v58 = vadd.f32 %v1089_v36, %v634_v51  ;;  %v460_v60 = vpop.f32.mrf.mxu0  ;;  %v540_v0 = vpop.f32.mrf.mxu1 }
  0xfb   : > { %805 = vst [vmem:[%s1097_s6 + $0x80] sm:$0xff] %v741_v53  ;;  %v742_v61 = vmax.f32 %v678_v54, 0.0  ;;  %v679_v62 = vadd.f32 %v1083_v31, %v603_v55  ;;  %v604_v63 = vmul.f32 %v1085_v32, %v460_v60  ;;  %v711_v2 = vadd.f32 %v1083_v31, %v635_v59 }
  0xfc   : > { %837 = vst [vmem:[%s1097_s6 + $0x180] sm:$0xff] %v773_v57  ;;  %v774_v1 = vmax.f32 %v710_v58, 0.0  ;;  %v636_v3 = vmul.f32 %v1085_v32, %v540_v0  ;;  %v464_v4 = vpop.f32.mrf.mxu0  ;;  %v544_v8 = vpop.f32.mrf.mxu1 }
  0xfd   : > { %806 = vst [vmem:[%s1097_s6 + $0x88] sm:$0xff] %v742_v61  ;;  %v743_v5 = vmax.f32 %v679_v62, 0.0  ;;  %v680_v6 = vadd.f32 %v1089_v36, %v604_v63  ;;  %v605_v7 = vmul.f32 %v1081_v30, %v464_v4  ;;  %v775_v9 = vmax.f32 %v711_v2, 0.0 }
  0xfe   : > { %838 = vst [vmem:[%s1097_s6 + $0x188] sm:$0xff] %v774_v1  ;;  %v712_v10 = vadd.f32 %v1089_v36, %v636_v3  ;;  %v637_v11 = vmul.f32 %v1081_v30, %v544_v8  ;;  %v466_v12 = vpop.f32.mrf.mxu0  ;;  %v546_v16 = vpop.f32.mrf.mxu1 }
  0xff   : > { %807 = vst [vmem:[%s1097_s6 + $0x90] sm:$0xff] %v743_v5  ;;  %v744_v13 = vmax.f32 %v680_v6, 0.0  ;;  %v681_v14 = vadd.f32 %v1083_v31, %v605_v7  ;;  %v606_v15 = vmul.f32 %v1085_v32, %v466_v12  ;;  %839 = vst [vmem:[%s1097_s6 + $0x190] sm:$0xff] %v775_v9  ;;  %v638_v19 = vmul.f32 %v1085_v32, %v546_v16 }
 0x100   : > { %v776_v17 = vmax.f32 %v712_v10, 0.0  ;;  %v713_v18 = vadd.f32 %v1083_v31, %v637_v11  ;;  %v468_v20 = vpop.f32.mrf.mxu0  ;;  %v548_v24 = vpop.f32.mrf.mxu1 }
 0x101   : > { %808 = vst [vmem:[%s1097_s6 + $0x98] sm:$0xff] %v744_v13  ;;  %v745_v21 = vmax.f32 %v681_v14, 0.0  ;;  %v682_v22 = vadd.f32 %v1089_v36, %v606_v15  ;;  %v607_v23 = vmul.f32 %v1081_v30, %v468_v20  ;;  %v714_v26 = vadd.f32 %v1089_v36, %v638_v19 }
 0x102   : > { %840 = vst [vmem:[%s1097_s6 + $0x198] sm:$0xff] %v776_v17  ;;  %v777_v25 = vmax.f32 %v713_v18, 0.0  ;;  %v639_v27 = vmul.f32 %v1081_v30, %v548_v24  ;;  %v470_v28 = vpop.f32.mrf.mxu0  ;;  %v550_v35 = vpop.f32.mrf.mxu1 }
 0x103   : > { %809 = vst [vmem:[%s1097_s6 + $0xa0] sm:$0xff] %v745_v21  ;;  %v746_v29 = vmax.f32 %v682_v22, 0.0  ;;  %v683_v33 = vadd.f32 %v1083_v31, %v607_v23  ;;  %v608_v34 = vmul.f32 %v1085_v32, %v470_v28  ;;  %v778_v37 = vmax.f32 %v714_v26, 0.0 }
 0x104   : > { %841 = vst [vmem:[%s1097_s6 + $0x1a0] sm:$0xff] %v777_v25  ;;  %v715_v38 = vadd.f32 %v1083_v31, %v639_v27  ;;  %v640_v39 = vmul.f32 %v1085_v32, %v550_v35  ;;  %v474_v40 = vpop.f32.mrf.mxu0  ;;  %v554_v44 = vpop.f32.mrf.mxu1 }
 0x105   : > { %810 = vst [vmem:[%s1097_s6 + $0xa8] sm:$0xff] %v746_v29  ;;  %v747_v41 = vmax.f32 %v683_v33, 0.0  ;;  %v684_v42 = vadd.f32 %v1089_v36, %v608_v34  ;;  %v609_v43 = vmul.f32 %v1081_v30, %v474_v40  ;;  %842 = vst [vmem:[%s1097_s6 + $0x1a8] sm:$0xff] %v778_v37  ;;  %v641_v47 = vmul.f32 %v1081_v30, %v554_v44 }
 0x106   : > { %v779_v45 = vmax.f32 %v715_v38, 0.0  ;;  %v716_v46 = vadd.f32 %v1089_v36, %v640_v39  ;;  %v476_v48 = vpop.f32.mrf.mxu0  ;;  %v556_v52 = vpop.f32.mrf.mxu1 }
 0x107   : > { %811 = vst [vmem:[%s1097_s6 + $0xb0] sm:$0xff] %v747_v41  ;;  %v748_v49 = vmax.f32 %v684_v42, 0.0  ;;  %v685_v50 = vadd.f32 %v1083_v31, %v609_v43  ;;  %v610_v51 = vmul.f32 %v1085_v32, %v476_v48  ;;  %v717_v54 = vadd.f32 %v1083_v31, %v641_v47 }
 0x108   : > { %843 = vst [vmem:[%s1097_s6 + $0x1b0] sm:$0xff] %v779_v45  ;;  %v780_v53 = vmax.f32 %v716_v46, 0.0  ;;  %v642_v55 = vmul.f32 %v1085_v32, %v556_v52  ;;  %v478_v56 = vpop.f32.mrf.mxu0  ;;  %v558_v60 = vpop.f32.mrf.mxu1 }
 0x109   : > { %812 = vst [vmem:[%s1097_s6 + $0xb8] sm:$0xff] %v748_v49  ;;  %v749_v57 = vmax.f32 %v685_v50, 0.0  ;;  %v686_v58 = vadd.f32 %v1089_v36, %v610_v51  ;;  %v611_v59 = vmul.f32 %v1081_v30, %v478_v56  ;;  %v781_v61 = vmax.f32 %v717_v54, 0.0 }
 0x10a   : > { %844 = vst [vmem:[%s1097_s6 + $0x1b8] sm:$0xff] %v780_v53  ;;  %v718_v62 = vadd.f32 %v1089_v36, %v642_v55  ;;  %v643_v63 = vmul.f32 %v1081_v30, %v558_v60  ;;  %v480_v0 = vpop.f32.mrf.mxu0  ;;  %v560_v4 = vpop.f32.mrf.mxu1 }
 0x10b   : > { %813 = vst [vmem:[%s1097_s6 + $0xc0] sm:$0xff] %v749_v57  ;;  %v750_v1 = vmax.f32 %v686_v58, 0.0  ;;  %v687_v2 = vadd.f32 %v1083_v31, %v611_v59  ;;  %v612_v3 = vmul.f32 %v1085_v32, %v480_v0  ;;  %845 = vst [vmem:[%s1097_s6 + $0x1c0] sm:$0xff] %v781_v61  ;;  %v644_v7 = vmul.f32 %v1085_v32, %v560_v4 }
 0x10c   : > { %v782_v5 = vmax.f32 %v718_v62, 0.0  ;;  %v719_v6 = vadd.f32 %v1083_v31, %v643_v63  ;;  %v484_v8 = vpop.f32.mrf.mxu0  ;;  %v564_v12 = vpop.f32.mrf.mxu1 }
 0x10d   : > { %814 = vst [vmem:[%s1097_s6 + $0xc8] sm:$0xff] %v750_v1  ;;  %v751_v9 = vmax.f32 %v687_v2, 0.0  ;;  %v688_v10 = vadd.f32 %v1089_v36, %v612_v3  ;;  %v613_v11 = vmul.f32 %v1081_v30, %v484_v8  ;;  %v720_v14 = vadd.f32 %v1089_v36, %v644_v7 }
 0x10e   : > { %846 = vst [vmem:[%s1097_s6 + $0x1c8] sm:$0xff] %v782_v5  ;;  %v783_v13 = vmax.f32 %v719_v6, 0.0  ;;  %v645_v15 = vmul.f32 %v1081_v30, %v564_v12  ;;  %v486_v16 = vpop.f32.mrf.mxu0  ;;  %v566_v20 = vpop.f32.mrf.mxu1 }
 0x10f   : > { %815 = vst [vmem:[%s1097_s6 + $0xd0] sm:$0xff] %v751_v9  ;;  %v752_v17 = vmax.f32 %v688_v10, 0.0  ;;  %v689_v18 = vadd.f32 %v1083_v31, %v613_v11  ;;  %v614_v19 = vmul.f32 %v1085_v32, %v486_v16  ;;  %v784_v21 = vmax.f32 %v720_v14, 0.0 }
 0x110   : > { %847 = vst [vmem:[%s1097_s6 + $0x1d0] sm:$0xff] %v783_v13  ;;  %v721_v22 = vadd.f32 %v1083_v31, %v645_v15  ;;  %v646_v23 = vmul.f32 %v1085_v32, %v566_v20  ;;  %v488_v24 = vpop.f32.mrf.mxu0  ;;  %v568_v28 = vpop.f32.mrf.mxu1 }
 0x111   : > { %816 = vst [vmem:[%s1097_s6 + $0xd8] sm:$0xff] %v752_v17  ;;  %v753_v25 = vmax.f32 %v689_v18, 0.0  ;;  %v690_v26 = vadd.f32 %v1089_v36, %v614_v19  ;;  %v615_v27 = vmul.f32 %v1081_v30, %v488_v24  ;;  %848 = vst [vmem:[%s1097_s6 + $0x1d8] sm:$0xff] %v784_v21  ;;  %v647_v34 = vmul.f32 %v1081_v30, %v568_v28 }
 0x112   : > { %v785_v29 = vmax.f32 %v721_v22, 0.0  ;;  %v722_v33 = vadd.f32 %v1089_v36, %v646_v23  ;;  %v490_v35 = vpop.f32.mrf.mxu0  ;;  %v570_v40 = vpop.f32.mrf.mxu1 }
 0x113   : > { %817 = vst [vmem:[%s1097_s6 + $0xe0] sm:$0xff] %v753_v25  ;;  %v754_v37 = vmax.f32 %v690_v26, 0.0  ;;  %v691_v38 = vadd.f32 %v1083_v31, %v615_v27  ;;  %v616_v39 = vmul.f32 %v1085_v32, %v490_v35  ;;  %v723_v42 = vadd.f32 %v1083_v31, %v647_v34 }
 0x114   : > { %849 = vst [vmem:[%s1097_s6 + $0x1e0] sm:$0xff] %v785_v29  ;;  %v786_v41 = vmax.f32 %v722_v33, 0.0  ;;  %v648_v43 = vmul.f32 %v1085_v32, %v570_v40 }
 0x115   : > { %818 = vst [vmem:[%s1097_s6 + $0xe8] sm:$0xff] %v754_v37  ;;  %v755_v30 = vmax.f32 %v691_v38, 0.0  ;;  %v692_v44 = vadd.f32 %v1089_v36, %v616_v39  ;;  %v787_v45 = vmax.f32 %v723_v42, 0.0 }
 0x116   : > { %850 = vst [vmem:[%s1097_s6 + $0x1e8] sm:$0xff] %v786_v41  ;;  %v724_v46 = vadd.f32 %v1089_v36, %v648_v43 }
 0x117   : > { %819 = vst [vmem:[%s1097_s6 + $0xf0] sm:$0xff] %v755_v30  ;;  %v756_v47 = vmax.f32 %v692_v44, 0.0  ;;  %851 = vst [vmem:[%s1097_s6 + $0x1f0] sm:$0xff] %v787_v45 }
 0x118   : > { %v788_v48 = vmax.f32 %v724_v46, 0.0 }
 0x119   : > { %820 = vst [vmem:[%s1097_s6 + $0xf8] sm:$0xff] %v756_v47 }
 0x11a   : > { %852 = vst [vmem:[%s1097_s6 + $0x1f8] sm:$0xff] %v788_v48 }
 0x11b PF: > { %s14_s15 = sadd.s32 1, %s992_s15  }
 0x11c   : > { %p11_p4 = scmp.ge.s32.totalorder %s14_s15, 4  }
 0x11e   :  { %13 = sbr.rel (!%p11_p4) target bundleno = 1 (0x1), region = 66 }

// kernel: feature_net.5
= control target key start
LH: loop header
LB: loop body
LE: loop exit
PB: predicated region body
PF: predicated region fallthrough
CT: control target
= control target key end

     0   :  { %s4665_s15 = smov 0   ;;  %s6098_s0 = inlined_call_operand.vmem [shape: f32[2,4,9,9,256], index: 0, kind: input, shape index: {}]   ;;  %s6099_s1 = inlined_call_operand.vmem [shape: bf16[9,256,256], index: 1, kind: input, shape index: {}]   ;;  %s6100_s2 = inlined_call_operand.vmem [shape: f32[1,256], index: 2, kind: input, shape index: {}]   ;;  %s6101_s3 = inlined_call_operand.vmem [shape: f32[1,256], index: 3, kind: input, shape index: {}]   ;;  %s6102_s4 = inlined_call_operand.vmem [shape: bf16[2,64,256], index: 4, kind: output, shape index: {}]  }
   0x1 LB: > { %s3444_s16 = sadd.s32 4294967295, %s4638_s15   ;;  %p3448_p0 = scmp.ge.s32.totalorder %s4638_s15, 1  ;;  %s4638_s15 = sphi %s4665_s15, %s14_s15  }
   0x2   : > { %p162_p1 = scmp.lt.s32.totalorder %s4638_s15, 3 }
   0x4   : > { %p163_p2 = pnand %p3448_p0, %p162_p1 }
   0x6   : > { %166 = sbr.rel (%p163_p2) target bundleno = 552 (0x228), region = 36 }
   0xb   : > { %v4200_v0 = vld [vmem:[%s6099_s1 + $0x174] ss:$8 sps:$4 sm:$0xff]   ;;  %v4204_v2 = vld [vmem:[%s6099_s1 + $0x170] ss:$8 sps:$4 sm:$0xff]   ;;  %v4206_v4 = vld [vmem:[%s6099_s1 + $0x164] ss:$8 sps:$4 sm:$0xff]  }
   0xc   : > { %v4202_v1 = vld [vmem:[%s6099_s1 + $0x74] ss:$8 sps:$4 sm:$0xff]   ;;  %472 = vmatprep.subr.bf16.mxu0 %v4200_v0  ;;  %v4205_v3 = vld [vmem:[%s6099_s1 + $0x70] ss:$8 sps:$4 sm:$0xff]   ;;  %v4208_v5 = vld [vmem:[%s6099_s1 + $0x64] ss:$8 sps:$4 sm:$0xff]  }
   0xd   : > { %705 = vmatprep.subr.bf16.mxu1 %v4202_v1  ;;  %473 = vmatpush1.bf16.msra.mxu0 %v4204_v2  ;;  %v4210_v6 = vld [vmem:[%s6099_s1 + $0x160] ss:$8 sps:$4 sm:$0xff]   ;;  %v4212_v8 = vld [vmem:[%s6099_s1 + $0x154] ss:$8 sps:$4 sm:$0xff]   ;;  %v4216_v10 = vld [vmem:[%s6099_s1 + $0x150] ss:$8 sps:$4 sm:$0xff]  }
   0xe   : > { %706 = vmatpush1.bf16.msra.mxu1 %v4205_v3  ;;  %474 = vmatprep.subr.bf16.mxu0 %v4206_v4  ;;  %v4211_v7 = vld [vmem:[%s6099_s1 + $0x60] ss:$8 sps:$4 sm:$0xff]   ;;  %v4214_v9 = vld [vmem:[%s6099_s1 + $0x54] ss:$8 sps:$4 sm:$0xff]   ;;  %v4217_v11 = vld [vmem:[%s6099_s1 + $0x50] ss:$8 sps:$4 sm:$0xff]  }
   0xf   : > { %707 = vmatprep.subr.bf16.mxu1 %v4208_v5  ;;  %v4218_v12 = vld [vmem:[%s6099_s1 + $0x144] ss:$8 sps:$4 sm:$0xff]   ;;  %v4222_v14 = vld [vmem:[%s6099_s1 + $0x140] ss:$8 sps:$4 sm:$0xff]   ;;  %v4224_v16 = vld [vmem:[%s6099_s1 + $0x134] ss:$8 sps:$4 sm:$0xff]  }
  0x10   : > { %v4220_v13 = vld [vmem:[%s6099_s1 + $0x44] ss:$8 sps:$4 sm:$0xff]   ;;  %v4223_v15 = vld [vmem:[%s6099_s1 + $0x40] ss:$8 sps:$4 sm:$0xff]   ;;  %v4226_v17 = vld [vmem:[%s6099_s1 + $0x34] ss:$8 sps:$4 sm:$0xff]  }
  0x11   : > { %475 = vmatpush1.bf16.msra.mxu0 %v4210_v6  ;;  %v4228_v18 = vld [vmem:[%s6099_s1 + $0x130] ss:$8 sps:$4 sm:$0xff]   ;;  %v4230_v20 = vld [vmem:[%s6099_s1 + $0x124] ss:$8 sps:$4 sm:$0xff]   ;;  %v4234_v22 = vld [vmem:[%s6099_s1 + $0x120] ss:$8 sps:$4 sm:$0xff]  }
  0x12   : > { %708 = vmatpush1.bf16.msra.mxu1 %v4211_v7  ;;  %476 = vmatprep.subr.bf16.mxu0 %v4212_v8  ;;  %v4229_v19 = vld [vmem:[%s6099_s1 + $0x30] ss:$8 sps:$4 sm:$0xff]   ;;  %v4232_v21 = vld [vmem:[%s6099_s1 + $0x24] ss:$8 sps:$4 sm:$0xff]   ;;  %v4235_v23 = vld [vmem:[%s6099_s1 + $0x20] ss:$8 sps:$4 sm:$0xff]  }
  0x13   : > { %709 = vmatprep.subr.bf16.mxu1 %v4214_v9  ;;  %v4236_v24 = vld [vmem:[%s6099_s1 + $0x114] ss:$8 sps:$4 sm:$0xff]   ;;  %v4240_v26 = vld [vmem:[%s6099_s1 + $0x110] ss:$8 sps:$4 sm:$0xff]   ;;  %v4242_v28 = vld [vmem:[%s6099_s1 + $0x104] ss:$8 sps:$4 sm:$0xff]  }
  0x14   : > { %v4238_v25 = vld [vmem:[%s6099_s1 + $0x14] ss:$8 sps:$4 sm:$0xff]   ;;  %v4241_v27 = vld [vmem:[%s6099_s1 + $0x10] ss:$8 sps:$4 sm:$0xff]   ;;  %v4244_v29 = vld [vmem:[%s6099_s1 + $0x4] ss:$8 sps:$4 sm:$0xff]  }
  0x15   : > { %477 = vmatpush1.bf16.msra.mxu0 %v4216_v10  ;;  %v4246_v30 = vld [vmem:[%s6099_s1 + $0x100] ss:$8 sps:$4 sm:$0xff]   ;;  %p188_p3 = scmp.lt.s32.totalorder %s3444_s16, 1  ;;  %v4248_v32 = vld [vmem:[%s6099_s1 + $0x1f4] ss:$8 sps:$4 sm:$0xff]   ;;  %vm842_vm0 = vcmask 1046528  }
  0x16   : > { %710 = vmatpush1.bf16.msra.mxu1 %v4217_v11  ;;  %478 = vmatprep.subr.bf16.mxu0 %v4218_v12  ;;  %v4247_v31 = vld [vmem:[%s6099_s1] ss:$8 sps:$4 sm:$0xff]   ;;  %v4250_v33 = vld [vmem:[%s6099_s1 + $0xf4] ss:$8 sps:$4 sm:$0xff]   ;;  %v4252_v34 = vld [vmem:[%s6099_s1 + $0x1f0] ss:$8 sps:$4 sm:$0xff]  }
  0x17   : > { %711 = vmatprep.subr.bf16.mxu1 %v4220_v13  ;;  %v4253_v35 = vld [vmem:[%s6099_s1 + $0xf0] ss:$8 sps:$4 sm:$0xff]   ;;  %s6148_s16 = smov (!%p188_p3, %s3444_s16), 1  ;;  %v4254_v36 = vld [vmem:[%s6099_s1 + $0x1e4] ss:$8 sps:$4 sm:$0xff]  }
  0x18   : > { %v4256_v37 = vld [vmem:[%s6099_s1 + $0xe4] ss:$8 sps:$4 sm:$0xff]   ;;  %v4258_v38 = vld [vmem:[%s6099_s1 + $0x1e0] ss:$8 sps:$4 sm:$0xff]   ;;  %s4191_s23 = smul.u32 1152, %s6148_s16  ;;  %s4150_s21 = sshll.u32 %s6148_s16, 6 }
  0x19   : > { %479 = vmatpush1.bf16.msra.mxu0 %v4222_v14  ;;  %v4259_v39 = vld [vmem:[%s6099_s1 + $0xe0] ss:$8 sps:$4 sm:$0xff]   ;;  %v4260_v40 = vld [vmem:[%s6099_s1 + $0x1d4] ss:$8 sps:$4 sm:$0xff]   ;;  %v4264_v42 = vld [vmem:[%s6099_s1 + $0x1d0] ss:$8 sps:$4 sm:$0xff]   ;;  %s6059_s16 = scalar_lea.vmem %s6102_s4, %s4150_s21 }
  0x1a   : > { %712 = vmatpush1.bf16.msra.mxu1 %v4223_v15  ;;  %480 = vmatprep.subr.bf16.mxu0 %v4224_v16  ;;  %v4262_v41 = vld [vmem:[%s6099_s1 + $0xd4] ss:$8 sps:$4 sm:$0xff]   ;;  %v4265_v43 = vld [vmem:[%s6099_s1 + $0xd0] ss:$8 sps:$4 sm:$0xff]   ;;  %s4815_s10 = scalar_lea.vmem %s6098_s0, %s4191_s23  ;;  %v4266_v44 = vld [vmem:[%s6099_s1 + $0x1c4] ss:$8 sps:$4 sm:$0xff]  }
  0x1b   : > { %713 = vmatprep.subr.bf16.mxu1 %v4226_v17  ;;  %v4268_v45 = vld [vmem:[%s6099_s1 + $0xc4] ss:$8 sps:$4 sm:$0xff]   ;;  %v4270_v50 = vld [vmem:[%s6099_s1 + $0x1c0] ss:$8 sps:$4 sm:$0xff]   ;;  %v4272_v52 = vld [vmem:[%s6099_s1 + $0x1b4] ss:$8 sps:$4 sm:$0xff]  }
  0x1c   : > { %v3453_v46 = vld [vmem:[%s4815_s10 + $0x128] sm:$0xff]  ;;  %v4274_v55 = vld [vmem:[%s6099_s1 + $0xb4] ss:$8 sps:$4 sm:$0xff]   ;;  %v4276_v56 = vld [vmem:[%s6099_s1 + $0x1b0] ss:$8 sps:$4 sm:$0xff]  }
  0x1d   : > { %481 = vmatpush1.bf16.msra.mxu0 %v4228_v18  ;;  %v3455_v47 = vld [vmem:[%s4815_s10 + $0x148] sm:$0xff]  ;;  %v4277_v57 = vld [vmem:[%s6099_s1 + $0xb0] ss:$8 sps:$4 sm:$0xff]   ;;  %v4284_v62 = vld [vmem:[%s6099_s1 + $0x194] ss:$8 sps:$4 sm:$0xff]  }
  0x1e   : > { %714 = vmatpush1.bf16.msra.mxu1 %v4229_v19  ;;  %482 = vmatprep.subr.bf16.mxu0 %v4230_v20  ;;  %v199_v48 = vld [vmem:[%s4815_s10 + $0x8] sm:$0xff]  ;;  %v272_v53 = vpack.c.bf16 %v3455_v47, %v3453_v46  ;;  %v4286_v63 = vld [vmem:[%s6099_s1 + $0x94] ss:$8 sps:$4 sm:$0xff]   ;;  %v4288_v0 = vld [vmem:[%s6099_s1 + $0x190] ss:$8 sps:$4 sm:$0xff]  }
  0x1f   : > { %715 = vmatprep.subr.bf16.mxu1 %v4232_v21  ;;  %v201_v49 = vld [vmem:[%s4815_s10 + $0x28] sm:$0xff]  ;;  %v4289_v1 = vld [vmem:[%s6099_s1 + $0x90] ss:$8 sps:$4 sm:$0xff]   ;;  %v3452_v6 = vld [vmem:[%s4815_s10 + $0x120] sm:$0xff] }
  0x20   : > { %v4271_v51 = vld [vmem:[%s6099_s1 + $0xc0] ss:$8 sps:$4 sm:$0xff]   ;;  %v215_v54 = vpack.c.bf16 %v201_v49, %v199_v48  ;;  %504 = vmatprep.mubr.bf16.mxu0 %v272_v53  ;;  %v4278_v58 = vld [vmem:[%s6099_s1 + $0x1a4] ss:$8 sps:$4 sm:$0xff]   ;;  %v4298_v10 = vld [vmem:[%s6099_s1 + $0x274] ss:$8 sps:$4 sm:$0xff]  }
  0x21   : > { %483 = vmatpush1.bf16.msra.mxu0 %v4234_v22  ;;  %v4280_v59 = vld [vmem:[%s6099_s1 + $0xa4] ss:$8 sps:$4 sm:$0xff]   ;;  %v4282_v60 = vld [vmem:[%s6099_s1 + $0x1a0] ss:$8 sps:$4 sm:$0xff]   ;;  %v4301_v11 = vld [vmem:[%s6099_s1 + $0x374] ss:$8 sps:$4 sm:$0xff]  }
  0x22   : > { %716 = vmatpush1.bf16.msra.mxu1 %v4235_v23  ;;  %484 = vmatprep.subr.bf16.mxu0 %v4236_v24  ;;  %v4283_v61 = vld [vmem:[%s6099_s1 + $0xa0] ss:$8 sps:$4 sm:$0xff]   ;;  %v4290_v2 = vld [vmem:[%s6099_s1 + $0x184] ss:$8 sps:$4 sm:$0xff]   ;;  %v4296_v14 = vld [vmem:[%s6099_s1 + $0x270] ss:$8 sps:$4 sm:$0xff]  }
  0x23   : > { %717 = vmatprep.subr.bf16.mxu1 %v4238_v25  ;;  %737 = vmatprep.mubr.bf16.mxu1 %v215_v54  ;;  %v4292_v3 = vld [vmem:[%s6099_s1 + $0x84] ss:$8 sps:$4 sm:$0xff]   ;;  %v4294_v4 = vld [vmem:[%s6099_s1 + $0x180] ss:$8 sps:$4 sm:$0xff]   ;;  %v4299_v15 = vld [vmem:[%s6099_s1 + $0x370] ss:$8 sps:$4 sm:$0xff]  }
  0x24   : > { %v4295_v5 = vld [vmem:[%s6099_s1 + $0x80] ss:$8 sps:$4 sm:$0xff]   ;;  %v4304_v16 = vld [vmem:[%s6099_s1 + $0x264] ss:$8 sps:$4 sm:$0xff]   ;;  %v4310_v20 = vld [vmem:[%s6099_s1 + $0x254] ss:$8 sps:$4 sm:$0xff]  }
  0x25   : > { %485 = vmatpush1.bf16.msra.mxu0 %v4240_v26  ;;  %v3454_v7 = vld [vmem:[%s4815_s10 + $0x140] sm:$0xff]  ;;  %v4313_v21 = vld [vmem:[%s6099_s1 + $0x354] ss:$8 sps:$4 sm:$0xff]   ;;  %v3457_v22 = vld [vmem:[%s4815_s10 + $0x168] sm:$0xff] }
  0x26   : > { %718 = vmatpush1.bf16.msra.mxu1 %v4241_v27  ;;  %486 = vmatprep.subr.bf16.mxu0 %v4242_v28  ;;  %v198_v8 = vld [vmem:[%s4815_s10] sm:$0xff]  ;;  %v271_v12 = vpack.c.bf16 %v3454_v7, %v3452_v6  ;;  %v3459_v23 = vld [vmem:[%s4815_s10 + $0x188] sm:$0xff]  ;;  %v4308_v24 = vld [vmem:[%s6099_s1 + $0x250] ss:$8 sps:$4 sm:$0xff]  }
  0x27   : > { %719 = vmatprep.subr.bf16.mxu1 %v4244_v29  ;;  %v200_v9 = vld [vmem:[%s4815_s10 + $0x20] sm:$0xff]  ;;  %v4311_v25 = vld [vmem:[%s6099_s1 + $0x350] ss:$8 sps:$4 sm:$0xff]   ;;  %v274_v26 = vpack.c.bf16 %v3459_v23, %v3457_v22  ;;  %v203_v27 = vld [vmem:[%s4815_s10 + $0x48] sm:$0xff] }
  0x28   : > { %v214_v13 = vpack.c.bf16 %v200_v9, %v198_v8  ;;  %v4307_v17 = vld [vmem:[%s6099_s1 + $0x364] ss:$8 sps:$4 sm:$0xff]   ;;  %v4302_v18 = vld [vmem:[%s6099_s1 + $0x260] ss:$8 sps:$4 sm:$0xff]   ;;  %v781_v23 = vld [vmem:[%s4815_s10 + $0x18] sm:$0x1] }
  0x29   : > { %487 = vmatpush1.bf16.msra.mxu0 %v4246_v30  ;;  %v4305_v19 = vld [vmem:[%s6099_s1 + $0x360] ss:$8 sps:$4 sm:$0xff]   ;;  %v4328_v54 = vld [vmem:[%s6099_s1 + $0x224] ss:$8 sps:$4 sm:$0xff]  }
  0x2a   : > { %720 = vmatpush1.bf16.msra.mxu1 %v4247_v31  ;;  %488 = vmatprep.subr.bf16.mxu0 %v4248_v32  ;;  %v205_v28 = vld [vmem:[%s4815_s10 + $0x68] sm:$0xff]  ;;  %v3456_v29 = vld [vmem:[%s4815_s10 + $0x160] sm:$0xff] }
  0x2b   : > { %721 = vmatprep.subr.bf16.mxu1 %v4250_v33  ;;  %v217_v30 = vpack.c.bf16 %v205_v28, %v203_v27  ;;  %v3458_v31 = vld [vmem:[%s4815_s10 + $0x180] sm:$0xff]  ;;  %v207_v47 = vld [vmem:[%s4815_s10 + $0x88] sm:$0xff]  ;;  %v847_v27 = vrot.slane %v781_v23, 1  ;;  %v4397_v23 = vld [vmem:[%s6099_s1 + $0x574] ss:$8 sps:$4 sm:$0xff]  }
  0x2c   : > { %v202_v32 = vld [vmem:[%s4815_s10 + $0x40] sm:$0xff]  ;;  %v209_v48 = vld [vmem:[%s4815_s10 + $0xa8] sm:$0xff] }
  0x2d   : > { %489 = vmatpush2.bf16.msra.mxu0 %v4252_v34  ;;  %v204_v33 = vld [vmem:[%s4815_s10 + $0x60] sm:$0xff]  ;;  %v779_v22 = vld [vmem:[%s4815_s10 + $0x8] sm:$0xfe] }
  0x2e   : > { %722 = vmatpush2.bf16.msra.mxu1 %v4253_v35  ;;  %490 = vmatprep.subr.bf16.mxu0 %v4254_v36  ;;  %v4316_v34 = vld [vmem:[%s6099_s1 + $0x244] ss:$8 sps:$4 sm:$0xff]   ;;  %v273_v35 = vpack.c.bf16 %v3458_v31, %v3456_v29  ;;  %v216_v36 = vpack.c.bf16 %v204_v33, %v202_v32 }
  0x2f   : > { %723 = vmatprep.subr.bf16.mxu1 %v4256_v37  ;;  %v4319_v37 = vld [vmem:[%s6099_s1 + $0x344] ss:$8 sps:$4 sm:$0xff]  }
  0x30   : > { %v3460_v49 = vld [vmem:[%s4815_s10 + $0x1a0] sm:$0xff]  ;;  %v3629_v29 = vld [vmem:[%s4815_s10 + $0x248] sm:$0xff] }
  0x31   : > { %491 = vmatpush2.bf16.msra.mxu0 %v4258_v38  ;;  %v4314_v38 = vld [vmem:[%s6099_s1 + $0x240] ss:$8 sps:$4 sm:$0xff]  }
  0x32   : > { %724 = vmatpush2.bf16.msra.mxu1 %v4259_v39  ;;  %492 = vmatprep.subr.bf16.mxu0 %v4260_v40  ;;  %v4317_v39 = vld [vmem:[%s6099_s1 + $0x340] ss:$8 sps:$4 sm:$0xff]   ;;  %v4322_v40 = vld [vmem:[%s6099_s1 + $0x234] ss:$8 sps:$4 sm:$0xff]  }
  0x33   : > { %725 = vmatprep.subr.bf16.mxu1 %v4262_v41  ;;  %v4325_v41 = vld [vmem:[%s6099_s1 + $0x334] ss:$8 sps:$4 sm:$0xff]   ;;  %v208_v53 = vld [vmem:[%s4815_s10 + $0xa0] sm:$0xff]  ;;  %v3631_v31 = vld [vmem:[%s4815_s10 + $0x268] sm:$0xff] }
  0x34   : > { %v3466_v7 = vld [vmem:[%s4815_s10 + $0x200] sm:$0xff]  ;;  %v1215_v33 = vpack.c.bf16 %v3631_v31, %v3629_v29  ;;  %v3633_v29 = vld [vmem:[%s4815_s10 + $0x288] sm:$0xff] }
  0x35   : > { %493 = vmatpush2.bf16.msra.mxu0 %v4264_v42  ;;  %v3461_v42 = vld [vmem:[%s4815_s10 + $0x1a8] sm:$0xff]  ;;  %v210_v8 = vld [vmem:[%s4815_s10 + $0xc0] sm:$0xff] }
  0x36   : > { %726 = vmatpush2.bf16.msra.mxu1 %v4265_v43  ;;  %494 = vmatprep.subr.bf16.mxu0 %v4266_v44  ;;  %v3463_v43 = vld [vmem:[%s4815_s10 + $0x1c8] sm:$0xff]  ;;  %v4320_v44 = vld [vmem:[%s6099_s1 + $0x230] ss:$8 sps:$4 sm:$0xff]   ;;  %v212_v9 = vld [vmem:[%s4815_s10 + $0xe0] sm:$0xff] }
  0x37   : > { %727 = vmatprep.subr.bf16.mxu1 %v4268_v45  ;;  %v4323_v45 = vld [vmem:[%s6099_s1 + $0x330] ss:$8 sps:$4 sm:$0xff]   ;;  %v276_v46 = vpack.c.bf16 %v3463_v43, %v3461_v42  ;;  %v4364_v42 = vld [vmem:[%s6099_s1 + $0x2c4] ss:$8 sps:$4 sm:$0xff]  }
  0x38   : > { %v4367_v43 = vld [vmem:[%s6099_s1 + $0x3c4] ss:$8 sps:$4 sm:$0xff]  }
  0x39   : > { %495 = vmatpush2.bf16.msra.mxu0 %v4270_v50  ;;  %v219_v50 = vpack.c.bf16 %v209_v48, %v207_v47  ;;  %v4373_v47 = vld [vmem:[%s6099_s1 + $0x3b4] ss:$8 sps:$4 sm:$0xff]   ;;  %v4368_v48 = vld [vmem:[%s6099_s1 + $0x2b0] ss:$8 sps:$4 sm:$0xff]  }
  0x3a   : > { %728 = vmatpush2.bf16.msra.mxu1 %v4271_v51  ;;  %496 = vmatprep.subr.bf16.mxu0 %v4272_v52  ;;  %v3462_v51 = vld [vmem:[%s4815_s10 + $0x1c0] sm:$0xff] }
  0x3b   : > { %729 = vmatprep.subr.bf16.mxu1 %v4274_v55  ;;  %v206_v52 = vld [vmem:[%s4815_s10 + $0x80] sm:$0xff]  ;;  %v275_v55 = vpack.c.bf16 %v3462_v51, %v3460_v49  ;;  %v4371_v49 = vld [vmem:[%s6099_s1 + $0x3b0] ss:$8 sps:$4 sm:$0xff]  }
  0x3c   : > { %v4379_v51 = vld [vmem:[%s6099_s1 + $0x3a4] ss:$8 sps:$4 sm:$0xff]  }
  0x3d   : > { %497 = vmatpush2.bf16.msra.mxu0 %v4276_v56  ;;  %v218_v56 = vpack.c.bf16 %v208_v53, %v206_v52  ;;  %v4374_v52 = vld [vmem:[%s6099_s1 + $0x2a0] ss:$8 sps:$4 sm:$0xff]  }
  0x3e   : > { %730 = vmatpush2.bf16.msra.mxu1 %v4277_v57  ;;  %498 = vmatprep.subr.bf16.mxu0 %v4278_v58  ;;  %v4331_v57 = vld [vmem:[%s6099_s1 + $0x324] ss:$8 sps:$4 sm:$0xff]   ;;  %v4326_v58 = vld [vmem:[%s6099_s1 + $0x220] ss:$8 sps:$4 sm:$0xff]  }
  0x3f   : > { %731 = vmatprep.subr.bf16.mxu1 %v4280_v59  ;;  %v4329_v59 = vld [vmem:[%s6099_s1 + $0x320] ss:$8 sps:$4 sm:$0xff]  }
  0x40   : > { %v4377_v53 = vld [vmem:[%s6099_s1 + $0x3a0] ss:$8 sps:$4 sm:$0xff]  }
  0x41   : > { %499 = vmatpush2.bf16.msra.mxu0 %v4282_v60  ;;  %v4334_v60 = vld [vmem:[%s6099_s1 + $0x214] ss:$8 sps:$4 sm:$0xff]  }
  0x42   : > { %732 = vmatpush2.bf16.msra.mxu1 %v4283_v61  ;;  %500 = vmatprep.subr.bf16.mxu0 %v4284_v62  ;;  %v4337_v61 = vld [vmem:[%s6099_s1 + $0x314] ss:$8 sps:$4 sm:$0xff]   ;;  %v3465_v62 = vld [vmem:[%s4815_s10 + $0x1e8] sm:$0xff] }
  0x43   : > { %733 = vmatprep.subr.bf16.mxu1 %v4286_v63  ;;  %v3467_v63 = vld [vmem:[%s4815_s10 + $0x208] sm:$0xff] }
  0x45   : > { %501 = vmatpush2.bf16.msra.mxu0 %v4288_v0  ;;  %v4332_v0 = vld [vmem:[%s6099_s1 + $0x210] ss:$8 sps:$4 sm:$0xff]  }
  0x46   : > { %734 = vmatpush2.bf16.msra.mxu1 %v4289_v1  ;;  %502 = vmatprep.subr.bf16.mxu0 %v4290_v2  ;;  %v4335_v1 = vld [vmem:[%s6099_s1 + $0x310] ss:$8 sps:$4 sm:$0xff]   ;;  %v278_v2 = vpack.c.bf16 %v3467_v63, %v3465_v62  ;;  %v787_v62 = vld [vmem:[%s4815_s10 + $0x48] sm:$0xfe] }
  0x47   : > { %735 = vmatprep.subr.bf16.mxu1 %v4292_v3  ;;  %v211_v3 = vld [vmem:[%s4815_s10 + $0xc8] sm:$0xff] }
  0x48   : > { %v4388_v63 = vld [vmem:[%s6099_s1 + $0x284] ss:$8 sps:$4 sm:$0xff]  }
  0x49   : > { %503 = vmatpush2.bf16.msra.mxu0 %v4294_v4  ;;  %v213_v4 = vld [vmem:[%s4815_s10 + $0xe8] sm:$0xff] }
  0x4a   : > { %736 = vmatpush2.bf16.msra.mxu1 %v4295_v5  ;;  %1108 = vmatprep.subr.bf16.mxu0 %v4298_v10  ;;  %v3464_v5 = vld [vmem:[%s4815_s10 + $0x1e0] sm:$0xff]  ;;  %v221_v6 = vpack.c.bf16 %v213_v4, %v211_v3 }
  0x4b   : > { %1415 = vmatprep.subr.bf16.mxu1 %v4301_v11  ;;  %v4340_v10 = vld [vmem:[%s6099_s1 + $0x204] ss:$8 sps:$4 sm:$0xff]   ;;  %v277_v11 = vpack.c.bf16 %v3466_v7, %v3464_v5 }
  0x4c   : > { %505 = vmatmul.mubr.bf16.vlgmr.msra.gmra.mxu0 %v271_v12  ;;  %v220_v12 = vpack.c.bf16 %v212_v9, %v210_v8  ;;  %v4391_v7 = vld [vmem:[%s6099_s1 + $0x384] ss:$8 sps:$4 sm:$0xff]   ;;  %v4386_v8 = vld [vmem:[%s6099_s1 + $0x280] ss:$8 sps:$4 sm:$0xff]  }
  0x4d   : > { %738 = vmatmul.mubr.bf16.vlgmr.msra.gmra.mxu1 %v214_v13  ;;  %1109 = vmatpush1.bf16.msra.mxu0 %v4296_v14  ;;  %v4343_v13 = vld [vmem:[%s6099_s1 + $0x304] ss:$8 sps:$4 sm:$0xff]   ;;  %v4338_v14 = vld [vmem:[%s6099_s1 + $0x200] ss:$8 sps:$4 sm:$0xff]  }
  0x4e   : > { %1416 = vmatpush1.bf16.msra.mxu1 %v4299_v15  ;;  %1110 = vmatprep.subr.bf16.mxu0 %v4304_v16  ;;  %v4341_v15 = vld [vmem:[%s6099_s1 + $0x300] ss:$8 sps:$4 sm:$0xff]   ;;  %v4346_v16 = vld [vmem:[%s6099_s1 + $0x2f4] ss:$8 sps:$4 sm:$0xff]  }
  0x4f   : > { %1417 = vmatprep.subr.bf16.mxu1 %v4307_v17  ;;  %514 = vmatprep.mubr.bf16.mxu0 %v274_v26  ;;  %v4349_v17 = vld [vmem:[%s6099_s1 + $0x3f4] ss:$8 sps:$4 sm:$0xff]   ;;  %v846_v26 = vrot.slane %v779_v22, 1  ;;  %v4389_v9 = vld [vmem:[%s6099_s1 + $0x380] ss:$8 sps:$4 sm:$0xff]  }
  0x50   : > { %747 = vmatprep.mubr.bf16.mxu1 %v217_v30  ;;  %v792_v22 = vld [vmem:[%s4815_s10 + $0x70] sm:$0x1] }
  0x51   : > { %1111 = vmatpush1.bf16.msra.mxu0 %v4302_v18  ;;  %v4344_v18 = vld [vmem:[%s6099_s1 + $0x2f0] ss:$8 sps:$4 sm:$0xff]   ;;  %v848_v32 = vsel %vm842_vm0, %v846_v26, %v847_v27 }
  0x52   : > { %1418 = vmatpush1.bf16.msra.mxu1 %v4305_v19  ;;  %1112 = vmatprep.subr.bf16.mxu0 %v4310_v20  ;;  %v4347_v19 = vld [vmem:[%s6099_s1 + $0x3f0] ss:$8 sps:$4 sm:$0xff]   ;;  %v4352_v20 = vld [vmem:[%s6099_s1 + $0x2e4] ss:$8 sps:$4 sm:$0xff]  }
  0x53   : > { %1419 = vmatprep.subr.bf16.mxu1 %v4313_v21  ;;  %v4355_v21 = vld [vmem:[%s6099_s1 + $0x3e4] ss:$8 sps:$4 sm:$0xff]  }
  0x54   : > { %515 = vmatmul.mubr.bf16.gmra.mxu0 %v273_v35  ;;  %v4353_v35 = vld [vmem:[%s6099_s1 + $0x3e0] ss:$8 sps:$4 sm:$0xff]  }
  0x55   : > { %748 = vmatmul.mubr.bf16.gmra.mxu1 %v216_v36  ;;  %1113 = vmatpush1.bf16.msra.mxu0 %v4308_v24  ;;  %v783_v24 = vld [vmem:[%s4815_s10 + $0x28] sm:$0xfe] }
  0x56   : > { %1420 = vmatpush1.bf16.msra.mxu1 %v4311_v25  ;;  %1114 = vmatprep.subr.bf16.mxu0 %v4316_v34  ;;  %v785_v25 = vld [vmem:[%s4815_s10 + $0x38] sm:$0x1]  ;;  %v852_v28 = vrot.slane %v783_v24, 1  ;;  %v4350_v34 = vld [vmem:[%s6099_s1 + $0x2e0] ss:$8 sps:$4 sm:$0xff]  }
  0x57   : > { %1421 = vmatprep.subr.bf16.mxu1 %v4319_v37  ;;  %524 = vmatprep.mubr.bf16.mxu0 %v276_v46  ;;  %v853_v30 = vrot.slane %v785_v25, 1  ;;  %v4358_v37 = vld [vmem:[%s6099_s1 + $0x2d4] ss:$8 sps:$4 sm:$0xff]   ;;  %v4392_v25 = vld [vmem:[%s6099_s1 + $0x470] ss:$8 sps:$4 sm:$0xff]  }
  0x58   : > { %757 = vmatprep.mubr.bf16.mxu1 %v219_v50  ;;  %v4370_v46 = vld [vmem:[%s6099_s1 + $0x2b4] ss:$8 sps:$4 sm:$0xff]   ;;  %v4376_v50 = vld [vmem:[%s6099_s1 + $0x2a4] ss:$8 sps:$4 sm:$0xff]  }
  0x59   : > { %1115 = vmatpush1.bf16.msra.mxu0 %v4314_v38  ;;  %v854_v36 = vsel %vm842_vm0, %v852_v28, %v853_v30  ;;  %v4361_v38 = vld [vmem:[%s6099_s1 + $0x3d4] ss:$8 sps:$4 sm:$0xff]  }
  0x5a   : > { %1422 = vmatpush1.bf16.msra.mxu1 %v4317_v39  ;;  %1116 = vmatprep.subr.bf16.mxu0 %v4322_v40  ;;  %v908_v39 = vpack.c.bf16 %v854_v36, %v848_v32  ;;  %v4356_v40 = vld [vmem:[%s6099_s1 + $0x2d0] ss:$8 sps:$4 sm:$0xff]  }
  0x5b   : > { %1423 = vmatprep.subr.bf16.mxu1 %v4325_v41  ;;  %v4359_v41 = vld [vmem:[%s6099_s1 + $0x3d0] ss:$8 sps:$4 sm:$0xff]  }
  0x5c   : > { %525 = vmatmul.mubr.bf16.gmra.mxu0 %v275_v55  ;;  %v4385_v55 = vld [vmem:[%s6099_s1 + $0x394] ss:$8 sps:$4 sm:$0xff]   ;;  %v797_v36 = vld [vmem:[%s4815_s10 + $0x98] sm:$0x1] }
  0x5d   : > { %758 = vmatmul.mubr.bf16.gmra.mxu1 %v218_v56  ;;  %1117 = vmatpush1.bf16.msra.mxu0 %v4320_v44  ;;  %v4362_v44 = vld [vmem:[%s6099_s1 + $0x2c0] ss:$8 sps:$4 sm:$0xff]  }
  0x5e   : > { %1424 = vmatpush1.bf16.msra.mxu1 %v4323_v45  ;;  %1118 = vmatprep.subr.bf16.mxu0 %v4328_v54  ;;  %v4365_v45 = vld [vmem:[%s6099_s1 + $0x3c0] ss:$8 sps:$4 sm:$0xff]   ;;  %v4382_v54 = vld [vmem:[%s6099_s1 + $0x294] ss:$8 sps:$4 sm:$0xff]  }
  0x5f   : > { %1425 = vmatprep.subr.bf16.mxu1 %v4331_v57  ;;  %534 = vmatprep.mubr.bf16.mxu0 %v278_v2  ;;  %v778_v56 = vld [vmem:[%s4815_s10] sm:$0xfe]  ;;  %v780_v57 = vld [vmem:[%s4815_s10 + $0x10] sm:$0x1]  ;;  %v793_v2 = vld [vmem:[%s4815_s10 + $0x78] sm:$0x1] }
  0x60   : > { %767 = vmatprep.mubr.bf16.mxu1 %v221_v6  ;;  %v843_v3 = vrot.slane %v778_v56, 1  ;;  %v844_v4 = vrot.slane %v780_v57, 1  ;;  %v4409_v56 = vld [vmem:[%s6099_s1 + $0x554] ss:$8 sps:$4 sm:$0xff]   ;;  %v796_v57 = vld [vmem:[%s4815_s10 + $0x90] sm:$0x1] }
  0x61   : > { %1119 = vmatpush1.bf16.msra.mxu0 %v4326_v58  ;;  %v782_v58 = vld [vmem:[%s4815_s10 + $0x20] sm:$0xfe] }
  0x62   : > { %1426 = vmatpush1.bf16.msra.mxu1 %v4329_v59  ;;  %1120 = vmatprep.subr.bf16.mxu0 %v4334_v60  ;;  %v784_v59 = vld [vmem:[%s4815_s10 + $0x30] sm:$0x1]  ;;  %v849_v5 = vrot.slane %v782_v58, 1  ;;  %v798_v58 = vld [vmem:[%s4815_s10 + $0xa0] sm:$0xfe] }
  0x63   : > { %1427 = vmatprep.subr.bf16.mxu1 %v4337_v61  ;;  %v4380_v60 = vld [vmem:[%s6099_s1 + $0x290] ss:$8 sps:$4 sm:$0xff]   ;;  %v850_v6 = vrot.slane %v784_v59, 1 }
  0x64   : > { %535 = vmatmul.mubr.bf16.gmra.mxu0 %v277_v11  ;;  %v4383_v61 = vld [vmem:[%s6099_s1 + $0x390] ss:$8 sps:$4 sm:$0xff]   ;;  %v3630_v11 = vld [vmem:[%s4815_s10 + $0x260] sm:$0xff] }
  0x65   : > { %768 = vmatmul.mubr.bf16.gmra.mxu1 %v220_v12  ;;  %1121 = vmatpush1.bf16.msra.mxu0 %v4332_v0  ;;  %v789_v0 = vld [vmem:[%s4815_s10 + $0x58] sm:$0x1]  ;;  %v858_v12 = vrot.slane %v787_v62, 1  ;;  %v800_v59 = vld [vmem:[%s4815_s10 + $0xb0] sm:$0x1] }
  0x66   : > { %1428 = vmatpush1.bf16.msra.mxu1 %v4335_v1  ;;  %1122 = vmatprep.subr.bf16.mxu0 %v4340_v10  ;;  %v791_v1 = vld [vmem:[%s4815_s10 + $0x68] sm:$0xfe]  ;;  %v3628_v10 = vld [vmem:[%s4815_s10 + $0x240] sm:$0xff] }
  0x67   : > { %1429 = vmatprep.subr.bf16.mxu1 %v4343_v13  ;;  %1447 = vmatprep.mubr.bf16.mxu1 %v1215_v33  ;;  %v859_v13 = vrot.slane %v789_v0, 1  ;;  %v1214_v24 = vpack.c.bf16 %v3630_v11, %v3628_v10  ;;  %v862_v33 = vrot.slane %v792_v22, 1  ;;  %v4407_v0 = vld [vmem:[%s6099_s1 + $0x550] ss:$8 sps:$4 sm:$0xff]   ;;  %v807_v10 = vld [vmem:[%s4815_s10 + $0xe8] sm:$0xfe] }
  0x68   : > { %1140 = vmatprep.mubr.bf16.mxu0 %v908_v39  ;;  %v801_v39 = vld [vmem:[%s4815_s10 + $0xb8] sm:$0x1] }
  0x69   : > { %1123 = vmatpush1.bf16.msra.mxu0 %v4338_v14  ;;  %v864_v14 = vrot.slane %v791_v1, 1  ;;  %v860_v31 = vsel %vm842_vm0, %v858_v12, %v859_v13  ;;  %v809_v11 = vld [vmem:[%s4815_s10 + $0xf8] sm:$0x1]  ;;  %v4412_v12 = vld [vmem:[%s6099_s1 + $0x444] ss:$8 sps:$4 sm:$0xff]  }
  0x6a   : > { %1430 = vmatpush1.bf16.msra.mxu1 %v4341_v15  ;;  %1124 = vmatprep.subr.bf16.mxu0 %v4346_v16  ;;  %v865_v15 = vrot.slane %v793_v2, 1  ;;  %v4394_v16 = vld [vmem:[%s6099_s1 + $0x474] ss:$8 sps:$4 sm:$0xff]   ;;  %v4415_v13 = vld [vmem:[%s6099_s1 + $0x544] ss:$8 sps:$4 sm:$0xff]  }
  0x6b   : > { %1431 = vmatprep.subr.bf16.mxu1 %v4349_v17  ;;  %v786_v17 = vld [vmem:[%s4815_s10 + $0x40] sm:$0xfe] }
  0x6c   : > { %v855_v26 = vrot.slane %v786_v17, 1  ;;  %v866_v32 = vsel %vm842_vm0, %v864_v14, %v865_v15  ;;  %v4410_v14 = vld [vmem:[%s6099_s1 + $0x440] ss:$8 sps:$4 sm:$0xff]  }
  0x6d   : > { %1125 = vmatpush2.bf16.msra.mxu0 %v4344_v18  ;;  %v788_v18 = vld [vmem:[%s4815_s10 + $0x50] sm:$0x1]  ;;  %v4413_v15 = vld [vmem:[%s6099_s1 + $0x540] ss:$8 sps:$4 sm:$0xff]  }
  0x6e   : > { %1432 = vmatpush2.bf16.msra.mxu1 %v4347_v19  ;;  %1126 = vmatprep.subr.bf16.mxu0 %v4352_v20  ;;  %v790_v19 = vld [vmem:[%s4815_s10 + $0x60] sm:$0xfe]  ;;  %v845_v20 = vsel %vm842_vm0, %v843_v3, %v844_v4  ;;  %v856_v27 = vrot.slane %v788_v18, 1  ;;  %v803_v3 = vld [vmem:[%s4815_s10 + $0xc8] sm:$0xfe] }
  0x6f   : > { %1433 = vmatprep.subr.bf16.mxu1 %v4355_v21  ;;  %v851_v21 = vsel %vm842_vm0, %v849_v5, %v850_v6  ;;  %v861_v28 = vrot.slane %v790_v19, 1  ;;  %v868_v6 = vrot.slane %v796_v57, 1  ;;  %v3636_v18 = vld [vmem:[%s4815_s10 + $0x2c0] sm:$0xff]  ;;  %v882_v22 = vrot.slane %v803_v3, 1  ;;  %v3709_v3 = vld [vmem:[%s4815_s10 + $0x368] sm:$0xff] }
  0x70   : > { %v907_v30 = vpack.c.bf16 %v851_v21, %v845_v20  ;;  %v3638_v19 = vld [vmem:[%s4815_s10 + $0x2e0] sm:$0xff]  ;;  %v4418_v20 = vld [vmem:[%s6099_s1 + $0x434] ss:$8 sps:$4 sm:$0xff]  }
  0x71   : > { %1127 = vmatpush2.bf16.msra.mxu0 %v4350_v34  ;;  %v3635_v34 = vld [vmem:[%s4815_s10 + $0x2a8] sm:$0xff]  ;;  %v4421_v21 = vld [vmem:[%s6099_s1 + $0x534] ss:$8 sps:$4 sm:$0xff]  }
  0x72   : > { %1434 = vmatpush2.bf16.msra.mxu1 %v4353_v35  ;;  %1128 = vmatprep.subr.bf16.mxu0 %v4358_v37  ;;  %v795_v35 = vld [vmem:[%s4815_s10 + $0x88] sm:$0xfe]  ;;  %v4395_v37 = vld [vmem:[%s6099_s1 + $0x570] ss:$8 sps:$4 sm:$0xff]  }
  0x73   : > { %1435 = vmatprep.subr.bf16.mxu1 %v4361_v38  ;;  %v799_v38 = vld [vmem:[%s4815_s10 + $0xa8] sm:$0xfe] }
  0x75   : > { %1129 = vmatpush2.bf16.msra.mxu0 %v4356_v40  ;;  %v4400_v40 = vld [vmem:[%s6099_s1 + $0x464] ss:$8 sps:$4 sm:$0xff]  }
  0x76   : > { %1436 = vmatpush2.bf16.msra.mxu1 %v4359_v41  ;;  %1130 = vmatprep.subr.bf16.mxu0 %v4364_v42  ;;  %v4403_v41 = vld [vmem:[%s6099_s1 + $0x564] ss:$8 sps:$4 sm:$0xff]  }
  0x77   : > { %1437 = vmatprep.subr.bf16.mxu1 %v4367_v43  ;;  %v3632_v42 = vld [vmem:[%s4815_s10 + $0x280] sm:$0xff] }
  0x78   : > { %v4398_v43 = vld [vmem:[%s6099_s1 + $0x460] ss:$8 sps:$4 sm:$0xff]  }
  0x79   : > { %1131 = vmatpush2.bf16.msra.mxu0 %v4362_v44  ;;  %v4401_v44 = vld [vmem:[%s6099_s1 + $0x560] ss:$8 sps:$4 sm:$0xff]  }
  0x7a   : > { %1438 = vmatpush2.bf16.msra.mxu1 %v4365_v45  ;;  %1132 = vmatprep.subr.bf16.mxu0 %v4370_v46  ;;  %v910_v45 = vpack.c.bf16 %v866_v32, %v860_v31  ;;  %v1217_v46 = vpack.c.bf16 %v3635_v34, %v3633_v29  ;;  %v804_v29 = vld [vmem:[%s4815_s10 + $0xd0] sm:$0x1]  ;;  %v3641_v34 = vld [vmem:[%s4815_s10 + $0x308] sm:$0xff] }
  0x7b   : > { %1439 = vmatprep.subr.bf16.mxu1 %v4373_v47  ;;  %v3634_v47 = vld [vmem:[%s4815_s10 + $0x2a0] sm:$0xff]  ;;  %v808_v31 = vld [vmem:[%s4815_s10 + $0xf0] sm:$0x1] }
  0x7c   : > { %v1216_v1 = vpack.c.bf16 %v3634_v47, %v3632_v42  ;;  %v4416_v32 = vld [vmem:[%s6099_s1 + $0x430] ss:$8 sps:$4 sm:$0xff]  }
  0x7d   : > { %1133 = vmatpush2.bf16.msra.mxu0 %v4368_v48  ;;  %v870_v48 = vrot.slane %v795_v35, 1 }
  0x7e   : > { %1440 = vmatpush2.bf16.msra.mxu1 %v4371_v49  ;;  %1134 = vmatprep.subr.bf16.mxu0 %v4376_v50  ;;  %v871_v49 = vrot.slane %v797_v36, 1  ;;  %v857_v50 = vsel %vm842_vm0, %v855_v26, %v856_v27  ;;  %v1218_v36 = vpack.c.bf16 %v3638_v19, %v3636_v18  ;;  %v4446_v19 = vld [vmem:[%s6099_s1 + $0x4e0] ss:$8 sps:$4 sm:$0xff]  }
  0x7f   : > { %1441 = vmatprep.subr.bf16.mxu1 %v4379_v51  ;;  %v863_v51 = vsel %vm842_vm0, %v861_v28, %v862_v33  ;;  %v802_v28 = vld [vmem:[%s4815_s10 + $0xc0] sm:$0xfe]  ;;  %v4419_v33 = vld [vmem:[%s6099_s1 + $0x530] ss:$8 sps:$4 sm:$0xff]  }
  0x80   : > { %v909_v62 = vpack.c.bf16 %v863_v51, %v857_v50  ;;  %v872_v4 = vsel %vm842_vm0, %v870_v48, %v871_v49  ;;  %v4425_v49 = vld [vmem:[%s6099_s1 + $0x520] ss:$8 sps:$4 sm:$0xff]  }
  0x81   : > { %1135 = vmatpush2.bf16.msra.mxu0 %v4374_v52  ;;  %v4406_v52 = vld [vmem:[%s6099_s1 + $0x454] ss:$8 sps:$4 sm:$0xff]  }
  0x82   : > { %1442 = vmatpush2.bf16.msra.mxu1 %v4377_v53  ;;  %1136 = vmatprep.subr.bf16.mxu0 %v4382_v54  ;;  %v876_v53 = vrot.slane %v799_v38, 1  ;;  %v877_v54 = vrot.slane %v801_v39, 1  ;;  %v3643_v39 = vld [vmem:[%s4815_s10 + $0x328] sm:$0xff] }
  0x83   : > { %1443 = vmatprep.subr.bf16.mxu1 %v4385_v55  ;;  %v794_v55 = vld [vmem:[%s4815_s10 + $0x80] sm:$0xfe]  ;;  %v1221_v48 = vpack.c.bf16 %v3643_v39, %v3641_v34 }
  0x84   : > { %v867_v2 = vrot.slane %v794_v55, 1  ;;  %v878_v5 = vsel %vm842_vm0, %v876_v53, %v877_v54  ;;  %v3642_v53 = vld [vmem:[%s4815_s10 + $0x320] sm:$0xff]  ;;  %v4430_v54 = vld [vmem:[%s6099_s1 + $0x414] ss:$8 sps:$4 sm:$0xff]  }
  0x85   : > { %1137 = vmatpush2.bf16.msra.mxu0 %v4380_v60  ;;  %v3637_v60 = vld [vmem:[%s4815_s10 + $0x2c8] sm:$0xff]  ;;  %v4433_v55 = vld [vmem:[%s6099_s1 + $0x514] ss:$8 sps:$4 sm:$0xff]   ;;  %v3792_v39 = vld [vmem:[%s4815_s10 + $0x260] sm:$0xfe] }
  0x86   : > { %1444 = vmatpush2.bf16.msra.mxu1 %v4383_v61  ;;  %1138 = vmatprep.subr.bf16.mxu0 %v4388_v63  ;;  %v3639_v61 = vld [vmem:[%s4815_s10 + $0x2e8] sm:$0xff]  ;;  %v4404_v63 = vld [vmem:[%s6099_s1 + $0x450] ss:$8 sps:$4 sm:$0xff]   ;;  %v869_v26 = vsel %vm842_vm0, %v867_v2, %v868_v6 }
  0x87   : > { %1445 = vmatprep.subr.bf16.mxu1 %v4391_v7  ;;  %v873_v7 = vrot.slane %v798_v58, 1  ;;  %v1219_v17 = vpack.c.bf16 %v3639_v61, %v3637_v60  ;;  %v4428_v58 = vld [vmem:[%s6099_s1 + $0x410] ss:$8 sps:$4 sm:$0xff]   ;;  %v4436_v60 = vld [vmem:[%s6099_s1 + $0x404] ss:$8 sps:$4 sm:$0xff]  }
  0x88   : > { %v4439_v61 = vld [vmem:[%s6099_s1 + $0x504] ss:$8 sps:$4 sm:$0xff]   ;;  %v4440_v2 = vld [vmem:[%s6099_s1 + $0x4f0] ss:$8 sps:$4 sm:$0xff]  }
  0x89   : > { %1139 = vmatpush2.bf16.msra.mxu0 %v4386_v8  ;;  %v805_v8 = vld [vmem:[%s4815_s10 + $0xd8] sm:$0x1]  ;;  %v4472_v34 = vld [vmem:[%s6099_s1 + $0x4a4] ss:$8 sps:$4 sm:$0xff]  }
  0x8a   : > { %1446 = vmatpush2.bf16.msra.mxu1 %v4389_v9  ;;  %1722 = vmatprep.subr.bf16.mxu0 %v4394_v16  ;;  %v874_v9 = vrot.slane %v800_v59, 1  ;;  %v912_v16 = vpack.c.bf16 %v878_v5, %v872_v4  ;;  %v4431_v59 = vld [vmem:[%s6099_s1 + $0x510] ss:$8 sps:$4 sm:$0xff]   ;;  %v3711_v4 = vld [vmem:[%s4815_s10 + $0x388] sm:$0xff] }
  0x8b   : > { %2140 = vmatprep.subr.bf16.mxu1 %v4397_v23  ;;  %v883_v23 = vrot.slane %v805_v8, 1  ;;  %v3789_v5 = vld [vmem:[%s4815_s10 + $0x248] sm:$0xfe]  ;;  %v1522_v6 = vpack.c.bf16 %v3711_v4, %v3709_v3  ;;  %v4493_v3 = vld [vmem:[%s6099_s1 + $0x774] ss:$8 sps:$4 sm:$0xff]  }
  0x8c   : > { %1141 = vmatmul.mubr.bf16.vlgmr.msra.gmra.mxu0 %v907_v30  ;;  %v875_v27 = vsel %vm842_vm0, %v873_v7, %v874_v9  ;;  %v806_v30 = vld [vmem:[%s4815_s10 + $0xe0] sm:$0xfe]  ;;  %v3791_v7 = vld [vmem:[%s4815_s10 + $0x258] sm:$0x1]  ;;  %v3793_v8 = vld [vmem:[%s4815_s10 + $0x268] sm:$0xfe] }
  0x8d   : > { %1448 = vmatmul.mubr.bf16.vlgmr.msra.gmra.mxu1 %v1214_v24  ;;  %1723 = vmatpush1.bf16.msra.mxu0 %v4392_v25  ;;  %v888_v24 = vrot.slane %v807_v10, 1  ;;  %v889_v25 = vrot.slane %v809_v11, 1  ;;  %v911_v35 = vpack.c.bf16 %v875_v27, %v869_v26  ;;  %v885_v42 = vrot.slane %v806_v30, 1  ;;  %v3795_v9 = vld [vmem:[%s4815_s10 + $0x278] sm:$0x1] }
  0x8e   : > { %2141 = vmatpush1.bf16.msra.mxu1 %v4395_v37  ;;  %1724 = vmatprep.subr.bf16.mxu0 %v4400_v40  ;;  %v884_v37 = vsel %vm842_vm0, %v882_v22, %v883_v23  ;;  %v879_v40 = vrot.slane %v802_v28, 1  ;;  %v4443_v10 = vld [vmem:[%s6099_s1 + $0x5f0] ss:$8 sps:$4 sm:$0xff]   ;;  %v1878_v11 = vrot.slane %v3789_v5, 1  ;;  %v4454_v22 = vld [vmem:[%s6099_s1 + $0x4d4] ss:$8 sps:$4 sm:$0xff]  }
  0x8f   : > { %2142 = vmatprep.subr.bf16.mxu1 %v4403_v41  ;;  %1150 = vmatprep.mubr.bf16.mxu0 %v910_v45  ;;  %v890_v38 = vsel %vm842_vm0, %v888_v24, %v889_v25  ;;  %v880_v41 = vrot.slane %v804_v29, 1  ;;  %v4427_v45 = vld [vmem:[%s6099_s1 + $0x524] ss:$8 sps:$4 sm:$0xff]   ;;  %v4457_v23 = vld [vmem:[%s6099_s1 + $0x5d4] ss:$8 sps:$4 sm:$0xff]  }
  0x90   : > { %1457 = vmatprep.mubr.bf16.mxu1 %v1217_v46  ;;  %v4422_v46 = vld [vmem:[%s6099_s1 + $0x420] ss:$8 sps:$4 sm:$0xff]   ;;  %v914_v47 = vpack.c.bf16 %v890_v38, %v884_v37  ;;  %v4452_v24 = vld [vmem:[%s6099_s1 + $0x4d0] ss:$8 sps:$4 sm:$0xff]   ;;  %v4460_v26 = vld [vmem:[%s6099_s1 + $0x4c4] ss:$8 sps:$4 sm:$0xff]  }
  0x91   : > { %1725 = vmatpush1.bf16.msra.mxu0 %v4398_v43  ;;  %v886_v43 = vrot.slane %v808_v31, 1  ;;  %v881_v50 = vsel %vm842_vm0, %v879_v40, %v880_v41  ;;  %v4455_v25 = vld [vmem:[%s6099_s1 + $0x5d0] ss:$8 sps:$4 sm:$0xff]   ;;  %v4463_v27 = vld [vmem:[%s6099_s1 + $0x5c4] ss:$8 sps:$4 sm:$0xff]  }
  0x92   : > { %2143 = vmatpush1.bf16.msra.mxu1 %v4401_v44  ;;  %1726 = vmatprep.subr.bf16.mxu0 %v4406_v52  ;;  %v4424_v44 = vld [vmem:[%s6099_s1 + $0x424] ss:$8 sps:$4 sm:$0xff]   ;;  %v4458_v28 = vld [vmem:[%s6099_s1 + $0x4c0] ss:$8 sps:$4 sm:$0xff]   ;;  %v4466_v30 = vld [vmem:[%s6099_s1 + $0x4b4] ss:$8 sps:$4 sm:$0xff]  }
  0x93   : > { %2144 = vmatprep.subr.bf16.mxu1 %v4409_v56  ;;  %v887_v51 = vsel %vm842_vm0, %v885_v42, %v886_v43  ;;  %v3640_v52 = vld [vmem:[%s4815_s10 + $0x300] sm:$0xff]  ;;  %v4469_v31 = vld [vmem:[%s6099_s1 + $0x5b4] ss:$8 sps:$4 sm:$0xff]   ;;  %v3790_v38 = vld [vmem:[%s4815_s10 + $0x250] sm:$0x1] }
  0x94   : > { %1151 = vmatmul.mubr.bf16.gmra.mxu0 %v909_v62  ;;  %v913_v56 = vpack.c.bf16 %v887_v51, %v881_v50  ;;  %v1220_v57 = vpack.c.bf16 %v3642_v53, %v3640_v52  ;;  %v4434_v62 = vld [vmem:[%s6099_s1 + $0x400] ss:$8 sps:$4 sm:$0xff]   ;;  %v3794_v40 = vld [vmem:[%s4815_s10 + $0x270] sm:$0x1]  ;;  %v4478_v42 = vld [vmem:[%s6099_s1 + $0x494] ss:$8 sps:$4 sm:$0xff]  }
  0x95   : > { %1458 = vmatmul.mubr.bf16.gmra.mxu1 %v1216_v1  ;;  %1727 = vmatpush1.bf16.msra.mxu0 %v4404_v63  ;;  %v4437_v63 = vld [vmem:[%s6099_s1 + $0x500] ss:$8 sps:$4 sm:$0xff]   ;;  %v4445_v1 = vld [vmem:[%s6099_s1 + $0x5f4] ss:$8 sps:$4 sm:$0xff]   ;;  %v3799_v51 = vld [vmem:[%s4815_s10 + $0x298] sm:$0x1] }
  0x96   : > { %2145 = vmatpush1.bf16.msra.mxu1 %v4407_v0  ;;  %1728 = vmatprep.subr.bf16.mxu0 %v4412_v12  ;;  %v4442_v0 = vld [vmem:[%s6099_s1 + $0x4f4] ss:$8 sps:$4 sm:$0xff]   ;;  %v1879_v12 = vrot.slane %v3791_v7, 1  ;;  %v4461_v29 = vld [vmem:[%s6099_s1 + $0x5c0] ss:$8 sps:$4 sm:$0xff]  }
  0x97   : > { %2146 = vmatprep.subr.bf16.mxu1 %v4415_v13  ;;  %1160 = vmatprep.mubr.bf16.mxu0 %v912_v16  ;;  %v1884_v13 = vrot.slane %v3793_v8, 1  ;;  %v4451_v16 = vld [vmem:[%s6099_s1 + $0x5e4] ss:$8 sps:$4 sm:$0xff]   ;;  %v4473_v41 = vld [vmem:[%s6099_s1 + $0x5a0] ss:$8 sps:$4 sm:$0xff]  }
  0x98   : > { %1467 = vmatprep.mubr.bf16.mxu1 %v1219_v17  ;;  %v1880_v17 = vsel %vm842_vm0, %v1878_v11, %v1879_v12  ;;  %v3788_v37 = vld [vmem:[%s4815_s10 + $0x240] sm:$0xfe]  ;;  %v4481_v43 = vld [vmem:[%s6099_s1 + $0x594] ss:$8 sps:$4 sm:$0xff]   ;;  %v3797_v50 = vld [vmem:[%s4815_s10 + $0x288] sm:$0xfe] }
  0x99   : > { %1729 = vmatpush1.bf16.msra.mxu0 %v4410_v14  ;;  %v1885_v14 = vrot.slane %v3795_v9, 1  ;;  %v3801_v52 = vld [vmem:[%s4815_s10 + $0x2a8] sm:$0xfe]  ;;  %v3803_v53 = vld [vmem:[%s4815_s10 + $0x2b8] sm:$0x1] }
  0x9a   : > { %2147 = vmatpush1.bf16.msra.mxu1 %v4413_v15  ;;  %1730 = vmatprep.subr.bf16.mxu0 %v4418_v20  ;;  %v4448_v15 = vld [vmem:[%s6099_s1 + $0x4e4] ss:$8 sps:$4 sm:$0xff]   ;;  %v4449_v20 = vld [vmem:[%s6099_s1 + $0x5e0] ss:$8 sps:$4 sm:$0xff]   ;;  %v3798_v5 = vld [vmem:[%s4815_s10 + $0x290] sm:$0x1] }
  0x9b   : > { %2148 = vmatprep.subr.bf16.mxu1 %v4421_v21  ;;  %v1886_v18 = vsel %vm842_vm0, %v1884_v13, %v1885_v14  ;;  %v3796_v4 = vld [vmem:[%s4815_s10 + $0x280] sm:$0xfe]  ;;  %v3715_v7 = vld [vmem:[%s4815_s10 + $0x3c8] sm:$0xff]  ;;  %v3802_v9 = vld [vmem:[%s4815_s10 + $0x2b0] sm:$0x1] }
  0x9c   : > { %1161 = vmatmul.mubr.bf16.gmra.mxu0 %v911_v35  ;;  %v1940_v21 = vpack.c.bf16 %v1886_v18, %v1880_v17  ;;  %v4475_v35 = vld [vmem:[%s6099_s1 + $0x5a4] ss:$8 sps:$4 sm:$0xff]   ;;  %v4488_v12 = vld [vmem:[%s6099_s1 + $0x670] ss:$8 sps:$4 sm:$0xff]   ;;  %v1887_v17 = vrot.slane %v3796_v4, 1  ;;  %v1888_v18 = vrot.slane %v3798_v5, 1 }
  0x9d   : > { %1468 = vmatmul.mubr.bf16.gmra.mxu1 %v1218_v36  ;;  %1731 = vmatpush1.bf16.msra.mxu0 %v4416_v32  ;;  %v4464_v32 = vld [vmem:[%s6099_s1 + $0x4b0] ss:$8 sps:$4 sm:$0xff]   ;;  %v4470_v36 = vld [vmem:[%s6099_s1 + $0x4a0] ss:$8 sps:$4 sm:$0xff]  }
  0x9e   : > { %2149 = vmatpush1.bf16.msra.mxu1 %v4419_v33  ;;  %1732 = vmatprep.subr.bf16.mxu0 %v4424_v44  ;;  %v4467_v33 = vld [vmem:[%s6099_s1 + $0x5b0] ss:$8 sps:$4 sm:$0xff]   ;;  %v1875_v44 = vrot.slane %v3788_v37, 1  ;;  %v3800_v8 = vld [vmem:[%s4815_s10 + $0x2a0] sm:$0xfe] }
  0x9f   : > { %2150 = vmatprep.subr.bf16.mxu1 %v4427_v45  ;;  %1170 = vmatprep.mubr.bf16.mxu0 %v914_v47  ;;  %v1876_v45 = vrot.slane %v3790_v38, 1  ;;  %v1882_v47 = vrot.slane %v3794_v40, 1  ;;  %v4491_v13 = vld [vmem:[%s6099_s1 + $0x770] ss:$8 sps:$4 sm:$0xff]   ;;  %v3805_v14 = vld [vmem:[%s4815_s10 + $0x2c8] sm:$0xfe]  ;;  %v1889_v40 = vsel %vm842_vm0, %v1887_v17, %v1888_v18 }
  0xa0   : > { %1477 = vmatprep.mubr.bf16.mxu1 %v1221_v48  ;;  %v4476_v48 = vld [vmem:[%s6099_s1 + $0x490] ss:$8 sps:$4 sm:$0xff]   ;;  %v3804_v38 = vld [vmem:[%s4815_s10 + $0x2c0] sm:$0xfe] }
  0xa1   : > { %1733 = vmatpush1.bf16.msra.mxu0 %v4422_v46  ;;  %v1881_v46 = vrot.slane %v3792_v39, 1  ;;  %v3806_v39 = vld [vmem:[%s4815_s10 + $0x2d0] sm:$0x1] }
  0xa2   : > { %2151 = vmatpush1.bf16.msra.mxu1 %v4425_v49  ;;  %1734 = vmatprep.subr.bf16.mxu0 %v4430_v54  ;;  %v4479_v49 = vld [vmem:[%s6099_s1 + $0x590] ss:$8 sps:$4 sm:$0xff]   ;;  %v4484_v54 = vld [vmem:[%s6099_s1 + $0x484] ss:$8 sps:$4 sm:$0xff]  }
  0xa3   : > { %2152 = vmatprep.subr.bf16.mxu1 %v4433_v55  ;;  %v4487_v55 = vld [vmem:[%s6099_s1 + $0x584] ss:$8 sps:$4 sm:$0xff]   ;;  %v4515_v17 = vld [vmem:[%s6099_s1 + $0x730] ss:$8 sps:$4 sm:$0xff]  }
  0xa4   : > { %1171 = vmatmul.mubr.bf16.gmra.mxu0 %v913_v56  ;;  %v3708_v56 = vld [vmem:[%s4815_s10 + $0x360] sm:$0xff] }
  0xa5   : > { %1478 = vmatmul.mubr.bf16.gmra.mxu1 %v1220_v57  ;;  %1735 = vmatpush1.bf16.msra.mxu0 %v4428_v58  ;;  %v4482_v57 = vld [vmem:[%s6099_s1 + $0x480] ss:$8 sps:$4 sm:$0xff]  }
  0xa6   : > { %2153 = vmatpush1.bf16.msra.mxu1 %v4431_v59  ;;  %1736 = vmatprep.subr.bf16.mxu0 %v4436_v60  ;;  %v4485_v58 = vld [vmem:[%s6099_s1 + $0x580] ss:$8 sps:$4 sm:$0xff]   ;;  %v1877_v60 = vsel %vm842_vm0, %v1875_v44, %v1876_v45  ;;  %v3810_v44 = vld [vmem:[%s4815_s10 + $0x2f0] sm:$0x1] }
  0xa7   : > { %2154 = vmatprep.subr.bf16.mxu1 %v4439_v61  ;;  %1754 = vmatprep.mubr.bf16.mxu0 %v1522_v6  ;;  %v3710_v59 = vld [vmem:[%s4815_s10 + $0x380] sm:$0xff]  ;;  %v1883_v61 = vsel %vm842_vm0, %v1881_v46, %v1882_v47  ;;  %v3713_v6 = vld [vmem:[%s4815_s10 + $0x3a8] sm:$0xff]  ;;  %v4500_v46 = vld [vmem:[%s6099_s1 + $0x650] ss:$8 sps:$4 sm:$0xff]  }
  0xa8   : > { %2172 = vmatprep.mubr.bf16.mxu1 %v1940_v21  ;;  %v1939_v11 = vpack.c.bf16 %v1883_v61, %v1877_v60  ;;  %v1894_v21 = vrot.slane %v3802_v9, 1  ;;  %v4503_v47 = vld [vmem:[%s6099_s1 + $0x750] ss:$8 sps:$4 sm:$0xff]   ;;  %v4511_v61 = vld [vmem:[%s6099_s1 + $0x744] ss:$8 sps:$4 sm:$0xff]  }
  0xa9   : > { %1737 = vmatpush1.bf16.msra.mxu0 %v4434_v62  ;;  %v4490_v62 = vld [vmem:[%s6099_s1 + $0x674] ss:$8 sps:$4 sm:$0xff]   ;;  %v3819_v60 = vld [vmem:[%s4815_s10 + $0x338] sm:$0x1] }
  0xaa   : > { %2155 = vmatpush1.bf16.msra.mxu1 %v4437_v63  ;;  %1738 = vmatprep.subr.bf16.mxu0 %v4442_v0  ;;  %v1890_v63 = vrot.slane %v3797_v50, 1  ;;  %v1891_v0 = vrot.slane %v3799_v51, 1  ;;  %v3813_v50 = vld [vmem:[%s4815_s10 + $0x308] sm:$0xfe]  ;;  %v1921_v9 = vrot.slane %v3819_v60, 1 }
  0xab   : > { %2156 = vmatprep.subr.bf16.mxu1 %v4445_v1  ;;  %v1896_v1 = vrot.slane %v3801_v52, 1  ;;  %v4508_v52 = vld [vmem:[%s6099_s1 + $0x644] ss:$8 sps:$4 sm:$0xff]   ;;  %v1914_v4 = vrot.slane %v3813_v50, 1  ;;  %v4542_v60 = vld [vmem:[%s6099_s1 + $0x6e0] ss:$8 sps:$4 sm:$0xff]  }
  0xac   : > { %v3965_v50 = vld [vmem:[%s4815_s10 + $0x148] sm:$0xff] }
  0xad   : > { %1739 = vmatpush2.bf16.msra.mxu0 %v4440_v2  ;;  %v1897_v2 = vrot.slane %v3803_v53, 1 }
  0xae   : > { %2157 = vmatpush2.bf16.msra.mxu1 %v4443_v10  ;;  %1740 = vmatprep.subr.bf16.mxu0 %v4448_v15  ;;  %v1521_v10 = vpack.c.bf16 %v3710_v59, %v3708_v56  ;;  %v1892_v15 = vsel %vm842_vm0, %v1890_v63, %v1891_v0  ;;  %v3815_v56 = vld [vmem:[%s4815_s10 + $0x318] sm:$0x1]  ;;  %v1906_v59 = vrot.slane %v3810_v44, 1  ;;  %v4506_v63 = vld [vmem:[%s6099_s1 + $0x640] ss:$8 sps:$4 sm:$0xff]  }
  0xaf   : > { %2158 = vmatprep.subr.bf16.mxu1 %v4451_v16  ;;  %v1898_v16 = vsel %vm842_vm0, %v1896_v1, %v1897_v2  ;;  %v4509_v0 = vld [vmem:[%s6099_s1 + $0x740] ss:$8 sps:$4 sm:$0xff]   ;;  %v1915_v5 = vrot.slane %v3815_v56, 1  ;;  %v4532_v44 = vld [vmem:[%s6099_s1 + $0x604] ss:$8 sps:$4 sm:$0xff]  }
  0xb0   : > { %v3716_v1 = vld [vmem:[%s4815_s10 + $0x3e0] sm:$0xff]  ;;  %v4536_v56 = vld [vmem:[%s6099_s1 + $0x6f0] ss:$8 sps:$4 sm:$0xff]  }
  0xb1   : > { %1741 = vmatpush2.bf16.msra.mxu0 %v4446_v19  ;;  %v3807_v19 = vld [vmem:[%s4815_s10 + $0x2d8] sm:$0x1]  ;;  %v3718_v2 = vld [vmem:[%s4815_s10 + $0x400] sm:$0xff] }
  0xb2   : > { %2159 = vmatpush2.bf16.msra.mxu1 %v4449_v20  ;;  %1742 = vmatprep.subr.bf16.mxu0 %v4454_v22  ;;  %v1893_v20 = vrot.slane %v3800_v8, 1  ;;  %v3809_v22 = vld [vmem:[%s4815_s10 + $0x2e8] sm:$0xfe]  ;;  %v4517_v8 = vld [vmem:[%s6099_s1 + $0x734] ss:$8 sps:$4 sm:$0xff]   ;;  %v1525_v18 = vpack.c.bf16 %v3718_v2, %v3716_v1 }
  0xb3   : > { %2160 = vmatprep.subr.bf16.mxu1 %v4457_v23  ;;  %v3811_v23 = vld [vmem:[%s4815_s10 + $0x2f8] sm:$0x1]  ;;  %v4556_v2 = vld [vmem:[%s6099_s1 + $0x6c4] ss:$8 sps:$4 sm:$0xff]  }
  0xb4   : > { %v1909_v37 = vrot.slane %v3811_v23, 1  ;;  %v1916_v23 = vsel %vm842_vm0, %v1914_v4, %v1915_v5  ;;  %v4551_v1 = vld [vmem:[%s6099_s1 + $0x7d0] ss:$8 sps:$4 sm:$0xff]   ;;  %v4554_v4 = vld [vmem:[%s6099_s1 + $0x6c0] ss:$8 sps:$4 sm:$0xff]  }
  0xb5   : > { %1743 = vmatpush2.bf16.msra.mxu0 %v4452_v24  ;;  %v4496_v24 = vld [vmem:[%s6099_s1 + $0x664] ss:$8 sps:$4 sm:$0xff]   ;;  %v4557_v5 = vld [vmem:[%s6099_s1 + $0x7c0] ss:$8 sps:$4 sm:$0xff]  }
  0xb6   : > { %2161 = vmatpush2.bf16.msra.mxu1 %v4455_v25  ;;  %1744 = vmatprep.subr.bf16.mxu0 %v4460_v26  ;;  %v4499_v25 = vld [vmem:[%s6099_s1 + $0x764] ss:$8 sps:$4 sm:$0xff]   ;;  %v4494_v26 = vld [vmem:[%s6099_s1 + $0x660] ss:$8 sps:$4 sm:$0xff]  }
  0xb7   : > { %2162 = vmatprep.subr.bf16.mxu1 %v4463_v27  ;;  %v4497_v27 = vld [vmem:[%s6099_s1 + $0x760] ss:$8 sps:$4 sm:$0xff]  }
  0xb9   : > { %1745 = vmatpush2.bf16.msra.mxu0 %v4458_v28  ;;  %v1524_v28 = vpack.c.bf16 %v3715_v7, %v3713_v6  ;;  %v4514_v7 = vld [vmem:[%s6099_s1 + $0x634] ss:$8 sps:$4 sm:$0xff]  }
  0xba   : > { %2163 = vmatpush2.bf16.msra.mxu1 %v4461_v29  ;;  %1746 = vmatprep.subr.bf16.mxu0 %v4466_v30  ;;  %v3712_v29 = vld [vmem:[%s4815_s10 + $0x3a0] sm:$0xff] }
  0xbb   : > { %2164 = vmatprep.subr.bf16.mxu1 %v4469_v31  ;;  %v3714_v30 = vld [vmem:[%s4815_s10 + $0x3c0] sm:$0xff]  ;;  %v1942_v31 = vpack.c.bf16 %v1898_v16, %v1892_v15  ;;  %v3818_v15 = vld [vmem:[%s4815_s10 + $0x330] sm:$0x1] }
  0xbc   : > { %v1523_v45 = vpack.c.bf16 %v3714_v30, %v3712_v29  ;;  %v4512_v16 = vld [vmem:[%s6099_s1 + $0x630] ss:$8 sps:$4 sm:$0xff]   ;;  %v4523_v29 = vld [vmem:[%s6099_s1 + $0x724] ss:$8 sps:$4 sm:$0xff]   ;;  %v4518_v30 = vld [vmem:[%s6099_s1 + $0x620] ss:$8 sps:$4 sm:$0xff]  }
  0xbd   : > { %1747 = vmatpush2.bf16.msra.mxu0 %v4464_v32  ;;  %v1902_v32 = vrot.slane %v3805_v14, 1  ;;  %v3816_v14 = vld [vmem:[%s4815_s10 + $0x320] sm:$0xfe] }
  0xbe   : > { %2165 = vmatpush2.bf16.msra.mxu1 %v4467_v33  ;;  %1748 = vmatprep.subr.bf16.mxu0 %v4472_v34  ;;  %v1903_v33 = vrot.slane %v3807_v19, 1  ;;  %v4502_v34 = vld [vmem:[%s6099_s1 + $0x654] ss:$8 sps:$4 sm:$0xff]  }
  0xbf   : > { %2166 = vmatprep.subr.bf16.mxu1 %v4475_v35  ;;  %v4505_v35 = vld [vmem:[%s6099_s1 + $0x754] ss:$8 sps:$4 sm:$0xff]  }
  0xc0   : > { %v1904_v53 = vsel %vm842_vm0, %v1902_v32, %v1903_v33 }
  0xc1   : > { %1749 = vmatpush2.bf16.msra.mxu0 %v4470_v36  ;;  %v1908_v36 = vrot.slane %v3809_v22, 1  ;;  %v3723_v22 = vld [vmem:[%s4815_s10 + $0x448] sm:$0xff] }
  0xc2   : > { %2167 = vmatpush2.bf16.msra.mxu1 %v4473_v41  ;;  %1750 = vmatprep.subr.bf16.mxu0 %v4478_v42  ;;  %v1895_v41 = vsel %vm842_vm0, %v1893_v20, %v1894_v21  ;;  %v3717_v42 = vld [vmem:[%s4815_s10 + $0x3e8] sm:$0xff] }
  0xc3   : > { %2168 = vmatprep.subr.bf16.mxu1 %v4481_v43  ;;  %v3808_v43 = vld [vmem:[%s4815_s10 + $0x2e0] sm:$0xfe]  ;;  %v1941_v51 = vpack.c.bf16 %v1895_v41, %v1889_v40  ;;  %v3721_v21 = vld [vmem:[%s4815_s10 + $0x428] sm:$0xff]  ;;  %v4524_v41 = vld [vmem:[%s6099_s1 + $0x610] ss:$8 sps:$4 sm:$0xff]  }
  0xc4   : > { %v4520_v20 = vld [vmem:[%s6099_s1 + $0x624] ss:$8 sps:$4 sm:$0xff]   ;;  %v1528_v32 = vpack.c.bf16 %v3723_v22, %v3721_v21  ;;  %v4581_v21 = vld [vmem:[%s6099_s1 + $0x780] ss:$8 sps:$4 sm:$0xff]  }
  0xc5   : > { %1751 = vmatpush2.bf16.msra.mxu0 %v4476_v48  ;;  %v3719_v48 = vld [vmem:[%s4815_s10 + $0x408] sm:$0xff]  ;;  %v3884_v22 = vld [vmem:[%s4815_s10 + $0x20] sm:$0xff] }
  0xc6   : > { %2169 = vmatpush2.bf16.msra.mxu1 %v4479_v49  ;;  %1752 = vmatprep.subr.bf16.mxu0 %v4484_v54  ;;  %v1899_v49 = vrot.slane %v3804_v38, 1  ;;  %v1910_v54 = vsel %vm842_vm0, %v1908_v36, %v1909_v37  ;;  %v4526_v36 = vld [vmem:[%s6099_s1 + $0x614] ss:$8 sps:$4 sm:$0xff]  }
  0xc7   : > { %2170 = vmatprep.subr.bf16.mxu1 %v4487_v55  ;;  %v1900_v55 = vrot.slane %v3806_v39, 1  ;;  %v4529_v39 = vld [vmem:[%s6099_s1 + $0x714] ss:$8 sps:$4 sm:$0xff]  }
  0xc9   : > { %1753 = vmatpush2.bf16.msra.mxu0 %v4482_v57  ;;  %v3817_v57 = vld [vmem:[%s4815_s10 + $0x328] sm:$0xfe] }
  0xca   : > { %2171 = vmatpush2.bf16.msra.mxu1 %v4485_v58  ;;  %2447 = vmatprep.subr.bf16.mxu0 %v4490_v62  ;;  %v1905_v58 = vrot.slane %v3808_v43, 1  ;;  %v1526_v62 = vpack.c.bf16 %v3719_v48, %v3717_v42  ;;  %v1920_v6 = vrot.slane %v3817_v57, 1  ;;  %v4527_v42 = vld [vmem:[%s6099_s1 + $0x710] ss:$8 sps:$4 sm:$0xff]   ;;  %v3885_v48 = vld [vmem:[%s4815_s10 + $0x28] sm:$0xff] }
  0xcb   : > { %2754 = vmatprep.subr.bf16.mxu1 %v4493_v3  ;;  %v1944_v3 = vpack.c.bf16 %v1910_v54, %v1904_v53  ;;  %v3967_v54 = vld [vmem:[%s4815_s10 + $0x168] sm:$0xff]  ;;  %v4539_v57 = vld [vmem:[%s6099_s1 + $0x7f0] ss:$8 sps:$4 sm:$0xff]  }
  0xcc   : > { %1755 = vmatmul.mubr.bf16.vlgmr.msra.gmra.mxu0 %v1521_v10  ;;  %v3812_v10 = vld [vmem:[%s4815_s10 + $0x300] sm:$0xfe] }
  0xcd   : > { %2173 = vmatmul.mubr.bf16.vlgmr.msra.gmra.mxu1 %v1939_v11  ;;  %2448 = vmatpush1.bf16.msra.mxu0 %v4488_v12  ;;  %v3814_v11 = vld [vmem:[%s4815_s10 + $0x310] sm:$0x1]  ;;  %v1901_v12 = vsel %vm842_vm0, %v1899_v49, %v1900_v55  ;;  %v3887_v49 = vld [vmem:[%s4815_s10 + $0x48] sm:$0xff]  ;;  %v2554_v55 = vpack.c.bf16 %v3967_v54, %v3965_v50 }
  0xce   : > { %2755 = vmatpush1.bf16.msra.mxu1 %v4491_v13  ;;  %2449 = vmatprep.subr.bf16.mxu0 %v4496_v24  ;;  %v1907_v13 = vsel %vm842_vm0, %v1905_v58, %v1906_v59  ;;  %v1922_v24 = vsel %vm842_vm0, %v1920_v6, %v1921_v9  ;;  %v2247_v53 = vpack.c.bf16 %v3887_v49, %v3885_v48  ;;  %v4544_v58 = vld [vmem:[%s6099_s1 + $0x6e4] ss:$8 sps:$4 sm:$0xff]   ;;  %v4562_v6 = vld [vmem:[%s6099_s1 + $0x6b4] ss:$8 sps:$4 sm:$0xff]   ;;  %v4563_v9 = vld [vmem:[%s6099_s1 + $0x7b0] ss:$8 sps:$4 sm:$0xff]  }
  0xcf   : > { %2756 = vmatprep.subr.bf16.mxu1 %v4499_v25  ;;  %1764 = vmatprep.mubr.bf16.mxu0 %v1524_v28  ;;  %v1943_v19 = vpack.c.bf16 %v1907_v13, %v1901_v12  ;;  %v1911_v25 = vrot.slane %v3812_v10, 1  ;;  %v1918_v28 = vrot.slane %v3818_v15, 1  ;;  %v1946_v33 = vpack.c.bf16 %v1922_v24, %v1916_v23  ;;  %v4547_v59 = vld [vmem:[%s6099_s1 + $0x7e4] ss:$8 sps:$4 sm:$0xff]   ;;  %v4566_v12 = vld [vmem:[%s6099_s1 + $0x6a0] ss:$8 sps:$4 sm:$0xff]  }
  0xd0   : > { %2182 = vmatprep.mubr.bf16.mxu1 %v1942_v31  ;;  %v4521_v31 = vld [vmem:[%s6099_s1 + $0x720] ss:$8 sps:$4 sm:$0xff]   ;;  %v4568_v10 = vld [vmem:[%s6099_s1 + $0x6a4] ss:$8 sps:$4 sm:$0xff]   ;;  %v4577_v15 = vld [vmem:[%s6099_s1 + $0x794] ss:$8 sps:$4 sm:$0xff]  }
  0xd1   : > { %2450 = vmatpush1.bf16.msra.mxu0 %v4494_v26  ;;  %v1912_v26 = vrot.slane %v3814_v11, 1  ;;  %v4571_v11 = vld [vmem:[%s6099_s1 + $0x7a4] ss:$8 sps:$4 sm:$0xff]   ;;  %v4569_v13 = vld [vmem:[%s6099_s1 + $0x7a0] ss:$8 sps:$4 sm:$0xff]  }
  0xd2   : > { %2757 = vmatpush1.bf16.msra.mxu1 %v4497_v27  ;;  %2451 = vmatprep.subr.bf16.mxu0 %v4502_v34  ;;  %v1917_v27 = vrot.slane %v3816_v14, 1  ;;  %v3720_v34 = vld [vmem:[%s4815_s10 + $0x420] sm:$0xff]  ;;  %v4574_v14 = vld [vmem:[%s6099_s1 + $0x694] ss:$8 sps:$4 sm:$0xff]   ;;  %v3893_v49 = vld [vmem:[%s4815_s10 + $0xa8] sm:$0xff] }
  0xd3   : > { %2758 = vmatprep.subr.bf16.mxu1 %v4505_v35  ;;  %v3722_v35 = vld [vmem:[%s4815_s10 + $0x440] sm:$0xff]  ;;  %v1913_v37 = vsel %vm842_vm0, %v1911_v25, %v1912_v26  ;;  %v4586_v26 = vld [vmem:[%s6099_s1 + $0x874] ss:$8 sps:$4 sm:$0xff]   ;;  %v3895_v54 = vld [vmem:[%s4815_s10 + $0xc8] sm:$0xff] }
  0xd4   : > { %1765 = vmatmul.mubr.bf16.gmra.mxu0 %v1523_v45  ;;  %v1919_v38 = vsel %vm842_vm0, %v1917_v27, %v1918_v28  ;;  %v1527_v40 = vpack.c.bf16 %v3722_v35, %v3720_v34  ;;  %v4535_v45 = vld [vmem:[%s6099_s1 + $0x704] ss:$8 sps:$4 sm:$0xff]  }
  0xd5   : > { %2183 = vmatmul.mubr.bf16.gmra.mxu1 %v1941_v51  ;;  %2452 = vmatpush1.bf16.msra.mxu0 %v4500_v46  ;;  %v1945_v43 = vpack.c.bf16 %v1919_v38, %v1913_v37  ;;  %v4530_v46 = vld [vmem:[%s6099_s1 + $0x600] ss:$8 sps:$4 sm:$0xff]   ;;  %v4538_v51 = vld [vmem:[%s6099_s1 + $0x6f4] ss:$8 sps:$4 sm:$0xff]   ;;  %v4589_v34 = vld [vmem:[%s6099_s1 + $0x864] ss:$8 sps:$4 sm:$0xff]  }
  0xd6   : > { %2759 = vmatpush1.bf16.msra.mxu1 %v4503_v47  ;;  %2453 = vmatprep.subr.bf16.mxu0 %v4508_v52  ;;  %v4533_v47 = vld [vmem:[%s6099_s1 + $0x700] ss:$8 sps:$4 sm:$0xff]   ;;  %v4541_v52 = vld [vmem:[%s6099_s1 + $0x7f4] ss:$8 sps:$4 sm:$0xff]  }
  0xd7   : > { %2760 = vmatprep.subr.bf16.mxu1 %v4511_v61  ;;  %1774 = vmatprep.mubr.bf16.mxu0 %v1526_v62  ;;  %v4545_v61 = vld [vmem:[%s6099_s1 + $0x7e0] ss:$8 sps:$4 sm:$0xff]   ;;  %v4550_v62 = vld [vmem:[%s6099_s1 + $0x6d4] ss:$8 sps:$4 sm:$0xff]  }
  0xd8   : > { %2192 = vmatprep.mubr.bf16.mxu1 %v1944_v3  ;;  %v4559_v3 = vld [vmem:[%s6099_s1 + $0x7c4] ss:$8 sps:$4 sm:$0xff]  }
  0xd9   : > { %2454 = vmatpush1.bf16.msra.mxu0 %v4506_v63  ;;  %v4553_v63 = vld [vmem:[%s6099_s1 + $0x7d4] ss:$8 sps:$4 sm:$0xff]   ;;  %v3886_v23 = vld [vmem:[%s4815_s10 + $0x40] sm:$0xff]  ;;  %v3889_v27 = vld [vmem:[%s4815_s10 + $0x68] sm:$0xff] }
  0xda   : > { %2761 = vmatpush1.bf16.msra.mxu1 %v4509_v0  ;;  %2455 = vmatprep.subr.bf16.mxu0 %v4514_v7  ;;  %v4548_v0 = vld [vmem:[%s6099_s1 + $0x6d0] ss:$8 sps:$4 sm:$0xff]   ;;  %v4565_v7 = vld [vmem:[%s6099_s1 + $0x7b4] ss:$8 sps:$4 sm:$0xff]   ;;  %v3964_v24 = vld [vmem:[%s4815_s10 + $0x140] sm:$0xff]  ;;  %v2246_v28 = vpack.c.bf16 %v3886_v23, %v3884_v22 }
  0xdb   : > { %2762 = vmatprep.subr.bf16.mxu1 %v4517_v8  ;;  %v4560_v8 = vld [vmem:[%s6099_s1 + $0x6b0] ss:$8 sps:$4 sm:$0xff]   ;;  %v3966_v25 = vld [vmem:[%s4815_s10 + $0x160] sm:$0xff] }
  0xdc   : > { %1775 = vmatmul.mubr.bf16.gmra.mxu0 %v1525_v18  ;;  %v4580_v18 = vld [vmem:[%s6099_s1 + $0x684] ss:$8 sps:$4 sm:$0xff]  }
  0xdd   : > { %2193 = vmatmul.mubr.bf16.gmra.mxu1 %v1943_v19  ;;  %2456 = vmatpush1.bf16.msra.mxu0 %v4512_v16  ;;  %v4572_v16 = vld [vmem:[%s6099_s1 + $0x690] ss:$8 sps:$4 sm:$0xff]   ;;  %v4583_v19 = vld [vmem:[%s6099_s1 + $0x784] ss:$8 sps:$4 sm:$0xff]  }
  0xde   : > { %2763 = vmatpush1.bf16.msra.mxu1 %v4515_v17  ;;  %2457 = vmatprep.subr.bf16.mxu0 %v4520_v20  ;;  %v4575_v17 = vld [vmem:[%s6099_s1 + $0x790] ss:$8 sps:$4 sm:$0xff]   ;;  %v4578_v20 = vld [vmem:[%s6099_s1 + $0x680] ss:$8 sps:$4 sm:$0xff]  }
  0xdf   : > { %2764 = vmatprep.subr.bf16.mxu1 %v4523_v29  ;;  %1784 = vmatprep.mubr.bf16.mxu0 %v1528_v32  ;;  %v2553_v29 = vpack.c.bf16 %v3966_v25, %v3964_v24  ;;  %v3971_v32 = vld [vmem:[%s4815_s10 + $0x1a8] sm:$0xff]  ;;  %v4051_v25 = vld [vmem:[%s4815_s10 + $0x58] sm:$0x1] }
  0xe0   : > { %2202 = vmatprep.mubr.bf16.mxu1 %v1946_v33  ;;  %v4584_v33 = vld [vmem:[%s6099_s1 + $0x870] ss:$8 sps:$4 sm:$0xff]   ;;  %v4049_v24 = vld [vmem:[%s4815_s10 + $0x48] sm:$0xfe] }
  0xe1   : > { %2458 = vmatpush1.bf16.msra.mxu0 %v4518_v30  ;;  %v3891_v30 = vld [vmem:[%s4815_s10 + $0x88] sm:$0xff] }
  0xe2   : > { %2765 = vmatpush1.bf16.msra.mxu1 %v4521_v31  ;;  %2459 = vmatprep.subr.bf16.mxu0 %v4526_v36  ;;  %v3969_v31 = vld [vmem:[%s4815_s10 + $0x188] sm:$0xff]  ;;  %v2249_v35 = vpack.c.bf16 %v3891_v30, %v3889_v27  ;;  %v4067_v30 = vld [vmem:[%s4815_s10 + $0xd8] sm:$0x1] }
  0xe3   : > { %2766 = vmatprep.subr.bf16.mxu1 %v4529_v39  ;;  %v2556_v36 = vpack.c.bf16 %v3971_v32, %v3969_v31  ;;  %v4587_v39 = vld [vmem:[%s6099_s1 + $0x860] ss:$8 sps:$4 sm:$0xff]   ;;  %v4601_v31 = vld [vmem:[%s6099_s1 + $0x824] ss:$8 sps:$4 sm:$0xff]  }
  0xe4   : > { %1785 = vmatmul.mubr.bf16.gmra.mxu0 %v1527_v40  ;;  %v3888_v40 = vld [vmem:[%s4815_s10 + $0x60] sm:$0xff] }
  0xe5   : > { %2203 = vmatmul.mubr.bf16.gmra.mxu1 %v1945_v43  ;;  %2460 = vmatpush1.bf16.msra.mxu0 %v4524_v41  ;;  %v3968_v43 = vld [vmem:[%s4815_s10 + $0x180] sm:$0xff] }
  0xe6   : > { %2767 = vmatpush1.bf16.msra.mxu1 %v4527_v42  ;;  %2461 = vmatprep.subr.bf16.mxu0 %v4532_v44  ;;  %v3890_v42 = vld [vmem:[%s4815_s10 + $0x80] sm:$0xff] }
  0xe7   : > { %2768 = vmatprep.subr.bf16.mxu1 %v4535_v45  ;;  %2479 = vmatprep.mubr.bf16.mxu0 %v2247_v53  ;;  %v3970_v44 = vld [vmem:[%s4815_s10 + $0x1a0] sm:$0xff] }
  0xe8   : > { %2786 = vmatprep.mubr.bf16.mxu1 %v2554_v55  ;;  %v2555_v53 = vpack.c.bf16 %v3970_v44, %v3968_v43  ;;  %v3973_v55 = vld [vmem:[%s4815_s10 + $0x1c8] sm:$0xff]  ;;  %v2917_v43 = vrot.slane %v4051_v25, 1  ;;  %v3976_v44 = vld [vmem:[%s4815_s10 + $0x200] sm:$0xff]  ;;  %v4608_v25 = vld [vmem:[%s6099_s1 + $0x8f0] ss:$8 sps:$4 sm:$0xff]  }
  0xe9   : > { %2462 = vmatpush1.bf16.msra.mxu0 %v4530_v46 }
  0xea   : > { %2769 = vmatpush1.bf16.msra.mxu1 %v4533_v47  ;;  %2463 = vmatprep.subr.bf16.mxu0 %v4538_v51  ;;  %v4592_v47 = vld [vmem:[%s6099_s1 + $0x854] ss:$8 sps:$4 sm:$0xff]  }
  0xeb   : > { %2770 = vmatprep.subr.bf16.mxu1 %v4541_v52  ;;  %v2248_v52 = vpack.c.bf16 %v3890_v42, %v3888_v40  ;;  %v2916_v42 = vrot.slane %v4049_v24, 1 }
  0xed   : > { %2464 = vmatpush2.bf16.msra.mxu0 %v4536_v56  ;;  %v3975_v56 = vld [vmem:[%s4815_s10 + $0x1e8] sm:$0xff] }
  0xee   : > { %2771 = vmatpush2.bf16.msra.mxu1 %v4539_v57  ;;  %2465 = vmatprep.subr.bf16.mxu0 %v4544_v58  ;;  %v4590_v58 = vld [vmem:[%s6099_s1 + $0x850] ss:$8 sps:$4 sm:$0xff]  }
  0xef   : > { %2772 = vmatprep.subr.bf16.mxu1 %v4547_v59 }
  0xf1   : > { %2466 = vmatpush2.bf16.msra.mxu0 %v4542_v60 }
  0xf2   : > { %2773 = vmatpush2.bf16.msra.mxu1 %v4545_v61  ;;  %2467 = vmatprep.subr.bf16.mxu0 %v4550_v62  ;;  %v4595_v61 = vld [vmem:[%s6099_s1 + $0x844] ss:$8 sps:$4 sm:$0xff]  }
  0xf3   : > { %2774 = vmatprep.subr.bf16.mxu1 %v4553_v63  ;;  %v2251_v63 = vpack.c.bf16 %v3895_v54, %v3893_v49 }
  0xf5   : > { %2468 = vmatpush2.bf16.msra.mxu0 %v4548_v0  ;;  %v2558_v0 = vpack.c.bf16 %v3975_v56, %v3973_v55  ;;  %v4604_v55 = vld [vmem:[%s6099_s1 + $0x814] ss:$8 sps:$4 sm:$0xff]  }
  0xf6   : > { %2775 = vmatpush2.bf16.msra.mxu1 %v4551_v1  ;;  %2469 = vmatprep.subr.bf16.mxu0 %v4556_v2  ;;  %v4593_v1 = vld [vmem:[%s6099_s1 + $0x840] ss:$8 sps:$4 sm:$0xff]  }
  0xf7   : > { %2776 = vmatprep.subr.bf16.mxu1 %v4559_v3  ;;  %v3892_v2 = vld [vmem:[%s4815_s10 + $0xa0] sm:$0xff] }
  0xf8   : > { %v3894_v3 = vld [vmem:[%s4815_s10 + $0xc0] sm:$0xff] }
  0xf9   : > { %2470 = vmatpush2.bf16.msra.mxu0 %v4554_v4 }
  0xfa   : > { %2777 = vmatpush2.bf16.msra.mxu1 %v4557_v5  ;;  %2471 = vmatprep.subr.bf16.mxu0 %v4562_v6  ;;  %v4598_v6 = vld [vmem:[%s6099_s1 + $0x834] ss:$8 sps:$4 sm:$0xff]  }
  0xfb   : > { %2778 = vmatprep.subr.bf16.mxu1 %v4565_v7  ;;  %v3972_v7 = vld [vmem:[%s4815_s10 + $0x1c0] sm:$0xff] }
  0xfd   : > { %2472 = vmatpush2.bf16.msra.mxu0 %v4560_v8  ;;  %v3974_v8 = vld [vmem:[%s4815_s10 + $0x1e0] sm:$0xff] }
  0xfe   : > { %2779 = vmatpush2.bf16.msra.mxu1 %v4563_v9  ;;  %2473 = vmatprep.subr.bf16.mxu0 %v4568_v10  ;;  %v3897_v10 = vld [vmem:[%s4815_s10 + $0xe8] sm:$0xff] }
  0xff   : > { %2780 = vmatprep.subr.bf16.mxu1 %v4571_v11  ;;  %v3899_v11 = vld [vmem:[%s4815_s10 + $0x108] sm:$0xff] }
 0x100   : > { %v2253_v32 = vpack.c.bf16 %v3899_v11, %v3897_v10 }
 0x101   : > { %2474 = vmatpush2.bf16.msra.mxu0 %v4566_v12  ;;  %v3977_v12 = vld [vmem:[%s4815_s10 + $0x208] sm:$0xff] }
 0x102   : > { %2781 = vmatpush2.bf16.msra.mxu1 %v4569_v13  ;;  %2475 = vmatprep.subr.bf16.mxu0 %v4574_v14 }
 0x103   : > { %2782 = vmatprep.subr.bf16.mxu1 %v4577_v15  ;;  %v4596_v15 = vld [vmem:[%s6099_s1 + $0x830] ss:$8 sps:$4 sm:$0xff]  }
 0x105   : > { %2476 = vmatpush2.bf16.msra.mxu0 %v4572_v16  ;;  %v3979_v16 = vld [vmem:[%s4815_s10 + $0x228] sm:$0xff] }
 0x106   : > { %2783 = vmatpush2.bf16.msra.mxu1 %v4575_v17  ;;  %2477 = vmatprep.subr.bf16.mxu0 %v4580_v18  ;;  %v4045_v18 = vld [vmem:[%s4815_s10 + $0x28] sm:$0xfe] }
 0x107   : > { %2784 = vmatprep.subr.bf16.mxu1 %v4583_v19  ;;  %v4047_v19 = vld [vmem:[%s4815_s10 + $0x38] sm:$0x1] }
 0x108   : > { %v2911_v40 = vrot.slane %v4047_v19, 1  ;;  %v4610_v19 = vld [vmem:[%s6099_s1 + $0x8f4] ss:$8 sps:$4 sm:$0xff]  }
 0x109   : > { %2478 = vmatpush2.bf16.msra.mxu0 %v4578_v20  ;;  %v2250_v20 = vpack.c.bf16 %v3894_v3, %v3892_v2  ;;  %v2918_v2 = vsel %vm842_vm0, %v2916_v42, %v2917_v43  ;;  %v4048_v42 = vld [vmem:[%s4815_s10 + $0x40] sm:$0xfe]  ;;  %v4050_v43 = vld [vmem:[%s4815_s10 + $0x50] sm:$0x1] }
 0x10a   : > { %2785 = vmatpush2.bf16.msra.mxu1 %v4581_v21  ;;  %3172 = vmatprep.subr.bf16.mxu0 %v4586_v26  ;;  %v2557_v21 = vpack.c.bf16 %v3974_v8, %v3972_v7  ;;  %v4607_v7 = vld [vmem:[%s6099_s1 + $0x804] ss:$8 sps:$4 sm:$0xff]  }
 0x10b   : > { %4159 = vmatprep.subr.bf16.mxu1 %v4586_v26  ;;  %v4061_v26 = vld [vmem:[%s4815_s10 + $0xa8] sm:$0xfe] }
 0x10c   : > { %v506_v37 = vpop.f32.mrf.mxu0  ;;  %2480 = vmatmul.mubr.bf16.vlgmr.msra.gmra.mxu0 %v2246_v28  ;;  %v4063_v28 = vld [vmem:[%s4815_s10 + $0xb8] sm:$0x1]  ;;  %v2934_v49 = vrot.slane %v4061_v26, 1 }
 0x10d   : > { %v739_v38 = vpop.f32.mrf.mxu1  ;;  %2787 = vmatmul.mubr.bf16.vlgmr.msra.gmra.mxu1 %v2553_v29  ;;  %3173 = vmatpush1.bf16.msra.mxu0 %v4584_v33  ;;  %v4065_v29 = vld [vmem:[%s4815_s10 + $0xc8] sm:$0xfe] }
 0x10e   : > { %v5638_v41 = vadd.f32 %v739_v38, %v506_v37  ;;  %4175 = vmatpush1.bf16.msra.mxu1 %v4584_v33  ;;  %v508_v45 = vpop.f32.mrf.mxu0  ;;  %3174 = vmatprep.subr.bf16.mxu0 %v4589_v34  ;;  %v2560_v33 = vpack.c.bf16 %v3979_v16, %v3977_v12  ;;  %v3896_v37 = vld [vmem:[%s4815_s10 + $0xe0] sm:$0xff] }
 0x10f   : > { %v741_v46 = vpop.f32.mrf.mxu1  ;;  %4160 = vmatprep.subr.bf16.mxu1 %v4589_v34  ;;  %2489 = vmatprep.mubr.bf16.mxu0 %v2249_v35  ;;  %v3898_v38 = vld [vmem:[%s4815_s10 + $0x100] sm:$0xff] }
 0x110   : > { %v5646_v48 = vadd.f32 %v741_v46, %v508_v45  ;;  %2796 = vmatprep.mubr.bf16.mxu1 %v2556_v36  ;;  %v510_v50 = vpop.f32.mrf.mxu0  ;;  %v2910_v36 = vrot.slane %v4045_v18, 1  ;;  %v3978_v45 = vld [vmem:[%s4815_s10 + $0x220] sm:$0xff] }
 0x111   : > { %v743_v51 = vpop.f32.mrf.mxu1  ;;  %3175 = vmatpush1.bf16.msra.mxu0 %v4587_v39  ;;  %v4605_v16 = vld [vmem:[%s6099_s1 + $0x800] ss:$8 sps:$4 sm:$0xff]  }
 0x112   : > { %v5652_v57 = vadd.f32 %v743_v51, %v510_v50  ;;  %4176 = vmatpush1.bf16.msra.mxu1 %v4587_v39  ;;  %v512_v59 = vpop.f32.mrf.mxu0  ;;  %3176 = vmatprep.subr.bf16.mxu0 %v4592_v47  ;;  %v2935_v50 = vrot.slane %v4063_v28, 1  ;;  %v2940_v51 = vrot.slane %v4065_v29, 1  ;;  %v4613_v28 = vld [vmem:[%s6099_s1 + $0x8e4] ss:$8 sps:$4 sm:$0xff]  }
 0x113   : > { %v745_v60 = vpop.f32.mrf.mxu1  ;;  %4161 = vmatprep.subr.bf16.mxu1 %v4592_v47 }
 0x114   : > { %v5660_v62 = vadd.f32 %v745_v60, %v512_v59  ;;  %2490 = vmatmul.mubr.bf16.gmra.mxu0 %v2248_v52  ;;  %v516_v4 = vpop.f32.mrf.mxu0  ;;  %v2941_v52 = vrot.slane %v4067_v30, 1  ;;  %v2252_v59 = vpack.c.bf16 %v3898_v38, %v3896_v37  ;;  %v2559_v60 = vpack.c.bf16 %v3978_v45, %v3976_v44  ;;  %v4622_v37 = vld [vmem:[%s6099_s1 + $0x8b4] ss:$8 sps:$4 sm:$0xff]   ;;  %v4044_v38 = vld [vmem:[%s4815_s10 + $0x20] sm:$0xfe] }
 0x115   : > { %2797 = vmatmul.mubr.bf16.gmra.mxu1 %v2555_v53  ;;  %v749_v5 = vpop.f32.mrf.mxu1  ;;  %3177 = vmatpush1.bf16.msra.mxu0 %v4590_v58  ;;  %v4599_v53 = vld [vmem:[%s6099_s1 + $0x820] ss:$8 sps:$4 sm:$0xff]   ;;  %v2936_v3 = vsel %vm842_vm0, %v2934_v49, %v2935_v50  ;;  %v4620_v44 = vld [vmem:[%s6099_s1 + $0x8b0] ss:$8 sps:$4 sm:$0xff]   ;;  %v4625_v45 = vld [vmem:[%s6099_s1 + $0x8a4] ss:$8 sps:$4 sm:$0xff]  }
 0x116   : > { %4177 = vmatpush1.bf16.msra.mxu1 %v4590_v58  ;;  %v5672_v9 = vadd.f32 %v749_v5, %v516_v4  ;;  %3178 = vmatprep.subr.bf16.mxu0 %v4595_v61  ;;  %v518_v13 = vpop.f32.mrf.mxu0  ;;  %v2942_v4 = vsel %vm842_vm0, %v2940_v51, %v2941_v52  ;;  %v4602_v5 = vld [vmem:[%s6099_s1 + $0x810] ss:$8 sps:$4 sm:$0xff]   ;;  %v2913_v49 = vrot.slane %v4048_v42, 1  ;;  %v2914_v50 = vrot.slane %v4050_v43, 1  ;;  %v4623_v51 = vld [vmem:[%s6099_s1 + $0x8a0] ss:$8 sps:$4 sm:$0xff]  }
 0x117   : > { %4162 = vmatprep.subr.bf16.mxu1 %v4595_v61  ;;  %v751_v14 = vpop.f32.mrf.mxu1  ;;  %2499 = vmatprep.mubr.bf16.mxu0 %v2251_v63  ;;  %v4060_v52 = vld [vmem:[%s4815_s10 + $0xa0] sm:$0xfe]  ;;  %v4058_v42 = vld [vmem:[%s4815_s10 + $0x90] sm:$0x1] }
 0x118   : > { %2806 = vmatprep.mubr.bf16.mxu1 %v2558_v0  ;;  %v5681_v17 = vadd.f32 %v751_v14, %v518_v13  ;;  %v520_v22 = vpop.f32.mrf.mxu0  ;;  %v2976_v13 = vpack.c.bf16 %v2942_v4, %v2936_v3  ;;  %v4073_v3 = vld [vmem:[%s4815_s10 + $0x108] sm:$0xfe]  ;;  %v4075_v4 = vld [vmem:[%s4815_s10 + $0x118] sm:$0x1]  ;;  %v4068_v43 = vld [vmem:[%s4815_s10 + $0xe0] sm:$0xfe] }
 0x119   : > { %v753_v23 = vpop.f32.mrf.mxu1  ;;  %3179 = vmatpush1.bf16.msra.mxu0 %v4593_v1 }
 0x11a   : > { %4178 = vmatpush1.bf16.msra.mxu1 %v4593_v1  ;;  %v5688_v27 = vadd.f32 %v753_v23, %v520_v22  ;;  %3180 = vmatprep.subr.bf16.mxu0 %v4598_v6  ;;  %v522_v34 = vpop.f32.mrf.mxu0  ;;  %v2912_v1 = vsel %vm842_vm0, %v2910_v36, %v2911_v40  ;;  %v4617_v36 = vld [vmem:[%s6099_s1 + $0x8c0] ss:$8 sps:$4 sm:$0xff]   ;;  %v4046_v40 = vld [vmem:[%s4815_s10 + $0x30] sm:$0x1] }
 0x11b   : > { %4163 = vmatprep.subr.bf16.mxu1 %v4598_v6  ;;  %v755_v35 = vpop.f32.mrf.mxu1  ;;  %v2972_v12 = vpack.c.bf16 %v2918_v2, %v2912_v1  ;;  %v4069_v1 = vld [vmem:[%s4815_s10 + $0xe8] sm:$0xfe]  ;;  %v4071_v2 = vld [vmem:[%s4815_s10 + $0xf8] sm:$0x1] }
 0x11c   : > { %v5698_v39 = vadd.f32 %v755_v35, %v522_v34  ;;  %2500 = vmatmul.mubr.bf16.gmra.mxu0 %v2250_v20  ;;  %v526_v46 = vpop.f32.mrf.mxu0  ;;  %v4614_v34 = vld [vmem:[%s6099_s1 + $0x8d0] ss:$8 sps:$4 sm:$0xff]   ;;  %v4619_v35 = vld [vmem:[%s6099_s1 + $0x8c4] ss:$8 sps:$4 sm:$0xff]  }
 0x11d   : > { %2807 = vmatmul.mubr.bf16.gmra.mxu1 %v2557_v21  ;;  %v759_v47 = vpop.f32.mrf.mxu1  ;;  %3181 = vmatpush1.bf16.msra.mxu0 %v4596_v15 }
 0x11e   : > { %4179 = vmatpush1.bf16.msra.mxu1 %v4596_v15  ;;  %v5705_v54 = vadd.f32 %v759_v47, %v526_v46  ;;  %3182 = vmatprep.subr.bf16.mxu0 %v4601_v31  ;;  %v528_v56 = vpop.f32.mrf.mxu0  ;;  %v2907_v46 = vrot.slane %v4044_v38, 1  ;;  %v2908_v47 = vrot.slane %v4046_v40, 1  ;;  %v4056_v40 = vld [vmem:[%s4815_s10 + $0x80] sm:$0xfe] }
 0x11f   : > { %4164 = vmatprep.subr.bf16.mxu1 %v4601_v31  ;;  %v761_v58 = vpop.f32.mrf.mxu1  ;;  %2509 = vmatprep.mubr.bf16.mxu0 %v2253_v32  ;;  %v4611_v32 = vld [vmem:[%s6099_s1 + $0x8e0] ss:$8 sps:$4 sm:$0xff]  }
 0x120   : > { %2816 = vmatprep.mubr.bf16.mxu1 %v2560_v33  ;;  %v5710_v61 = vadd.f32 %v761_v58, %v528_v56  ;;  %v530_v63 = vpop.f32.mrf.mxu0  ;;  %v4616_v33 = vld [vmem:[%s6099_s1 + $0x8d4] ss:$8 sps:$4 sm:$0xff]   ;;  %v4066_v58 = vld [vmem:[%s4815_s10 + $0xd0] sm:$0x1] }
 0x121   : > { %v763_v0 = vpop.f32.mrf.mxu1  ;;  %3183 = vmatpush1.bf16.msra.mxu0 %v4599_v53  ;;  %v4628_v56 = vld [vmem:[%s6099_s1 + $0x894] ss:$8 sps:$4 sm:$0xff]  }
 0x122   : > { %4180 = vmatpush1.bf16.msra.mxu1 %v4599_v53  ;;  %v5719_v6 = vadd.f32 %v763_v0, %v530_v63  ;;  %3184 = vmatprep.subr.bf16.mxu0 %v4604_v55  ;;  %v532_v8 = vpop.f32.mrf.mxu0  ;;  %v4062_v53 = vld [vmem:[%s4815_s10 + $0xb0] sm:$0x1]  ;;  %v4057_v63 = vld [vmem:[%s4815_s10 + $0x88] sm:$0xfe]  ;;  %v4059_v0 = vld [vmem:[%s4815_s10 + $0x98] sm:$0x1] }
 0x123   : > { %4165 = vmatprep.subr.bf16.mxu1 %v4604_v55  ;;  %v765_v10 = vpop.f32.mrf.mxu1  ;;  %v4064_v55 = vld [vmem:[%s4815_s10 + $0xc0] sm:$0xfe] }
 0x124   : > { %v5724_v11 = vadd.f32 %v765_v10, %v532_v8  ;;  %2510 = vmatmul.mubr.bf16.gmra.mxu0 %v2252_v59  ;;  %v536_v14 = vpop.f32.mrf.mxu0  ;;  %v4053_v59 = vld [vmem:[%s4815_s10 + $0x68] sm:$0xfe]  ;;  %v2937_v8 = vrot.slane %v4064_v55, 1  ;;  %v2938_v10 = vrot.slane %v4066_v58, 1  ;;  %v2925_v55 = vrot.slane %v4056_v40, 1 }
 0x125   : > { %2817 = vmatmul.mubr.bf16.gmra.mxu1 %v2559_v60  ;;  %v769_v15 = vpop.f32.mrf.mxu1  ;;  %3185 = vmatpush1.bf16.msra.mxu0 %v4602_v5  ;;  %v4055_v60 = vld [vmem:[%s4815_s10 + $0x78] sm:$0x1]  ;;  %v2943_v58 = vrot.slane %v4068_v43, 1 }
 0x126   : > { %4181 = vmatpush1.bf16.msra.mxu1 %v4602_v5  ;;  %v5729_v18 = vadd.f32 %v769_v15, %v536_v14  ;;  %3186 = vmatprep.subr.bf16.mxu0 %v4607_v7  ;;  %v538_v20 = vpop.f32.mrf.mxu0  ;;  %v2931_v5 = vrot.slane %v4060_v52, 1  ;;  %v2928_v14 = vrot.slane %v4057_v63, 1  ;;  %v2929_v15 = vrot.slane %v4059_v0, 1 }
 0x127   : > { %4166 = vmatprep.subr.bf16.mxu1 %v4607_v7  ;;  %v771_v21 = vpop.f32.mrf.mxu1  ;;  %3204 = vmatprep.mubr.bf16.mxu0 %v2972_v12  ;;  %v2932_v7 = vrot.slane %v4062_v53, 1  ;;  %v2922_v12 = vrot.slane %v4053_v59, 1 }
 0x128   : > { %v5734_v22 = vadd.f32 %v771_v21, %v538_v20  ;;  %3224 = vmatprep.mubr.bf16.mxu1 %v2976_v13  ;;  %v540_v23 = vpop.f32.mrf.mxu0  ;;  %v2923_v13 = vrot.slane %v4055_v60, 1  ;;  %v2947_v20 = vrot.slane %v4071_v2, 1  ;;  %v2952_v21 = vrot.slane %v4073_v3, 1 }
 0x129   : > { %v773_v24 = vpop.f32.mrf.mxu1  ;;  %3187 = vmatpush1.bf16.msra.mxu0 %v4605_v16 }
 0x12a   : > { %4182 = vmatpush1.bf16.msra.mxu1 %v4605_v16  ;;  %v5739_v26 = vadd.f32 %v773_v24, %v540_v23  ;;  %3188 = vmatprep.subr.bf16.mxu0 %v4610_v19  ;;  %v542_v29 = vpop.f32.mrf.mxu0  ;;  %v4626_v16 = vld [vmem:[%s6099_s1 + $0x890] ss:$8 sps:$4 sm:$0xff]   ;;  %v2953_v23 = vrot.slane %v4075_v4, 1  ;;  %v4631_v24 = vld [vmem:[%s6099_s1 + $0x884] ss:$8 sps:$4 sm:$0xff]  }
 0x12b   : > { %4167 = vmatprep.subr.bf16.mxu1 %v4610_v19  ;;  %v775_v30 = vpop.f32.mrf.mxu1  ;;  %v2946_v19 = vrot.slane %v4069_v1, 1 }
 0x12c   : > { %v5744_v31 = vadd.f32 %v775_v30, %v542_v29  ;;  %v4629_v29 = vld [vmem:[%s6099_s1 + $0x880] ss:$8 sps:$4 sm:$0xff]   ;;  %v2933_v30 = vsel %vm842_vm0, %v2931_v5, %v2932_v7  ;;  %v2954_v38 = vsel %vm842_vm0, %v2952_v21, %v2953_v23 }
 0x12d   : > { %3189 = vmatpush2.bf16.msra.mxu0 %v4608_v25 }
 0x12e   : > { %4183 = vmatpush2.bf16.msra.mxu1 %v4608_v25  ;;  %3190 = vmatprep.subr.bf16.mxu0 %v4613_v28  ;;  %v2909_v25 = vsel %vm842_vm0, %v2907_v46, %v2908_v47  ;;  %v4074_v46 = vld [vmem:[%s4815_s10 + $0x110] sm:$0x1] }
 0x12f   : > { %4168 = vmatprep.subr.bf16.mxu1 %v4613_v28  ;;  %v2915_v28 = vsel %vm842_vm0, %v2913_v49, %v2914_v50  ;;  %v2950_v63 = vrot.slane %v4074_v46, 1 }
 0x130   : > { %v2971_v47 = vpack.c.bf16 %v2915_v28, %v2909_v25 }
 0x131   : > { %3191 = vmatpush2.bf16.msra.mxu0 %v4611_v32 }
 0x132   : > { %4184 = vmatpush2.bf16.msra.mxu1 %v4611_v32  ;;  %3192 = vmatprep.subr.bf16.mxu0 %v4616_v33  ;;  %v2939_v32 = vsel %vm842_vm0, %v2937_v8, %v2938_v10 }
 0x133   : > { %4169 = vmatprep.subr.bf16.mxu1 %v4616_v33  ;;  %v2924_v33 = vsel %vm842_vm0, %v2922_v12, %v2923_v13  ;;  %v2975_v49 = vpack.c.bf16 %v2939_v32, %v2933_v30 }
 0x135   : > { %3193 = vmatpush2.bf16.msra.mxu0 %v4614_v34 }
 0x136   : > { %4185 = vmatpush2.bf16.msra.mxu1 %v4614_v34  ;;  %3194 = vmatprep.subr.bf16.mxu0 %v4619_v35  ;;  %v2930_v34 = vsel %vm842_vm0, %v2928_v14, %v2929_v15 }
 0x137   : > { %4170 = vmatprep.subr.bf16.mxu1 %v4619_v35  ;;  %v4052_v35 = vld [vmem:[%s4815_s10 + $0x60] sm:$0xfe]  ;;  %v2974_v50 = vpack.c.bf16 %v2930_v34, %v2924_v33 }
 0x139   : > { %3195 = vmatpush2.bf16.msra.mxu0 %v4617_v36 }
 0x13a   : > { %4186 = vmatpush2.bf16.msra.mxu1 %v4617_v36  ;;  %3196 = vmatprep.subr.bf16.mxu0 %v4622_v37  ;;  %v4054_v36 = vld [vmem:[%s4815_s10 + $0x70] sm:$0x1] }
 0x13b   : > { %4171 = vmatprep.subr.bf16.mxu1 %v4622_v37  ;;  %v2948_v37 = vsel %vm842_vm0, %v2946_v19, %v2947_v20  ;;  %v2920_v53 = vrot.slane %v4054_v36, 1 }
 0x13c   : > { %v2978_v52 = vpack.c.bf16 %v2954_v38, %v2948_v37 }
 0x13d   : > { %3197 = vmatpush2.bf16.msra.mxu0 %v4620_v44 }
 0x13e   : > { %4187 = vmatpush2.bf16.msra.mxu1 %v4620_v44  ;;  %3198 = vmatprep.subr.bf16.mxu0 %v4625_v45  ;;  %v4070_v44 = vld [vmem:[%s4815_s10 + $0xf0] sm:$0x1] }
 0x13f   : > { %4172 = vmatprep.subr.bf16.mxu1 %v4625_v45  ;;  %v4072_v45 = vld [vmem:[%s4815_s10 + $0x100] sm:$0xfe]  ;;  %v2944_v59 = vrot.slane %v4070_v44, 1 }
 0x140   : > { %v2949_v60 = vrot.slane %v4072_v45, 1 }
 0x141   : > { %3199 = vmatpush2.bf16.msra.mxu0 %v4623_v51  ;;  %v2945_v5 = vsel %vm842_vm0, %v2943_v58, %v2944_v59 }
 0x142   : > { %4188 = vmatpush2.bf16.msra.mxu1 %v4623_v51  ;;  %3200 = vmatprep.subr.bf16.mxu0 %v4628_v56  ;;  %v2919_v51 = vrot.slane %v4052_v35, 1  ;;  %v2951_v7 = vsel %vm842_vm0, %v2949_v60, %v2950_v63 }
 0x143   : > { %4173 = vmatprep.subr.bf16.mxu1 %v4628_v56  ;;  %v2926_v56 = vrot.slane %v4058_v42, 1  ;;  %v2977_v19 = vpack.c.bf16 %v2951_v7, %v2945_v5 }
 0x144   : > { %v2921_v2 = vsel %vm842_vm0, %v2919_v51, %v2920_v53 }
 0x145   : > { %3201 = vmatpush2.bf16.msra.mxu0 %v4626_v16  ;;  %v2927_v3 = vsel %vm842_vm0, %v2925_v55, %v2926_v56 }
 0x146   : > { %4189 = vmatpush2.bf16.msra.mxu1 %v4626_v16  ;;  %3202 = vmatprep.subr.bf16.mxu0 %v4631_v24  ;;  %v2973_v16 = vpack.c.bf16 %v2927_v3, %v2921_v2 }
 0x147   : > { %4174 = vmatprep.subr.bf16.mxu1 %v4631_v24 }
 0x149   : > { %3203 = vmatpush2.bf16.msra.mxu0 %v4629_v29 }
 0x14a   : > { %4190 = vmatpush2.bf16.msra.mxu1 %v4629_v29 }
 0x14c   : > { %v1142_v0 = vpop.f32.mrf.mxu0  ;;  %3205 = vmatmul.mubr.bf16.vlgmr.msra.gmra.mxu0 %v2971_v47 }
 0x14d   : > { %v1449_v1 = vpop.f32.mrf.mxu1  ;;  %3225 = vmatmul.mubr.bf16.vlgmr.msra.gmra.mxu1 %v2975_v49  ;;  %v1181_v4 = vadd.f32 %v1142_v0, %v5638_v41  ;;  %3214 = vmatprep.mubr.bf16.mxu0 %v2974_v50 }
 0x14e   : > { %3234 = vmatprep.mubr.bf16.mxu1 %v2978_v52  ;;  %v1144_v8 = vpop.f32.mrf.mxu0 }
 0x14f   : > { %v1451_v10 = vpop.f32.mrf.mxu1  ;;  %v5822_v12 = vadd.f32 %v1449_v1, %v1181_v4  ;;  %v1182_v13 = vadd.f32 %v1144_v8, %v5646_v48 }
 0x150   : > { %v1146_v14 = vpop.f32.mrf.mxu0 }
 0x151   : > { %v1453_v15 = vpop.f32.mrf.mxu1  ;;  %v5825_v20 = vadd.f32 %v1451_v10, %v1182_v13  ;;  %v1183_v41 = vadd.f32 %v1146_v14, %v5652_v57 }
 0x152   : > { %v1148_v21 = vpop.f32.mrf.mxu0 }
 0x153   : > { %v1455_v23 = vpop.f32.mrf.mxu1  ;;  %v5828_v24 = vadd.f32 %v1453_v15, %v1183_v41  ;;  %v1184_v25 = vadd.f32 %v1148_v21, %v5660_v62 }
 0x154   : > { %v1152_v28 = vpop.f32.mrf.mxu0  ;;  %3215 = vmatmul.mubr.bf16.gmra.mxu0 %v2973_v16 }
 0x155   : > { %3235 = vmatmul.mubr.bf16.gmra.mxu1 %v2977_v19  ;;  %v1459_v29 = vpop.f32.mrf.mxu1  ;;  %v5831_v30 = vadd.f32 %v1455_v23, %v1184_v25  ;;  %v1185_v48 = vadd.f32 %v1152_v28, %v5672_v9 }
 0x156   : > { %v1154_v32 = vpop.f32.mrf.mxu0 }
 0x157   : > { %v1461_v33 = vpop.f32.mrf.mxu1  ;;  %v1186_v34 = vadd.f32 %v1154_v32, %v5681_v17  ;;  %v5835_v35 = vadd.f32 %v1459_v29, %v1185_v48 }
 0x158   : > { %v1156_v57 = vpop.f32.mrf.mxu0 }
 0x159   : > { %v1463_v36 = vpop.f32.mrf.mxu1  ;;  %v1187_v37 = vadd.f32 %v1156_v57, %v5688_v27  ;;  %v5838_v38 = vadd.f32 %v1461_v33, %v1186_v34 }
 0x15a   : > { %v1158_v62 = vpop.f32.mrf.mxu0 }
 0x15b   : > { %v1465_v40 = vpop.f32.mrf.mxu1  ;;  %v1188_v42 = vadd.f32 %v1158_v62, %v5698_v39  ;;  %v5841_v43 = vadd.f32 %v1463_v36, %v1187_v37 }
 0x15c   : > { %v1162_v44 = vpop.f32.mrf.mxu0 }
 0x15d   : > { %v1469_v9 = vpop.f32.mrf.mxu1  ;;  %v1189_v45 = vadd.f32 %v1162_v44, %v5705_v54  ;;  %v5844_v46 = vadd.f32 %v1465_v40, %v1188_v42 }
 0x15e   : > { %v1164_v17 = vpop.f32.mrf.mxu0 }
 0x15f   : > { %v1471_v47 = vpop.f32.mrf.mxu1  ;;  %v1190_v49 = vadd.f32 %v1164_v17, %v5710_v61  ;;  %v5847_v50 = vadd.f32 %v1469_v9, %v1189_v45 }
 0x160   : > { %v1166_v27 = vpop.f32.mrf.mxu0 }
 0x161   : > { %v1473_v51 = vpop.f32.mrf.mxu1  ;;  %v1191_v52 = vadd.f32 %v1166_v27, %v5719_v6  ;;  %v5850_v53 = vadd.f32 %v1471_v47, %v1190_v49 }
 0x162   : > { %v1168_v39 = vpop.f32.mrf.mxu0 }
 0x163   : > { %v1475_v55 = vpop.f32.mrf.mxu1  ;;  %v1192_v56 = vadd.f32 %v1168_v39, %v5724_v11  ;;  %v5853_v58 = vadd.f32 %v1473_v51, %v1191_v52 }
 0x164   : > { %v1172_v54 = vpop.f32.mrf.mxu0 }
 0x165   : > { %v1479_v59 = vpop.f32.mrf.mxu1  ;;  %v1193_v60 = vadd.f32 %v1172_v54, %v5729_v18  ;;  %v5856_v63 = vadd.f32 %v1475_v55, %v1192_v56 }
 0x166   : > { %v1174_v61 = vpop.f32.mrf.mxu0 }
 0x167   : > { %v1481_v0 = vpop.f32.mrf.mxu1  ;;  %v1194_v1 = vadd.f32 %v1174_v61, %v5734_v22  ;;  %v5859_v2 = vadd.f32 %v1479_v59, %v1193_v60 }
 0x168   : > { %v1176_v6 = vpop.f32.mrf.mxu0 }
 0x169   : > { %v1483_v3 = vpop.f32.mrf.mxu1  ;;  %v1195_v4 = vadd.f32 %v1176_v6, %v5739_v26  ;;  %v5862_v5 = vadd.f32 %v1481_v0, %v1194_v1 }
 0x16a   : > { %v1178_v11 = vpop.f32.mrf.mxu0 }
 0x16b   : > { %v1485_v7 = vpop.f32.mrf.mxu1  ;;  %v1196_v8 = vadd.f32 %v1178_v11, %v5744_v31  ;;  %v5865_v10 = vadd.f32 %v1483_v3, %v1195_v4 }
 0x16d   : > { %v5867_v18 = vadd.f32 %v1485_v7, %v1196_v8 }
 0x18c   : > { %v1756_v13 = vpop.f32.mrf.mxu0 }
 0x18d   : > { %v5869_v14 = vpop.f32.mrf.mxu1 }
 0x18e   : > { %v1758_v22 = vpop.f32.mrf.mxu0 }
 0x18f   : > { %v5871_v15 = vpop.f32.mrf.mxu1 }
 0x190   : > { %v1760_v16 = vpop.f32.mrf.mxu0 }
 0x191   : > { %v5873_v19 = vpop.f32.mrf.mxu1 }
 0x192   : > { %v1762_v26 = vpop.f32.mrf.mxu0 }
 0x193   : > { %v5875_v41 = vpop.f32.mrf.mxu1 }
 0x194   : > { %v1766_v21 = vpop.f32.mrf.mxu0 }
 0x195   : > { %v5877_v23 = vpop.f32.mrf.mxu1 }
 0x196   : > { %v1768_v31 = vpop.f32.mrf.mxu0 }
 0x197   : > { %v5879_v25 = vpop.f32.mrf.mxu1 }
 0x198   : > { %v5881_v28 = vpop.f32.mrf.mxu0 }
 0x199   : > { %v5883_v29 = vpop.f32.mrf.mxu1 }
 0x19a   : > { %v5885_v48 = vpop.f32.mrf.mxu0 }
 0x19b   : > { %v5887_v32 = vpop.f32.mrf.mxu1 }
 0x19c   : > { %v1776_v33 = vpop.f32.mrf.mxu0 }
 0x19d   : > { %v5889_v34 = vpop.f32.mrf.mxu1 }
 0x19e   : > { %v1778_v57 = vpop.f32.mrf.mxu0 }
 0x19f   : > { %v5891_v36 = vpop.f32.mrf.mxu1 }
 0x1a0   : > { %v5893_v37 = vpop.f32.mrf.mxu0 }
 0x1a1   : > { %v5895_v62 = vpop.f32.mrf.mxu1 }
 0x1a2   : > { %v5897_v40 = vpop.f32.mrf.mxu0 }
 0x1a3   : > { %v5899_v42 = vpop.f32.mrf.mxu1 }
 0x1a4   : > { %v5901_v44 = vpop.f32.mrf.mxu0 }
 0x1a5   : > { %v5903_v9 = vpop.f32.mrf.mxu1 }
 0x1a6   : > { %v5905_v45 = vpop.f32.mrf.mxu0 }
 0x1a7   : > { %v5907_v17 = vpop.f32.mrf.mxu1 }
 0x1a8   : > { %6103 = vst [vmem:[#allocation2_spill] sm:$0xff] %v5907_v17  ;;  %v5909_v47 = vpop.f32.mrf.mxu0 }
 0x1a9   : > { %v5911_v49 = vpop.f32.mrf.mxu1 }
 0x1aa   : > { %6104 = vst [vmem:[#allocation3_spill] sm:$0xff] %v5911_v49  ;;  %v5913_v27 = vpop.f32.mrf.mxu0 }
 0x1ab   : > { %v5915_v51 = vpop.f32.mrf.mxu1 }
 0x1ac   : > { %6105 = vst [vmem:[#allocation4_spill] sm:$0xff] %v5915_v51  ;;  %v3263_v51 = vlaneseq }
 0x1cc   : > { %v5917_v52 = vpop.f32.mrf.mxu0 }
 0x1cd   : > { %v5919_v39 = vpop.f32.mrf.mxu1 }
 0x1ce   : > { %6106 = vst [vmem:[#allocation5_spill] sm:$0xff] %v5919_v39  ;;  %v5921_v55 = vpop.f32.mrf.mxu0 }
 0x1cf   : > { %v5923_v56 = vpop.f32.mrf.mxu1 }
 0x1d0   : > { %6107 = vst [vmem:[#allocation6_spill] sm:$0xff] %v5923_v56  ;;  %v5925_v54 = vpop.f32.mrf.mxu0 }
 0x1d1   : > { %v5927_v59 = vpop.f32.mrf.mxu1 }
 0x1d2   : > { %6108 = vst [vmem:[#allocation7_spill] sm:$0xff] %v5927_v59  ;;  %v2487_v60 = vpop.f32.mrf.mxu0 }
 0x1d3   : > { %v5929_v61 = vpop.f32.mrf.mxu1 }
 0x1d4   : > { %6109 = vst [vmem:[#allocation8_spill] sm:$0xff] %v5929_v61  ;;  %v5931_v0 = vpop.f32.mrf.mxu0 }
 0x1d5   : > { %6110 = vst [vmem:[#allocation9_spill] sm:$0xff] %v5931_v0  ;;  %v5933_v1 = vpop.f32.mrf.mxu1 }
 0x1d6   : > { %6111 = vst [vmem:[#allocation10_spill] sm:$0xff] %v5933_v1  ;;  %v5935_v6 = vpop.f32.mrf.mxu0 }
 0x1d7   : > { %6112 = vst [vmem:[#allocation11_spill] sm:$0xff] %v5935_v6  ;;  %v5937_v3 = vpop.f32.mrf.mxu1 }
 0x1d8   : > { %6113 = vst [vmem:[#allocation12_spill] sm:$0xff] %v5937_v3  ;;  %v5939_v4 = vpop.f32.mrf.mxu0  ;;  %v3264_v3 = vshrl.u32 %v3263_v51, 7  ;;  %v3289_v51 = vld [vmem:[%s6101_s3] sm:$0x3] }
 0x1d9   : > { %6114 = vst [vmem:[#allocation13_spill] sm:$0xff] %v5939_v4  ;;  %v5941_v11 = vpop.f32.mrf.mxu1 }
 0x1da   : > { %6115 = vst [vmem:[#allocation14_spill] sm:$0xff] %v5941_v11  ;;  %v5943_v7 = vpop.f32.mrf.mxu0  ;;  %v3265_v11 = vsub.s32 0, %v3264_v3 }
 0x1db   : > { %6116 = vst [vmem:[#allocation15_spill] sm:$0xff] %v5943_v7  ;;  %v5945_v8 = vpop.f32.mrf.mxu1  ;;  %v1795_v7 = vadd.f32 %v1756_v13, %v5822_v12  ;;  %v1799_v12 = vadd.f32 %v1766_v21, %v5835_v35  ;;  %v1807_v21 = vadd.f32 %v5901_v44, %v5859_v2 }
 0x1dc   : > { %6117 = vst [vmem:[#allocation16_spill] sm:$0xff] %v5945_v8  ;;  %v2501_v59 = vpop.f32.mrf.mxu0  ;;  %v3261_v8 = vld [vmem:[%s6100_s2] sm:$0x3] }
 0x1dd   : > { %v5947_v56 = vpop.f32.mrf.mxu1  ;;  %v5972_v13 = vrot.slane %v3261_v8, %v3265_v11 }
 0x1de   : > { %6118 = vst [vmem:[#allocation17_spill] sm:$0xff] %v5947_v56  ;;  %v2503_v61 = vpop.f32.mrf.mxu0  ;;  %v1796_v56 = vadd.f32 %v1758_v22, %v5825_v20  ;;  %v1800_v20 = vadd.f32 %v1768_v31, %v5838_v38  ;;  %v1803_v22 = vadd.f32 %v1776_v33, %v5847_v50  ;;  %v2217_v50 = vadd.f32 %v5877_v23, %v1799_v12 }
 0x1df   : > { %v5949_v39 = vpop.f32.mrf.mxu1  ;;  %v1808_v23 = vadd.f32 %v5905_v45, %v5862_v5  ;;  %v1809_v31 = vadd.f32 %v5909_v47, %v5865_v10  ;;  %v6127_v45 = vld [vmem:[#allocation9_spill] sm:$0xff] }
 0x1e0   : > { %6119 = vst [vmem:[#allocation18_spill] sm:$0xff] %v5949_v39  ;;  %v5951_v1 = vpop.f32.mrf.mxu0  ;;  %v2214_v17 = vadd.f32 %v5871_v15, %v1796_v56  ;;  %v1802_v15 = vadd.f32 %v5885_v48, %v5844_v46  ;;  %v2524_v47 = vadd.f32 %v6127_v45, %v2217_v50 }
 0x1e1   : > { %6120 = vst [vmem:[#allocation19_spill] sm:$0xff] %v5951_v1  ;;  %v5953_v6 = vpop.f32.mrf.mxu1  ;;  %v2213_v1 = vadd.f32 %v5869_v14, %v1795_v7 }
 0x1e2   : > { %6121 = vst [vmem:[#allocation20_spill] sm:$0xff] %v5953_v6  ;;  %v5955_v0 = vpop.f32.mrf.mxu0  ;;  %v3269_v6 = vsub.s32 1, %v3264_v3  ;;  %v1801_v3 = vadd.f32 %v5881_v28, %v5841_v43  ;;  %v1805_v43 = vadd.f32 %v5893_v37, %v5853_v58  ;;  %v6125_v37 = vld [vmem:[#allocation2_spill] sm:$0xff] }
 0x1e3   : > { %6122 = vst [vmem:[#allocation21_spill] sm:$0xff] %v5955_v0  ;;  %v5957_v4 = vpop.f32.mrf.mxu1  ;;  %v1797_v0 = vadd.f32 %v1760_v16, %v5828_v24  ;;  %v1804_v24 = vadd.f32 %v1778_v57, %v5850_v53  ;;  %v1806_v53 = vadd.f32 %v5897_v40, %v5856_v63  ;;  %v1810_v63 = vadd.f32 %v5913_v27, %v5867_v18  ;;  %v6126_v40 = vld [vmem:[#allocation3_spill] sm:$0xff] }
 0x1e4   : > { %6123 = vst [vmem:[#allocation22_spill] sm:$0xff] %v5957_v4  ;;  %v2511_v39 = vpop.f32.mrf.mxu0  ;;  %v1798_v4 = vadd.f32 %v1762_v26, %v5831_v30  ;;  %v5985_v35 = vrot.slane %v3261_v8, %v3269_v6  ;;  %v5990_v26 = vrot.slane %v3289_v51, %v3269_v6  ;;  %v2219_v46 = vadd.f32 %v5883_v29, %v1801_v3 }
 0x1e5   : > { %v5964_v49 = vpop.f32.mrf.mxu1  ;;  %v2215_v14 = vadd.f32 %v5873_v19, %v1797_v0  ;;  %v2218_v19 = vadd.f32 %v5879_v25, %v1800_v20  ;;  %v2222_v58 = vadd.f32 %v5891_v36, %v1804_v24  ;;  %v2520_v28 = vadd.f32 %v5917_v52, %v2213_v1  ;;  %v6133_v1 = vld [vmem:[#allocation7_spill] sm:$0xff]  ;;  %v6135_v7 = vld [vmem:[#allocation17_spill] sm:$0xff] }
 0x1e6   : > { %6124 = vst [vmem:[#allocation23_spill] sm:$0xff] %v5964_v49  ;;  %v5977_v49 = vrot.slane %v3289_v51, %v3265_v11  ;;  %v2513_v30 = vpop.f32.mrf.mxu0  ;;  %v2216_v38 = vadd.f32 %v5875_v41, %v1798_v4  ;;  %v2221_v41 = vadd.f32 %v5889_v34, %v1803_v22  ;;  %v2521_v25 = vadd.f32 %v5921_v55, %v2214_v17  ;;  %v6128_v17 = vld [vmem:[#allocation4_spill] sm:$0xff]  ;;  %v6129_v55 = vld [vmem:[#allocation5_spill] sm:$0xff] }
 0x1e7   : > { %v5983_v16 = vpop.f32.mrf.mxu1  ;;  %v2522_v33 = vadd.f32 %v5925_v54, %v2215_v14  ;;  %v2220_v57 = vadd.f32 %v5887_v32, %v1802_v15  ;;  %v2223_v10 = vadd.f32 %v5895_v62, %v1805_v43  ;;  %v2224_v29 = vadd.f32 %v5899_v42, %v1806_v53  ;;  %v6130_v54 = vld [vmem:[#allocation11_spill] sm:$0xff]  ;;  %v6131_v32 = vld [vmem:[#allocation13_spill] sm:$0xff]  ;;  %v6132_v42 = vld [vmem:[#allocation6_spill] sm:$0xff] }
 0x1e8   : > { %v2515_v2 = vpop.f32.mrf.mxu0  ;;  %v2523_v34 = vadd.f32 %v2487_v60, %v2216_v38  ;;  %v2528_v5 = vadd.f32 %v2501_v59, %v2221_v41  ;;  %v2225_v36 = vadd.f32 %v5903_v9, %v1807_v21  ;;  %v2226_v18 = vadd.f32 %v6125_v37, %v1808_v23  ;;  %v6134_v4 = vld [vmem:[#allocation8_spill] sm:$0xff]  ;;  %v6138_v38 = vld [vmem:[#allocation10_spill] sm:$0xff]  ;;  %v6141_v23 = vld [vmem:[#allocation15_spill] sm:$0xff] }
 0x1e9   : > { %v2822_v48 = vpop.f32.mrf.mxu1  ;;  %v2227_v44 = vadd.f32 %v6126_v40, %v1809_v31  ;;  %v2529_v27 = vadd.f32 %v2503_v61, %v2222_v58  ;;  %v2228_v52 = vadd.f32 %v6128_v17, %v1810_v63  ;;  %v2827_v56 = vadd.f32 %v6129_v55, %v2520_v28  ;;  %v6136_v61 = vld [vmem:[#allocation19_spill] sm:$0xff]  ;;  %v6139_v15 = vld [vmem:[#allocation18_spill] sm:$0xff] }
 0x1ea   : > { %v2525_v59 = vadd.f32 %v6130_v54, %v2218_v19  ;;  %v2526_v60 = vadd.f32 %v6131_v32, %v2219_v46  ;;  %v2517_v62 = vpop.f32.mrf.mxu0  ;;  %v2828_v9 = vadd.f32 %v6132_v42, %v2521_v25  ;;  %v2829_v6 = vadd.f32 %v6133_v1, %v2522_v33  ;;  %v6137_v12 = vld [vmem:[#allocation21_spill] sm:$0xff]  ;;  %v6140_v19 = vld [vmem:[#allocation12_spill] sm:$0xff]  ;;  %v6142_v46 = vld [vmem:[#allocation14_spill] sm:$0xff] }
 0x1eb   : > { %v6024_v0 = vpop.f32.mrf.mxu1  ;;  %v2830_v11 = vadd.f32 %v6134_v4, %v2523_v34  ;;  %v2835_v8 = vadd.f32 %v6135_v7, %v2528_v5  ;;  %v2530_v51 = vadd.f32 %v6136_v61, %v2223_v10  ;;  %v2531_v20 = vadd.f32 %v6137_v12, %v2224_v29  ;;  %v6143_v5 = vld [vmem:[#allocation20_spill] sm:$0xff]  ;;  %v6144_v29 = vld [vmem:[#allocation22_spill] sm:$0xff] }
 0x1ec   : > { %v2532_v22 = vadd.f32 %v2511_v39, %v2225_v36  ;;  %v2533_v3 = vadd.f32 %v2513_v30, %v2226_v18  ;;  %v2831_v50 = vadd.f32 %v6138_v38, %v2524_v47  ;;  %v2836_v43 = vadd.f32 %v6139_v15, %v2529_v27 }
 0x1ed   : > { %v2832_v41 = vadd.f32 %v6140_v19, %v2525_v59  ;;  %v6036_v31 = vadd.f32 %v6141_v23, %v2220_v57  ;;  %v6039_v58 = vadd.f32 %v6142_v46, %v2526_v60  ;;  %v2534_v63 = vadd.f32 %v2515_v2, %v2227_v44  ;;  %v6145_v37 = vld [vmem:[#allocation23_spill] sm:$0xff] }
 0x1ee   : > { %v2837_v10 = vadd.f32 %v6143_v5, %v2530_v51  ;;  %v2838_v36 = vadd.f32 %v6144_v29, %v2531_v20  ;;  %v2839_v18 = vadd.f32 %v6145_v37, %v2532_v22  ;;  %v2840_v57 = vadd.f32 %v5983_v16, %v2533_v3 }
 0x1ef   : > { %v2535_v17 = vadd.f32 %v2517_v62, %v2228_v52  ;;  %v2841_v55 = vadd.f32 %v2822_v48, %v2534_v63 }
 0x20c   : > { %v3206_v24 = vpop.f32.mrf.mxu0 }
 0x20d   : > { %v3226_v14 = vpop.f32.mrf.mxu1  ;;  %v3245_v53 = vadd.f32 %v3206_v24, %v2827_v56 }
 0x20e   : > { %v3253_v21 = vadd.f32 %v3226_v14, %v2835_v8  ;;  %v3208_v28 = vpop.f32.mrf.mxu0 }
 0x20f   : > { %v3228_v39 = vpop.f32.mrf.mxu1  ;;  %v3273_v30 = vmul.f32 %v5972_v13, %v3245_v53  ;;  %v3246_v33 = vadd.f32 %v3208_v28, %v2828_v9 }
 0x210   : > { %v3281_v25 = vmul.f32 %v5972_v13, %v3253_v21  ;;  %v3254_v34 = vadd.f32 %v3228_v39, %v2836_v43  ;;  %v3210_v40 = vpop.f32.mrf.mxu0 }
 0x211   : > { %v3230_v45 = vpop.f32.mrf.mxu1  ;;  %v3301_v2 = vadd.f32 %v5977_v49, %v3273_v30  ;;  %v3274_v47 = vmul.f32 %v5985_v35, %v3246_v33  ;;  %v3247_v56 = vadd.f32 %v3210_v40, %v2829_v6 }
 0x212   : > { %v3309_v44 = vadd.f32 %v5977_v49, %v3281_v25  ;;  %v3282_v27 = vmul.f32 %v5985_v35, %v3254_v34  ;;  %v3255_v54 = vadd.f32 %v3230_v45, %v2837_v10  ;;  %v3212_v59 = vpop.f32.mrf.mxu0 }
 0x213   : > { %v3232_v32 = vpop.f32.mrf.mxu1  ;;  %v3317_v60 = vmax.f32 %v3301_v2, 0.0  ;;  %v3302_v16 = vadd.f32 %v5990_v26, %v3274_v47  ;;  %v3275_v1 = vmul.f32 %v5972_v13, %v3247_v56  ;;  %v3248_v7 = vadd.f32 %v3212_v59, %v2830_v11 }
 0x214   : > { %v3325_v42 = vmax.f32 %v3309_v44, 0.0  ;;  %v3310_v9 = vadd.f32 %v5990_v26, %v3282_v27  ;;  %v3283_v4 = vmul.f32 %v5972_v13, %v3255_v54  ;;  %v3256_v8 = vadd.f32 %v3232_v32, %v2838_v36  ;;  %v3216_v61 = vpop.f32.mrf.mxu0  ;;  %v6146_v36 = vld [vmem:[#allocation16_spill] sm:$0xff] }
 0x215   : > { %v3236_v52 = vpop.f32.mrf.mxu1  ;;  %v3318_v48 = vmax.f32 %v3302_v16, 0.0  ;;  %v3249_v6 = vadd.f32 %v3216_v61, %v2831_v50  ;;  %v3303_v12 = vadd.f32 %v5977_v49, %v3275_v1  ;;  %v3276_v11 = vmul.f32 %v5985_v35, %v3248_v7 }
 0x216   : > { %v3326_v62 = vmax.f32 %v3310_v9, 0.0  ;;  %v3257_v51 = vadd.f32 %v3236_v52, %v2839_v18  ;;  %v3311_v20 = vadd.f32 %v5977_v49, %v3283_v4  ;;  %v3284_v22 = vmul.f32 %v5985_v35, %v3256_v8  ;;  %v3218_v3 = vpop.f32.mrf.mxu0 }
 0x217   : > { %v3238_v24 = vpop.f32.mrf.mxu1  ;;  %v4151_v14 = vpack.c.bf16 %v3318_v48, %v3317_v60  ;;  %v3277_v50 = vmul.f32 %v5972_v13, %v3249_v6  ;;  %v3319_v43 = vmax.f32 %v3303_v12, 0.0  ;;  %v3304_v21 = vadd.f32 %v5990_v26, %v3276_v11 }
 0x218   : > { %v4155_v38 = vpack.c.bf16 %v3326_v62, %v3325_v42  ;;  %v3285_v15 = vmul.f32 %v5972_v13, %v3257_v51  ;;  %v3327_v53 = vmax.f32 %v3311_v20, 0.0  ;;  %v3312_v19 = vadd.f32 %v5990_v26, %v3284_v22  ;;  %v3220_v23 = vpop.f32.mrf.mxu0 }
 0x219   : > { %v3240_v46 = vpop.f32.mrf.mxu1  ;;  %3381 = vst [vmem:[%s6059_s16] sm:$0xff] %v4151_v14  ;;  %v3305_v63 = vadd.f32 %v5977_v49, %v3277_v50  ;;  %v3250_v39 = vadd.f32 %v3218_v3, %v2832_v41  ;;  %v3258_v30 = vadd.f32 %v3238_v24, %v2840_v57  ;;  %v3320_v25 = vmax.f32 %v3304_v21, 0.0 }
 0x21a   : > { %3385 = vst [vmem:[%s6059_s16 + $0x20] sm:$0xff] %v4155_v38  ;;  %v3313_v28 = vadd.f32 %v5977_v49, %v3285_v15  ;;  %v3328_v33 = vmax.f32 %v3312_v19, 0.0  ;;  %v3251_v34 = vadd.f32 %v3220_v23, %v6039_v58  ;;  %v3259_v5 = vadd.f32 %v3240_v46, %v2841_v55  ;;  %v3222_v10 = vpop.f32.mrf.mxu0 }
 0x21b   : > { %v3242_v29 = vpop.f32.mrf.mxu1  ;;  %v2834_v37 = vadd.f32 %v6146_v36, %v6036_v31  ;;  %v2842_v18 = vadd.f32 %v6024_v0, %v2535_v17  ;;  %v3278_v40 = vmul.f32 %v5985_v35, %v3250_v39  ;;  %v3286_v45 = vmul.f32 %v5985_v35, %v3258_v30 }
 0x21c   : > { %v4152_v41 = vpack.c.bf16 %v3320_v25, %v3319_v43  ;;  %v4156_v57 = vpack.c.bf16 %v3328_v33, %v3327_v53  ;;  %v3279_v2 = vmul.f32 %v5972_v13, %v3251_v34  ;;  %v3287_v58 = vmul.f32 %v5972_v13, %v3259_v5 }
 0x21d   : > { %v3306_v44 = vadd.f32 %v5990_v26, %v3278_v40  ;;  %v3314_v47 = vadd.f32 %v5990_v26, %v3286_v45  ;;  %v3252_v27 = vadd.f32 %v3222_v10, %v2834_v37  ;;  %v3260_v55 = vadd.f32 %v3242_v29, %v2842_v18 }
 0x21e   : > { %3382 = vst [vmem:[%s6059_s16 + $0x8] sm:$0xff] %v4152_v41  ;;  %3386 = vst [vmem:[%s6059_s16 + $0x28] sm:$0xff] %v4156_v57  ;;  %v3321_v0 = vmax.f32 %v3305_v63, 0.0  ;;  %v3329_v31 = vmax.f32 %v3313_v28, 0.0  ;;  %v3307_v17 = vadd.f32 %v5977_v49, %v3279_v2  ;;  %v3315_v56 = vadd.f32 %v5977_v49, %v3287_v58 }
 0x21f   : > { %v3322_v54 = vmax.f32 %v3306_v44, 0.0  ;;  %v3330_v59 = vmax.f32 %v3314_v47, 0.0  ;;  %v3280_v13 = vmul.f32 %v5985_v35, %v3252_v27  ;;  %v3288_v32 = vmul.f32 %v5985_v35, %v3260_v55 }
 0x220   : > { %v3323_v1 = vmax.f32 %v3307_v17, 0.0  ;;  %v3331_v4 = vmax.f32 %v3315_v56, 0.0 }
 0x221   : > { %v4153_v60 = vpack.c.bf16 %v3322_v54, %v3321_v0  ;;  %v4157_v42 = vpack.c.bf16 %v3330_v59, %v3329_v31  ;;  %v3308_v16 = vadd.f32 %v5990_v26, %v3280_v13  ;;  %v3316_v9 = vadd.f32 %v5990_v26, %v3288_v32 }
 0x223   : > { %3383 = vst [vmem:[%s6059_s16 + $0x10] sm:$0xff] %v4153_v60  ;;  %3387 = vst [vmem:[%s6059_s16 + $0x30] sm:$0xff] %v4157_v42  ;;  %v3324_v7 = vmax.f32 %v3308_v16, 0.0  ;;  %v3332_v49 = vmax.f32 %v3316_v9, 0.0 }
 0x225   : > { %v4154_v8 = vpack.c.bf16 %v3324_v7, %v3323_v1  ;;  %v4158_v61 = vpack.c.bf16 %v3332_v49, %v3331_v4 }
 0x227   : > { %3384 = vst [vmem:[%s6059_s16 + $0x18] sm:$0xff] %v4154_v8  ;;  %3388 = vst [vmem:[%s6059_s16 + $0x38] sm:$0xff] %v4158_v61 }
 0x228 PF: > { %s14_s15 = sadd.s32 1, %s4638_s15  }
 0x229   : > { %p11_p4 = scmp.ge.s32.totalorder %s14_s15, 4  }
 0x22b   :  { %13 = sbr.rel (!%p11_p4) target bundleno = 1 (0x1), region = 79 }

// kernel: feature_net.6
= control target key start
LH: loop header
LB: loop body
LE: loop exit
PB: predicated region body
PF: predicated region fallthrough
CT: control target
= control target key end

     0   :  { %s3348_s15 = smov 0   ;;  %s4263_s0 = inlined_call_operand.vmem [shape: bf16[2,16,2304], index: 0, kind: input, shape index: {}]   ;;  %s4264_s1 = inlined_call_operand.vmem [shape: bf16[2304,256], index: 1, kind: input, shape index: {}]   ;;  %s4265_s2 = inlined_call_operand.vmem [shape: f32[1,256], index: 2, kind: input, shape index: {}]   ;;  %s4266_s3 = inlined_call_operand.vmem [shape: f32[1,256], index: 3, kind: input, shape index: {}]   ;;  %s4267_s4 = inlined_call_operand.vmem [shape: bf16[2,16,256], index: 4, kind: output, shape index: {}]  }
   0x1 LB: > { %s2526_s16 = sadd.s32 4294967295, %s3321_s15   ;;  %p2530_p0 = scmp.ge.s32.totalorder %s3321_s15, 1  ;;  %s3321_s15 = sphi %s3348_s15, %s14_s15  }
   0x2   : > { %p162_p1 = scmp.lt.s32.totalorder %s3321_s15, 3 }
   0x4   : > { %p163_p2 = pnand %p2530_p0, %p162_p1 }
   0x5   : > { %p188_p3 = scmp.lt.s32.totalorder (!%p163_p2), %s2526_s16, 1 }
   0x6   : > { %166 = sbr.rel (%p163_p2) target bundleno = 542 (0x21e), region = 36 }
   0xb   : > { %v2856_v0 = vld [vmem:[%s4264_s1 + $0x74] ss:$8 sps:$4 sm:$0xff]   ;;  %v2860_v2 = vld [vmem:[%s4264_s1 + $0x70] ss:$8 sps:$4 sm:$0xff]   ;;  %v2862_v4 = vld [vmem:[%s4264_s1 + $0x64] ss:$8 sps:$4 sm:$0xff]  }
   0xc   : > { %v2858_v1 = vld [vmem:[%s4264_s1 + $0x174] ss:$8 sps:$4 sm:$0xff]   ;;  %2034 = vmatprep.subr.bf16.mxu0 %v2856_v0  ;;  %v2861_v3 = vld [vmem:[%s4264_s1 + $0x170] ss:$8 sps:$4 sm:$0xff]   ;;  %v2864_v5 = vld [vmem:[%s4264_s1 + $0x164] ss:$8 sps:$4 sm:$0xff]  }
   0xd   : > { %2077 = vmatprep.subr.bf16.mxu1 %v2858_v1  ;;  %2035 = vmatpush1.bf16.msra.mxu0 %v2860_v2  ;;  %v2866_v6 = vld [vmem:[%s4264_s1 + $0x60] ss:$8 sps:$4 sm:$0xff]   ;;  %v2868_v8 = vld [vmem:[%s4264_s1 + $0x54] ss:$8 sps:$4 sm:$0xff]   ;;  %v2872_v10 = vld [vmem:[%s4264_s1 + $0x50] ss:$8 sps:$4 sm:$0xff]  }
   0xe   : > { %2078 = vmatpush1.bf16.msra.mxu1 %v2861_v3  ;;  %2036 = vmatprep.subr.bf16.mxu0 %v2862_v4  ;;  %v2867_v7 = vld [vmem:[%s4264_s1 + $0x160] ss:$8 sps:$4 sm:$0xff]   ;;  %v2870_v9 = vld [vmem:[%s4264_s1 + $0x154] ss:$8 sps:$4 sm:$0xff]   ;;  %v2873_v11 = vld [vmem:[%s4264_s1 + $0x150] ss:$8 sps:$4 sm:$0xff]  }
   0xf   : > { %2079 = vmatprep.subr.bf16.mxu1 %v2864_v5  ;;  %v2874_v12 = vld [vmem:[%s4264_s1 + $0x44] ss:$8 sps:$4 sm:$0xff]   ;;  %v2878_v14 = vld [vmem:[%s4264_s1 + $0x40] ss:$8 sps:$4 sm:$0xff]   ;;  %v2880_v16 = vld [vmem:[%s4264_s1 + $0x34] ss:$8 sps:$4 sm:$0xff]  }
  0x10   : > { %v2876_v13 = vld [vmem:[%s4264_s1 + $0x144] ss:$8 sps:$4 sm:$0xff]   ;;  %v2879_v15 = vld [vmem:[%s4264_s1 + $0x140] ss:$8 sps:$4 sm:$0xff]   ;;  %v2882_v17 = vld [vmem:[%s4264_s1 + $0x134] ss:$8 sps:$4 sm:$0xff]  }
  0x11   : > { %2037 = vmatpush1.bf16.msra.mxu0 %v2866_v6  ;;  %v2884_v18 = vld [vmem:[%s4264_s1 + $0x30] ss:$8 sps:$4 sm:$0xff]   ;;  %v2886_v20 = vld [vmem:[%s4264_s1 + $0x24] ss:$8 sps:$4 sm:$0xff]   ;;  %v2890_v22 = vld [vmem:[%s4264_s1 + $0x20] ss:$8 sps:$4 sm:$0xff]  }
  0x12   : > { %2080 = vmatpush1.bf16.msra.mxu1 %v2867_v7  ;;  %2038 = vmatprep.subr.bf16.mxu0 %v2868_v8  ;;  %v2885_v19 = vld [vmem:[%s4264_s1 + $0x130] ss:$8 sps:$4 sm:$0xff]   ;;  %v2888_v21 = vld [vmem:[%s4264_s1 + $0x124] ss:$8 sps:$4 sm:$0xff]   ;;  %v2891_v23 = vld [vmem:[%s4264_s1 + $0x120] ss:$8 sps:$4 sm:$0xff]  }
  0x13   : > { %2081 = vmatprep.subr.bf16.mxu1 %v2870_v9  ;;  %v2892_v24 = vld [vmem:[%s4264_s1 + $0x14] ss:$8 sps:$4 sm:$0xff]   ;;  %v2896_v26 = vld [vmem:[%s4264_s1 + $0x10] ss:$8 sps:$4 sm:$0xff]   ;;  %v2898_v28 = vld [vmem:[%s4264_s1 + $0x4] ss:$8 sps:$4 sm:$0xff]  }
  0x14   : > { %v2894_v25 = vld [vmem:[%s4264_s1 + $0x114] ss:$8 sps:$4 sm:$0xff]   ;;  %v2897_v27 = vld [vmem:[%s4264_s1 + $0x110] ss:$8 sps:$4 sm:$0xff]   ;;  %v2900_v29 = vld [vmem:[%s4264_s1 + $0x104] ss:$8 sps:$4 sm:$0xff]  }
  0x15   : > { %2039 = vmatpush1.bf16.msra.mxu0 %v2872_v10  ;;  %v2902_v30 = vld [vmem:[%s4264_s1] ss:$8 sps:$4 sm:$0xff]   ;;  %v2904_v32 = vld [vmem:[%s4264_s1 + $0xf4] ss:$8 sps:$4 sm:$0xff]   ;;  %v2908_v34 = vld [vmem:[%s4264_s1 + $0xf0] ss:$8 sps:$4 sm:$0xff]  }
  0x16   : > { %2082 = vmatpush1.bf16.msra.mxu1 %v2873_v11  ;;  %2040 = vmatprep.subr.bf16.mxu0 %v2874_v12  ;;  %v2903_v31 = vld [vmem:[%s4264_s1 + $0x100] ss:$8 sps:$4 sm:$0xff]   ;;  %v2906_v33 = vld [vmem:[%s4264_s1 + $0x1f4] ss:$8 sps:$4 sm:$0xff]   ;;  %v2909_v35 = vld [vmem:[%s4264_s1 + $0x1f0] ss:$8 sps:$4 sm:$0xff]  }
  0x17   : > { %2083 = vmatprep.subr.bf16.mxu1 %v2876_v13  ;;  %v2910_v36 = vld [vmem:[%s4264_s1 + $0xe4] ss:$8 sps:$4 sm:$0xff]   ;;  %s4269_s16 = smov (!%p188_p3, %s2526_s16), 1  ;;  %v2914_v38 = vld [vmem:[%s4264_s1 + $0xe0] ss:$8 sps:$4 sm:$0xff]  }
  0x18   : > { %v2912_v37 = vld [vmem:[%s4264_s1 + $0x1e4] ss:$8 sps:$4 sm:$0xff]   ;;  %v2915_v39 = vld [vmem:[%s4264_s1 + $0x1e0] ss:$8 sps:$4 sm:$0xff]   ;;  %v2916_v40 = vld [vmem:[%s4264_s1 + $0xd4] ss:$8 sps:$4 sm:$0xff]  }
  0x19   : > { %2041 = vmatpush1.bf16.msra.mxu0 %v2878_v14  ;;  %s2847_s27 = smul.u32 144, %s4269_s16  ;;  %v2918_v41 = vld [vmem:[%s4264_s1 + $0x1d4] ss:$8 sps:$4 sm:$0xff]   ;;  %v2920_v42 = vld [vmem:[%s4264_s1 + $0xd0] ss:$8 sps:$4 sm:$0xff]   ;;  %s2844_s21 = sshll.u32 %s4269_s16, 4 }
  0x1a   : > { %2084 = vmatpush1.bf16.msra.mxu1 %v2879_v15  ;;  %2042 = vmatprep.subr.bf16.mxu0 %v2880_v16  ;;  %v2921_v43 = vld [vmem:[%s4264_s1 + $0x1d0] ss:$8 sps:$4 sm:$0xff]   ;;  %v2922_v44 = vld [vmem:[%s4264_s1 + $0xc4] ss:$8 sps:$4 sm:$0xff]   ;;  %v2926_v46 = vld [vmem:[%s4264_s1 + $0xc0] ss:$8 sps:$4 sm:$0xff]   ;;  %s197_s24 = scalar_lea.vmem %s4267_s4, %s2844_s21 }
  0x1b   : > { %2085 = vmatprep.subr.bf16.mxu1 %v2882_v17  ;;  %s3501_s12 = scalar_lea.vmem %s4263_s0, %s2847_s27  ;;  %v2924_v45 = vld [vmem:[%s4264_s1 + $0x1c4] ss:$8 sps:$4 sm:$0xff]   ;;  %v2927_v47 = vld [vmem:[%s4264_s1 + $0x1c0] ss:$8 sps:$4 sm:$0xff]   ;;  %v2928_v48 = vld [vmem:[%s4264_s1 + $0xb4] ss:$8 sps:$4 sm:$0xff]  }
  0x1c   : > { %v2954_v49 = vld [vmem:[%s3501_s12 + $0x4] ss:$72 sps:$4 sm:$0xff]   ;;  %v2930_v50 = vld [vmem:[%s4264_s1 + $0x1b4] ss:$8 sps:$4 sm:$0xff]   ;;  %v2932_v52 = vld [vmem:[%s4264_s1 + $0xb0] ss:$8 sps:$4 sm:$0xff]  }
  0x1d   : > { %2043 = vmatpush1.bf16.msra.mxu0 %v2884_v18  ;;  %v2957_v51 = vld [vmem:[%s3501_s12 + $0xc] ss:$72 sps:$4 sm:$0xff]   ;;  %2066 = vmatprep.mubr.bf16.mxu0 %v2954_v49  ;;  %v2933_v53 = vld [vmem:[%s4264_s1 + $0x1b0] ss:$8 sps:$4 sm:$0xff]   ;;  %v2938_v56 = vld [vmem:[%s4264_s1 + $0xa0] ss:$8 sps:$4 sm:$0xff]  }
  0x1e   : > { %2086 = vmatpush1.bf16.msra.mxu1 %v2885_v19  ;;  %2044 = vmatprep.subr.bf16.mxu0 %v2886_v20  ;;  %v2934_v54 = vld [vmem:[%s4264_s1 + $0xa4] ss:$8 sps:$4 sm:$0xff]   ;;  %v2939_v57 = vld [vmem:[%s4264_s1 + $0x1a0] ss:$8 sps:$4 sm:$0xff]   ;;  %v2940_v58 = vld [vmem:[%s4264_s1 + $0x94] ss:$8 sps:$4 sm:$0xff]  }
  0x1f   : > { %2087 = vmatprep.subr.bf16.mxu1 %v2888_v21  ;;  %2109 = vmatprep.mubr.bf16.mxu1 %v2957_v51  ;;  %v2936_v55 = vld [vmem:[%s4264_s1 + $0x1a4] ss:$8 sps:$4 sm:$0xff]   ;;  %v2942_v59 = vld [vmem:[%s4264_s1 + $0x194] ss:$8 sps:$4 sm:$0xff]   ;;  %v2944_v60 = vld [vmem:[%s4264_s1 + $0x90] ss:$8 sps:$4 sm:$0xff]  }
  0x20   : > { %v2945_v61 = vld [vmem:[%s4264_s1 + $0x190] ss:$8 sps:$4 sm:$0xff]   ;;  %v2946_v62 = vld [vmem:[%s4264_s1 + $0x84] ss:$8 sps:$4 sm:$0xff]   ;;  %v2950_v0 = vld [vmem:[%s4264_s1 + $0x80] ss:$8 sps:$4 sm:$0xff]  }
  0x21   : > { %2045 = vmatpush1.bf16.msra.mxu0 %v2890_v22  ;;  %v2948_v63 = vld [vmem:[%s4264_s1 + $0x184] ss:$8 sps:$4 sm:$0xff]   ;;  %v2951_v1 = vld [vmem:[%s4264_s1 + $0x180] ss:$8 sps:$4 sm:$0xff]   ;;  %v2960_v2 = vld [vmem:[%s4264_s1 + $0x274] ss:$8 sps:$4 sm:$0xff]  }
  0x22   : > { %2088 = vmatpush1.bf16.msra.mxu1 %v2891_v23  ;;  %2046 = vmatprep.subr.bf16.mxu0 %v2892_v24  ;;  %v2963_v3 = vld [vmem:[%s4264_s1 + $0x374] ss:$8 sps:$4 sm:$0xff]   ;;  %v2952_v4 = vld [vmem:[%s3501_s12] ss:$72 sps:$4 sm:$0xff]   ;;  %v2958_v6 = vld [vmem:[%s4264_s1 + $0x270] ss:$8 sps:$4 sm:$0xff]  }
  0x23   : > { %2089 = vmatprep.subr.bf16.mxu1 %v2894_v25  ;;  %v2955_v5 = vld [vmem:[%s3501_s12 + $0x8] ss:$72 sps:$4 sm:$0xff]   ;;  %v2966_v8 = vld [vmem:[%s4264_s1 + $0x264] ss:$8 sps:$4 sm:$0xff]   ;;  %v2972_v12 = vld [vmem:[%s4264_s1 + $0x254] ss:$8 sps:$4 sm:$0xff]  }
  0x24   : > { %v2961_v7 = vld [vmem:[%s4264_s1 + $0x370] ss:$8 sps:$4 sm:$0xff]   ;;  %v2969_v9 = vld [vmem:[%s4264_s1 + $0x364] ss:$8 sps:$4 sm:$0xff]   ;;  %v2964_v10 = vld [vmem:[%s4264_s1 + $0x260] ss:$8 sps:$4 sm:$0xff]  }
  0x25   : > { %2047 = vmatpush1.bf16.msra.mxu0 %v2896_v26  ;;  %v2967_v11 = vld [vmem:[%s4264_s1 + $0x360] ss:$8 sps:$4 sm:$0xff]   ;;  %v2975_v13 = vld [vmem:[%s4264_s1 + $0x354] ss:$8 sps:$4 sm:$0xff]   ;;  %v2970_v14 = vld [vmem:[%s4264_s1 + $0x250] ss:$8 sps:$4 sm:$0xff]  }
  0x26   : > { %2090 = vmatpush1.bf16.msra.mxu1 %v2897_v27  ;;  %2048 = vmatprep.subr.bf16.mxu0 %v2898_v28  ;;  %v2973_v15 = vld [vmem:[%s4264_s1 + $0x350] ss:$8 sps:$4 sm:$0xff]   ;;  %v2978_v16 = vld [vmem:[%s4264_s1 + $0x244] ss:$8 sps:$4 sm:$0xff]   ;;  %v2976_v18 = vld [vmem:[%s4264_s1 + $0x240] ss:$8 sps:$4 sm:$0xff]  }
  0x27   : > { %2091 = vmatprep.subr.bf16.mxu1 %v2900_v29  ;;  %v2981_v17 = vld [vmem:[%s4264_s1 + $0x344] ss:$8 sps:$4 sm:$0xff]   ;;  %v2979_v19 = vld [vmem:[%s4264_s1 + $0x340] ss:$8 sps:$4 sm:$0xff]   ;;  %v2984_v20 = vld [vmem:[%s4264_s1 + $0x234] ss:$8 sps:$4 sm:$0xff]  }
  0x28   : > { %v2987_v21 = vld [vmem:[%s4264_s1 + $0x334] ss:$8 sps:$4 sm:$0xff]   ;;  %v2982_v22 = vld [vmem:[%s4264_s1 + $0x230] ss:$8 sps:$4 sm:$0xff]   ;;  %v2990_v24 = vld [vmem:[%s4264_s1 + $0x224] ss:$8 sps:$4 sm:$0xff]  }
  0x29   : > { %2049 = vmatpush1.bf16.msra.mxu0 %v2902_v30  ;;  %v2985_v23 = vld [vmem:[%s4264_s1 + $0x330] ss:$8 sps:$4 sm:$0xff]   ;;  %v2993_v25 = vld [vmem:[%s4264_s1 + $0x324] ss:$8 sps:$4 sm:$0xff]   ;;  %v2988_v26 = vld [vmem:[%s4264_s1 + $0x220] ss:$8 sps:$4 sm:$0xff]  }
  0x2a   : > { %2092 = vmatpush1.bf16.msra.mxu1 %v2903_v31  ;;  %2050 = vmatprep.subr.bf16.mxu0 %v2904_v32  ;;  %v2991_v27 = vld [vmem:[%s4264_s1 + $0x320] ss:$8 sps:$4 sm:$0xff]   ;;  %v2996_v28 = vld [vmem:[%s4264_s1 + $0x214] ss:$8 sps:$4 sm:$0xff]   ;;  %v2994_v30 = vld [vmem:[%s4264_s1 + $0x210] ss:$8 sps:$4 sm:$0xff]  }
  0x2b   : > { %2093 = vmatprep.subr.bf16.mxu1 %v2906_v33  ;;  %v2999_v29 = vld [vmem:[%s4264_s1 + $0x314] ss:$8 sps:$4 sm:$0xff]   ;;  %v2997_v31 = vld [vmem:[%s4264_s1 + $0x310] ss:$8 sps:$4 sm:$0xff]   ;;  %v3002_v32 = vld [vmem:[%s4264_s1 + $0x204] ss:$8 sps:$4 sm:$0xff]  }
  0x2c   : > { %v3005_v33 = vld [vmem:[%s4264_s1 + $0x304] ss:$8 sps:$4 sm:$0xff]   ;;  %v3021_v49 = vld [vmem:[%s4264_s1 + $0x3d0] ss:$8 sps:$4 sm:$0xff]  }
  0x2d   : > { %2051 = vmatpush2.bf16.msra.mxu0 %v2908_v34  ;;  %v3056_v34 = vld [vmem:[%s3501_s12 + $0x14] ss:$72 sps:$4 sm:$0xff]   ;;  %v3029_v51 = vld [vmem:[%s4264_s1 + $0x3c4] ss:$8 sps:$4 sm:$0xff]  }
  0x2e   : > { %2094 = vmatpush2.bf16.msra.mxu1 %v2909_v35  ;;  %2052 = vmatprep.subr.bf16.mxu0 %v2910_v36  ;;  %v3000_v35 = vld [vmem:[%s4264_s1 + $0x200] ss:$8 sps:$4 sm:$0xff]  }
  0x2f   : > { %2095 = vmatprep.subr.bf16.mxu1 %v2912_v37  ;;  %v3003_v36 = vld [vmem:[%s4264_s1 + $0x300] ss:$8 sps:$4 sm:$0xff]   ;;  %v3062_v37 = vld [vmem:[%s3501_s12 + $0x1c] ss:$72 sps:$4 sm:$0xff]  }
  0x31   : > { %2053 = vmatpush2.bf16.msra.mxu0 %v2914_v38  ;;  %v3008_v38 = vld [vmem:[%s4264_s1 + $0x2f4] ss:$8 sps:$4 sm:$0xff]  }
  0x32   : > { %2096 = vmatpush2.bf16.msra.mxu1 %v2915_v39  ;;  %2054 = vmatprep.subr.bf16.mxu0 %v2916_v40  ;;  %v3011_v39 = vld [vmem:[%s4264_s1 + $0x3f4] ss:$8 sps:$4 sm:$0xff]   ;;  %v3006_v40 = vld [vmem:[%s4264_s1 + $0x2f0] ss:$8 sps:$4 sm:$0xff]  }
  0x33   : > { %2097 = vmatprep.subr.bf16.mxu1 %v2918_v41  ;;  %v3009_v41 = vld [vmem:[%s4264_s1 + $0x3f0] ss:$8 sps:$4 sm:$0xff]  }
  0x35   : > { %2055 = vmatpush2.bf16.msra.mxu0 %v2920_v42  ;;  %v3014_v42 = vld [vmem:[%s4264_s1 + $0x2e4] ss:$8 sps:$4 sm:$0xff]  }
  0x36   : > { %2098 = vmatpush2.bf16.msra.mxu1 %v2921_v43  ;;  %2056 = vmatprep.subr.bf16.mxu0 %v2922_v44  ;;  %v3017_v43 = vld [vmem:[%s4264_s1 + $0x3e4] ss:$8 sps:$4 sm:$0xff]   ;;  %v3012_v44 = vld [vmem:[%s4264_s1 + $0x2e0] ss:$8 sps:$4 sm:$0xff]  }
  0x37   : > { %2099 = vmatprep.subr.bf16.mxu1 %v2924_v45  ;;  %v3015_v45 = vld [vmem:[%s4264_s1 + $0x3e0] ss:$8 sps:$4 sm:$0xff]  }
  0x39   : > { %2057 = vmatpush2.bf16.msra.mxu0 %v2926_v46  ;;  %v3020_v46 = vld [vmem:[%s4264_s1 + $0x2d4] ss:$8 sps:$4 sm:$0xff]  }
  0x3a   : > { %2100 = vmatpush2.bf16.msra.mxu1 %v2927_v47  ;;  %2058 = vmatprep.subr.bf16.mxu0 %v2928_v48  ;;  %v3023_v47 = vld [vmem:[%s4264_s1 + $0x3d4] ss:$8 sps:$4 sm:$0xff]   ;;  %v3018_v48 = vld [vmem:[%s4264_s1 + $0x2d0] ss:$8 sps:$4 sm:$0xff]  }
  0x3b   : > { %2101 = vmatprep.subr.bf16.mxu1 %v2930_v50  ;;  %v3026_v50 = vld [vmem:[%s4264_s1 + $0x2c4] ss:$8 sps:$4 sm:$0xff]  }
  0x3d   : > { %2059 = vmatpush2.bf16.msra.mxu0 %v2932_v52  ;;  %v3024_v52 = vld [vmem:[%s4264_s1 + $0x2c0] ss:$8 sps:$4 sm:$0xff]  }
  0x3e   : > { %2102 = vmatpush2.bf16.msra.mxu1 %v2933_v53  ;;  %2060 = vmatprep.subr.bf16.mxu0 %v2934_v54  ;;  %v3027_v53 = vld [vmem:[%s4264_s1 + $0x3c0] ss:$8 sps:$4 sm:$0xff]   ;;  %v3032_v54 = vld [vmem:[%s4264_s1 + $0x2b4] ss:$8 sps:$4 sm:$0xff]  }
  0x3f   : > { %2103 = vmatprep.subr.bf16.mxu1 %v2936_v55  ;;  %v3035_v55 = vld [vmem:[%s4264_s1 + $0x3b4] ss:$8 sps:$4 sm:$0xff]  }
  0x41   : > { %2061 = vmatpush2.bf16.msra.mxu0 %v2938_v56  ;;  %v3030_v56 = vld [vmem:[%s4264_s1 + $0x2b0] ss:$8 sps:$4 sm:$0xff]  }
  0x42   : > { %2104 = vmatpush2.bf16.msra.mxu1 %v2939_v57  ;;  %2062 = vmatprep.subr.bf16.mxu0 %v2940_v58  ;;  %v3033_v57 = vld [vmem:[%s4264_s1 + $0x3b0] ss:$8 sps:$4 sm:$0xff]   ;;  %v3038_v58 = vld [vmem:[%s4264_s1 + $0x2a4] ss:$8 sps:$4 sm:$0xff]  }
  0x43   : > { %2105 = vmatprep.subr.bf16.mxu1 %v2942_v59  ;;  %v3041_v59 = vld [vmem:[%s4264_s1 + $0x3a4] ss:$8 sps:$4 sm:$0xff]  }
  0x45   : > { %2063 = vmatpush2.bf16.msra.mxu0 %v2944_v60  ;;  %v3036_v60 = vld [vmem:[%s4264_s1 + $0x2a0] ss:$8 sps:$4 sm:$0xff]  }
  0x46   : > { %2106 = vmatpush2.bf16.msra.mxu1 %v2945_v61  ;;  %2064 = vmatprep.subr.bf16.mxu0 %v2946_v62  ;;  %v3039_v61 = vld [vmem:[%s4264_s1 + $0x3a0] ss:$8 sps:$4 sm:$0xff]   ;;  %v3044_v62 = vld [vmem:[%s4264_s1 + $0x294] ss:$8 sps:$4 sm:$0xff]  }
  0x47   : > { %2107 = vmatprep.subr.bf16.mxu1 %v2948_v63  ;;  %v3047_v63 = vld [vmem:[%s4264_s1 + $0x394] ss:$8 sps:$4 sm:$0xff]  }
  0x49   : > { %2065 = vmatpush2.bf16.msra.mxu0 %v2950_v0  ;;  %v3042_v0 = vld [vmem:[%s4264_s1 + $0x290] ss:$8 sps:$4 sm:$0xff]  }
  0x4a   : > { %2108 = vmatpush2.bf16.msra.mxu1 %v2951_v1  ;;  %2120 = vmatprep.subr.bf16.mxu0 %v2960_v2  ;;  %v3045_v1 = vld [vmem:[%s4264_s1 + $0x390] ss:$8 sps:$4 sm:$0xff]   ;;  %v3050_v2 = vld [vmem:[%s4264_s1 + $0x284] ss:$8 sps:$4 sm:$0xff]  }
  0x4b   : > { %2163 = vmatprep.subr.bf16.mxu1 %v2963_v3  ;;  %v3053_v3 = vld [vmem:[%s4264_s1 + $0x384] ss:$8 sps:$4 sm:$0xff]  }
  0x4c   : > { %2067 = vmatmul.mubr.bf16.vlgmr.msra.gmra.mxu0 %v2952_v4  ;;  %v3048_v4 = vld [vmem:[%s4264_s1 + $0x280] ss:$8 sps:$4 sm:$0xff]  }
  0x4d   : > { %2110 = vmatmul.mubr.bf16.vlgmr.msra.gmra.mxu1 %v2955_v5  ;;  %2121 = vmatpush1.bf16.msra.mxu0 %v2958_v6  ;;  %v3051_v5 = vld [vmem:[%s4264_s1 + $0x380] ss:$8 sps:$4 sm:$0xff]   ;;  %v3059_v6 = vld [vmem:[%s4264_s1 + $0x474] ss:$8 sps:$4 sm:$0xff]  }
  0x4e   : > { %2164 = vmatpush1.bf16.msra.mxu1 %v2961_v7  ;;  %2122 = vmatprep.subr.bf16.mxu0 %v2966_v8  ;;  %v3065_v7 = vld [vmem:[%s4264_s1 + $0x574] ss:$8 sps:$4 sm:$0xff]   ;;  %v3054_v8 = vld [vmem:[%s3501_s12 + $0x10] ss:$72 sps:$4 sm:$0xff]  }
  0x4f   : > { %2165 = vmatprep.subr.bf16.mxu1 %v2969_v9  ;;  %2152 = vmatprep.mubr.bf16.mxu0 %v3056_v34  ;;  %v3057_v9 = vld [vmem:[%s4264_s1 + $0x470] ss:$8 sps:$4 sm:$0xff]   ;;  %v3098_v34 = vld [vmem:[%s4264_s1 + $0x414] ss:$8 sps:$4 sm:$0xff]  }
  0x50   : > { %2195 = vmatprep.mubr.bf16.mxu1 %v3062_v37  ;;  %v3099_v37 = vld [vmem:[%s4264_s1 + $0x510] ss:$8 sps:$4 sm:$0xff]  }
  0x51   : > { %2123 = vmatpush1.bf16.msra.mxu0 %v2964_v10  ;;  %v3060_v10 = vld [vmem:[%s3501_s12 + $0x18] ss:$72 sps:$4 sm:$0xff]  }
  0x52   : > { %2166 = vmatpush1.bf16.msra.mxu1 %v2967_v11  ;;  %2124 = vmatprep.subr.bf16.mxu0 %v2972_v12  ;;  %v3063_v11 = vld [vmem:[%s4264_s1 + $0x570] ss:$8 sps:$4 sm:$0xff]   ;;  %v3068_v12 = vld [vmem:[%s4264_s1 + $0x464] ss:$8 sps:$4 sm:$0xff]  }
  0x53   : > { %2167 = vmatprep.subr.bf16.mxu1 %v2975_v13  ;;  %v3071_v13 = vld [vmem:[%s4264_s1 + $0x564] ss:$8 sps:$4 sm:$0xff]  }
  0x55   : > { %2125 = vmatpush1.bf16.msra.mxu0 %v2970_v14  ;;  %v3066_v14 = vld [vmem:[%s4264_s1 + $0x460] ss:$8 sps:$4 sm:$0xff]  }
  0x56   : > { %2168 = vmatpush1.bf16.msra.mxu1 %v2973_v15  ;;  %2126 = vmatprep.subr.bf16.mxu0 %v2978_v16  ;;  %v3069_v15 = vld [vmem:[%s4264_s1 + $0x560] ss:$8 sps:$4 sm:$0xff]   ;;  %v3074_v16 = vld [vmem:[%s4264_s1 + $0x454] ss:$8 sps:$4 sm:$0xff]  }
  0x57   : > { %2169 = vmatprep.subr.bf16.mxu1 %v2981_v17  ;;  %v3077_v17 = vld [vmem:[%s4264_s1 + $0x554] ss:$8 sps:$4 sm:$0xff]  }
  0x59   : > { %2127 = vmatpush1.bf16.msra.mxu0 %v2976_v18  ;;  %v3072_v18 = vld [vmem:[%s4264_s1 + $0x450] ss:$8 sps:$4 sm:$0xff]  }
  0x5a   : > { %2170 = vmatpush1.bf16.msra.mxu1 %v2979_v19  ;;  %2128 = vmatprep.subr.bf16.mxu0 %v2984_v20  ;;  %v3158_v19 = vld [vmem:[%s3501_s12 + $0x24] ss:$72 sps:$4 sm:$0xff]   ;;  %v3075_v20 = vld [vmem:[%s4264_s1 + $0x550] ss:$8 sps:$4 sm:$0xff]  }
  0x5b   : > { %2171 = vmatprep.subr.bf16.mxu1 %v2987_v21  ;;  %v3080_v21 = vld [vmem:[%s4264_s1 + $0x444] ss:$8 sps:$4 sm:$0xff]  }
  0x5d   : > { %2129 = vmatpush1.bf16.msra.mxu0 %v2982_v22  ;;  %v3083_v22 = vld [vmem:[%s4264_s1 + $0x544] ss:$8 sps:$4 sm:$0xff]  }
  0x5e   : > { %2172 = vmatpush1.bf16.msra.mxu1 %v2985_v23  ;;  %2130 = vmatprep.subr.bf16.mxu0 %v2990_v24  ;;  %v3164_v23 = vld [vmem:[%s3501_s12 + $0x2c] ss:$72 sps:$4 sm:$0xff]   ;;  %v3078_v24 = vld [vmem:[%s4264_s1 + $0x440] ss:$8 sps:$4 sm:$0xff]  }
  0x5f   : > { %2173 = vmatprep.subr.bf16.mxu1 %v2993_v25  ;;  %v3081_v25 = vld [vmem:[%s4264_s1 + $0x540] ss:$8 sps:$4 sm:$0xff]  }
  0x61   : > { %2131 = vmatpush1.bf16.msra.mxu0 %v2988_v26  ;;  %v3086_v26 = vld [vmem:[%s4264_s1 + $0x434] ss:$8 sps:$4 sm:$0xff]  }
  0x62   : > { %2174 = vmatpush1.bf16.msra.mxu1 %v2991_v27  ;;  %2132 = vmatprep.subr.bf16.mxu0 %v2996_v28  ;;  %v3089_v27 = vld [vmem:[%s4264_s1 + $0x534] ss:$8 sps:$4 sm:$0xff]   ;;  %v3084_v28 = vld [vmem:[%s4264_s1 + $0x430] ss:$8 sps:$4 sm:$0xff]  }
  0x63   : > { %2175 = vmatprep.subr.bf16.mxu1 %v2999_v29  ;;  %v3087_v29 = vld [vmem:[%s4264_s1 + $0x530] ss:$8 sps:$4 sm:$0xff]  }
  0x65   : > { %2133 = vmatpush1.bf16.msra.mxu0 %v2994_v30  ;;  %v3092_v30 = vld [vmem:[%s4264_s1 + $0x424] ss:$8 sps:$4 sm:$0xff]  }
  0x66   : > { %2176 = vmatpush1.bf16.msra.mxu1 %v2997_v31  ;;  %2134 = vmatprep.subr.bf16.mxu0 %v3002_v32  ;;  %v3095_v31 = vld [vmem:[%s4264_s1 + $0x524] ss:$8 sps:$4 sm:$0xff]   ;;  %v3090_v32 = vld [vmem:[%s4264_s1 + $0x420] ss:$8 sps:$4 sm:$0xff]  }
  0x67   : > { %2177 = vmatprep.subr.bf16.mxu1 %v3005_v33  ;;  %v3093_v33 = vld [vmem:[%s4264_s1 + $0x520] ss:$8 sps:$4 sm:$0xff]  }
  0x69   : > { %2135 = vmatpush1.bf16.msra.mxu0 %v3000_v35  ;;  %v3101_v35 = vld [vmem:[%s4264_s1 + $0x514] ss:$8 sps:$4 sm:$0xff]  }
  0x6a   : > { %2178 = vmatpush1.bf16.msra.mxu1 %v3003_v36  ;;  %2136 = vmatprep.subr.bf16.mxu0 %v3008_v38  ;;  %v3096_v36 = vld [vmem:[%s4264_s1 + $0x410] ss:$8 sps:$4 sm:$0xff]   ;;  %v3104_v38 = vld [vmem:[%s4264_s1 + $0x404] ss:$8 sps:$4 sm:$0xff]  }
  0x6b   : > { %2179 = vmatprep.subr.bf16.mxu1 %v3011_v39  ;;  %v3107_v39 = vld [vmem:[%s4264_s1 + $0x504] ss:$8 sps:$4 sm:$0xff]  }
  0x6d   : > { %2137 = vmatpush2.bf16.msra.mxu0 %v3006_v40  ;;  %v3102_v40 = vld [vmem:[%s4264_s1 + $0x400] ss:$8 sps:$4 sm:$0xff]  }
  0x6e   : > { %2180 = vmatpush2.bf16.msra.mxu1 %v3009_v41  ;;  %2138 = vmatprep.subr.bf16.mxu0 %v3014_v42  ;;  %v3105_v41 = vld [vmem:[%s4264_s1 + $0x500] ss:$8 sps:$4 sm:$0xff]   ;;  %v3110_v42 = vld [vmem:[%s4264_s1 + $0x4f4] ss:$8 sps:$4 sm:$0xff]  }
  0x6f   : > { %2181 = vmatprep.subr.bf16.mxu1 %v3017_v43  ;;  %v3113_v43 = vld [vmem:[%s4264_s1 + $0x5f4] ss:$8 sps:$4 sm:$0xff]  }
  0x71   : > { %2139 = vmatpush2.bf16.msra.mxu0 %v3012_v44  ;;  %v3108_v44 = vld [vmem:[%s4264_s1 + $0x4f0] ss:$8 sps:$4 sm:$0xff]  }
  0x72   : > { %2182 = vmatpush2.bf16.msra.mxu1 %v3015_v45  ;;  %2140 = vmatprep.subr.bf16.mxu0 %v3020_v46  ;;  %v3111_v45 = vld [vmem:[%s4264_s1 + $0x5f0] ss:$8 sps:$4 sm:$0xff]   ;;  %v3116_v46 = vld [vmem:[%s4264_s1 + $0x4e4] ss:$8 sps:$4 sm:$0xff]  }
  0x73   : > { %2183 = vmatprep.subr.bf16.mxu1 %v3023_v47  ;;  %v3119_v47 = vld [vmem:[%s4264_s1 + $0x5e4] ss:$8 sps:$4 sm:$0xff]  }
  0x75   : > { %2141 = vmatpush2.bf16.msra.mxu0 %v3018_v48  ;;  %v3114_v48 = vld [vmem:[%s4264_s1 + $0x4e0] ss:$8 sps:$4 sm:$0xff]  }
  0x76   : > { %2184 = vmatpush2.bf16.msra.mxu1 %v3021_v49  ;;  %2142 = vmatprep.subr.bf16.mxu0 %v3026_v50  ;;  %v3117_v49 = vld [vmem:[%s4264_s1 + $0x5e0] ss:$8 sps:$4 sm:$0xff]   ;;  %v3122_v50 = vld [vmem:[%s4264_s1 + $0x4d4] ss:$8 sps:$4 sm:$0xff]  }
  0x77   : > { %2185 = vmatprep.subr.bf16.mxu1 %v3029_v51  ;;  %v3125_v51 = vld [vmem:[%s4264_s1 + $0x5d4] ss:$8 sps:$4 sm:$0xff]  }
  0x79   : > { %2143 = vmatpush2.bf16.msra.mxu0 %v3024_v52  ;;  %v3120_v52 = vld [vmem:[%s4264_s1 + $0x4d0] ss:$8 sps:$4 sm:$0xff]  }
  0x7a   : > { %2186 = vmatpush2.bf16.msra.mxu1 %v3027_v53  ;;  %2144 = vmatprep.subr.bf16.mxu0 %v3032_v54  ;;  %v3123_v53 = vld [vmem:[%s4264_s1 + $0x5d0] ss:$8 sps:$4 sm:$0xff]   ;;  %v3128_v54 = vld [vmem:[%s4264_s1 + $0x4c4] ss:$8 sps:$4 sm:$0xff]  }
  0x7b   : > { %2187 = vmatprep.subr.bf16.mxu1 %v3035_v55  ;;  %v3131_v55 = vld [vmem:[%s4264_s1 + $0x5c4] ss:$8 sps:$4 sm:$0xff]  }
  0x7d   : > { %2145 = vmatpush2.bf16.msra.mxu0 %v3030_v56  ;;  %v3126_v56 = vld [vmem:[%s4264_s1 + $0x4c0] ss:$8 sps:$4 sm:$0xff]  }
  0x7e   : > { %2188 = vmatpush2.bf16.msra.mxu1 %v3033_v57  ;;  %2146 = vmatprep.subr.bf16.mxu0 %v3038_v58  ;;  %v3129_v57 = vld [vmem:[%s4264_s1 + $0x5c0] ss:$8 sps:$4 sm:$0xff]   ;;  %v3134_v58 = vld [vmem:[%s4264_s1 + $0x4b4] ss:$8 sps:$4 sm:$0xff]  }
  0x7f   : > { %2189 = vmatprep.subr.bf16.mxu1 %v3041_v59  ;;  %v3137_v59 = vld [vmem:[%s4264_s1 + $0x5b4] ss:$8 sps:$4 sm:$0xff]  }
  0x81   : > { %2147 = vmatpush2.bf16.msra.mxu0 %v3036_v60  ;;  %v3132_v60 = vld [vmem:[%s4264_s1 + $0x4b0] ss:$8 sps:$4 sm:$0xff]  }
  0x82   : > { %2190 = vmatpush2.bf16.msra.mxu1 %v3039_v61  ;;  %2148 = vmatprep.subr.bf16.mxu0 %v3044_v62  ;;  %v3135_v61 = vld [vmem:[%s4264_s1 + $0x5b0] ss:$8 sps:$4 sm:$0xff]   ;;  %v3140_v62 = vld [vmem:[%s4264_s1 + $0x4a4] ss:$8 sps:$4 sm:$0xff]  }
  0x83   : > { %2191 = vmatprep.subr.bf16.mxu1 %v3047_v63  ;;  %v3143_v63 = vld [vmem:[%s4264_s1 + $0x5a4] ss:$8 sps:$4 sm:$0xff]  }
  0x85   : > { %2149 = vmatpush2.bf16.msra.mxu0 %v3042_v0  ;;  %v3138_v0 = vld [vmem:[%s4264_s1 + $0x4a0] ss:$8 sps:$4 sm:$0xff]  }
  0x86   : > { %2192 = vmatpush2.bf16.msra.mxu1 %v3045_v1  ;;  %2150 = vmatprep.subr.bf16.mxu0 %v3050_v2  ;;  %v3141_v1 = vld [vmem:[%s4264_s1 + $0x5a0] ss:$8 sps:$4 sm:$0xff]   ;;  %v3146_v2 = vld [vmem:[%s4264_s1 + $0x494] ss:$8 sps:$4 sm:$0xff]  }
  0x87   : > { %2193 = vmatprep.subr.bf16.mxu1 %v3053_v3  ;;  %v3149_v3 = vld [vmem:[%s4264_s1 + $0x594] ss:$8 sps:$4 sm:$0xff]  }
  0x89   : > { %2151 = vmatpush2.bf16.msra.mxu0 %v3048_v4  ;;  %v3144_v4 = vld [vmem:[%s4264_s1 + $0x490] ss:$8 sps:$4 sm:$0xff]  }
  0x8a   : > { %2194 = vmatpush2.bf16.msra.mxu1 %v3051_v5  ;;  %2206 = vmatprep.subr.bf16.mxu0 %v3059_v6  ;;  %v3147_v5 = vld [vmem:[%s4264_s1 + $0x590] ss:$8 sps:$4 sm:$0xff]   ;;  %v3152_v6 = vld [vmem:[%s4264_s1 + $0x484] ss:$8 sps:$4 sm:$0xff]  }
  0x8b   : > { %2249 = vmatprep.subr.bf16.mxu1 %v3065_v7  ;;  %v3155_v7 = vld [vmem:[%s4264_s1 + $0x584] ss:$8 sps:$4 sm:$0xff]  }
  0x8c   : > { %2153 = vmatmul.mubr.bf16.vlgmr.msra.gmra.mxu0 %v3054_v8  ;;  %v3150_v8 = vld [vmem:[%s4264_s1 + $0x480] ss:$8 sps:$4 sm:$0xff]  }
  0x8d   : > { %2196 = vmatmul.mubr.bf16.vlgmr.msra.gmra.mxu1 %v3060_v10  ;;  %2207 = vmatpush1.bf16.msra.mxu0 %v3057_v9  ;;  %v3153_v9 = vld [vmem:[%s4264_s1 + $0x580] ss:$8 sps:$4 sm:$0xff]   ;;  %v3161_v10 = vld [vmem:[%s4264_s1 + $0x674] ss:$8 sps:$4 sm:$0xff]  }
  0x8e   : > { %2250 = vmatpush1.bf16.msra.mxu1 %v3063_v11  ;;  %2208 = vmatprep.subr.bf16.mxu0 %v3068_v12  ;;  %v3167_v11 = vld [vmem:[%s4264_s1 + $0x774] ss:$8 sps:$4 sm:$0xff]   ;;  %v3156_v12 = vld [vmem:[%s3501_s12 + $0x20] ss:$72 sps:$4 sm:$0xff]  }
  0x8f   : > { %2251 = vmatprep.subr.bf16.mxu1 %v3071_v13  ;;  %2238 = vmatprep.mubr.bf16.mxu0 %v3158_v19  ;;  %v3159_v13 = vld [vmem:[%s4264_s1 + $0x670] ss:$8 sps:$4 sm:$0xff]   ;;  %v3266_v19 = vld [vmem:[%s3501_s12 + $0x3c] ss:$72 sps:$4 sm:$0xff]  }
  0x90   : > { %2281 = vmatprep.mubr.bf16.mxu1 %v3164_v23  ;;  %v3179_v23 = vld [vmem:[%s4264_s1 + $0x754] ss:$8 sps:$4 sm:$0xff]  }
  0x91   : > { %2209 = vmatpush1.bf16.msra.mxu0 %v3066_v14  ;;  %v3162_v14 = vld [vmem:[%s3501_s12 + $0x28] ss:$72 sps:$4 sm:$0xff]  }
  0x92   : > { %2252 = vmatpush1.bf16.msra.mxu1 %v3069_v15  ;;  %2210 = vmatprep.subr.bf16.mxu0 %v3074_v16  ;;  %v3165_v15 = vld [vmem:[%s4264_s1 + $0x770] ss:$8 sps:$4 sm:$0xff]   ;;  %v3170_v16 = vld [vmem:[%s4264_s1 + $0x664] ss:$8 sps:$4 sm:$0xff]  }
  0x93   : > { %2253 = vmatprep.subr.bf16.mxu1 %v3077_v17  ;;  %v3173_v17 = vld [vmem:[%s4264_s1 + $0x764] ss:$8 sps:$4 sm:$0xff]  }
  0x95   : > { %2211 = vmatpush1.bf16.msra.mxu0 %v3072_v18  ;;  %v3260_v18 = vld [vmem:[%s3501_s12 + $0x34] ss:$72 sps:$4 sm:$0xff]  }
  0x96   : > { %2254 = vmatpush1.bf16.msra.mxu1 %v3075_v20  ;;  %2212 = vmatprep.subr.bf16.mxu0 %v3080_v21  ;;  %v3168_v20 = vld [vmem:[%s4264_s1 + $0x660] ss:$8 sps:$4 sm:$0xff]  }
  0x97   : > { %2255 = vmatprep.subr.bf16.mxu1 %v3083_v22  ;;  %v3171_v21 = vld [vmem:[%s4264_s1 + $0x760] ss:$8 sps:$4 sm:$0xff]   ;;  %v3176_v22 = vld [vmem:[%s4264_s1 + $0x654] ss:$8 sps:$4 sm:$0xff]  }
  0x99   : > { %2213 = vmatpush1.bf16.msra.mxu0 %v3078_v24  ;;  %v3174_v24 = vld [vmem:[%s4264_s1 + $0x650] ss:$8 sps:$4 sm:$0xff]  }
  0x9a   : > { %2256 = vmatpush1.bf16.msra.mxu1 %v3081_v25  ;;  %2214 = vmatprep.subr.bf16.mxu0 %v3086_v26  ;;  %v3177_v25 = vld [vmem:[%s4264_s1 + $0x750] ss:$8 sps:$4 sm:$0xff]   ;;  %v3182_v26 = vld [vmem:[%s4264_s1 + $0x644] ss:$8 sps:$4 sm:$0xff]  }
  0x9b   : > { %2257 = vmatprep.subr.bf16.mxu1 %v3089_v27  ;;  %v3185_v27 = vld [vmem:[%s4264_s1 + $0x744] ss:$8 sps:$4 sm:$0xff]  }
  0x9d   : > { %2215 = vmatpush1.bf16.msra.mxu0 %v3084_v28  ;;  %v3180_v28 = vld [vmem:[%s4264_s1 + $0x640] ss:$8 sps:$4 sm:$0xff]  }
  0x9e   : > { %2258 = vmatpush1.bf16.msra.mxu1 %v3087_v29  ;;  %2216 = vmatprep.subr.bf16.mxu0 %v3092_v30  ;;  %v3183_v29 = vld [vmem:[%s4264_s1 + $0x740] ss:$8 sps:$4 sm:$0xff]   ;;  %v3188_v30 = vld [vmem:[%s4264_s1 + $0x634] ss:$8 sps:$4 sm:$0xff]  }
  0x9f   : > { %2259 = vmatprep.subr.bf16.mxu1 %v3095_v31  ;;  %v3191_v31 = vld [vmem:[%s4264_s1 + $0x734] ss:$8 sps:$4 sm:$0xff]  }
  0xa1   : > { %2217 = vmatpush1.bf16.msra.mxu0 %v3090_v32  ;;  %v3186_v32 = vld [vmem:[%s4264_s1 + $0x630] ss:$8 sps:$4 sm:$0xff]  }
  0xa2   : > { %2260 = vmatpush1.bf16.msra.mxu1 %v3093_v33  ;;  %2218 = vmatprep.subr.bf16.mxu0 %v3098_v34  ;;  %v3189_v33 = vld [vmem:[%s4264_s1 + $0x730] ss:$8 sps:$4 sm:$0xff]   ;;  %v3194_v34 = vld [vmem:[%s4264_s1 + $0x624] ss:$8 sps:$4 sm:$0xff]  }
  0xa3   : > { %2261 = vmatprep.subr.bf16.mxu1 %v3101_v35  ;;  %v3197_v35 = vld [vmem:[%s4264_s1 + $0x724] ss:$8 sps:$4 sm:$0xff]  }
  0xa5   : > { %2219 = vmatpush1.bf16.msra.mxu0 %v3096_v36  ;;  %v3192_v36 = vld [vmem:[%s4264_s1 + $0x620] ss:$8 sps:$4 sm:$0xff]  }
  0xa6   : > { %2262 = vmatpush1.bf16.msra.mxu1 %v3099_v37  ;;  %2220 = vmatprep.subr.bf16.mxu0 %v3104_v38  ;;  %v3195_v37 = vld [vmem:[%s4264_s1 + $0x720] ss:$8 sps:$4 sm:$0xff]   ;;  %v3200_v38 = vld [vmem:[%s4264_s1 + $0x614] ss:$8 sps:$4 sm:$0xff]  }
  0xa7   : > { %2263 = vmatprep.subr.bf16.mxu1 %v3107_v39  ;;  %v3203_v39 = vld [vmem:[%s4264_s1 + $0x714] ss:$8 sps:$4 sm:$0xff]  }
  0xa9   : > { %2221 = vmatpush1.bf16.msra.mxu0 %v3102_v40  ;;  %v3198_v40 = vld [vmem:[%s4264_s1 + $0x610] ss:$8 sps:$4 sm:$0xff]  }
  0xaa   : > { %2264 = vmatpush1.bf16.msra.mxu1 %v3105_v41  ;;  %2222 = vmatprep.subr.bf16.mxu0 %v3110_v42  ;;  %v3201_v41 = vld [vmem:[%s4264_s1 + $0x710] ss:$8 sps:$4 sm:$0xff]   ;;  %v3206_v42 = vld [vmem:[%s4264_s1 + $0x604] ss:$8 sps:$4 sm:$0xff]  }
  0xab   : > { %2265 = vmatprep.subr.bf16.mxu1 %v3113_v43  ;;  %v3209_v43 = vld [vmem:[%s4264_s1 + $0x704] ss:$8 sps:$4 sm:$0xff]  }
  0xad   : > { %2223 = vmatpush2.bf16.msra.mxu0 %v3108_v44  ;;  %v3204_v44 = vld [vmem:[%s4264_s1 + $0x600] ss:$8 sps:$4 sm:$0xff]  }
  0xae   : > { %2266 = vmatpush2.bf16.msra.mxu1 %v3111_v45  ;;  %2224 = vmatprep.subr.bf16.mxu0 %v3116_v46  ;;  %v3207_v45 = vld [vmem:[%s4264_s1 + $0x700] ss:$8 sps:$4 sm:$0xff]   ;;  %v3212_v46 = vld [vmem:[%s4264_s1 + $0x6f4] ss:$8 sps:$4 sm:$0xff]  }
  0xaf   : > { %2267 = vmatprep.subr.bf16.mxu1 %v3119_v47  ;;  %v3215_v47 = vld [vmem:[%s4264_s1 + $0x7f4] ss:$8 sps:$4 sm:$0xff]  }
  0xb1   : > { %2225 = vmatpush2.bf16.msra.mxu0 %v3114_v48  ;;  %v3210_v48 = vld [vmem:[%s4264_s1 + $0x6f0] ss:$8 sps:$4 sm:$0xff]  }
  0xb2   : > { %2268 = vmatpush2.bf16.msra.mxu1 %v3117_v49  ;;  %2226 = vmatprep.subr.bf16.mxu0 %v3122_v50  ;;  %v3213_v49 = vld [vmem:[%s4264_s1 + $0x7f0] ss:$8 sps:$4 sm:$0xff]   ;;  %v3218_v50 = vld [vmem:[%s4264_s1 + $0x6e4] ss:$8 sps:$4 sm:$0xff]  }
  0xb3   : > { %2269 = vmatprep.subr.bf16.mxu1 %v3125_v51  ;;  %v3221_v51 = vld [vmem:[%s4264_s1 + $0x7e4] ss:$8 sps:$4 sm:$0xff]  }
  0xb5   : > { %2227 = vmatpush2.bf16.msra.mxu0 %v3120_v52  ;;  %v3216_v52 = vld [vmem:[%s4264_s1 + $0x6e0] ss:$8 sps:$4 sm:$0xff]  }
  0xb6   : > { %2270 = vmatpush2.bf16.msra.mxu1 %v3123_v53  ;;  %2228 = vmatprep.subr.bf16.mxu0 %v3128_v54  ;;  %v3219_v53 = vld [vmem:[%s4264_s1 + $0x7e0] ss:$8 sps:$4 sm:$0xff]   ;;  %v3224_v54 = vld [vmem:[%s4264_s1 + $0x6d4] ss:$8 sps:$4 sm:$0xff]  }
  0xb7   : > { %2271 = vmatprep.subr.bf16.mxu1 %v3131_v55  ;;  %v3227_v55 = vld [vmem:[%s4264_s1 + $0x7d4] ss:$8 sps:$4 sm:$0xff]  }
  0xb9   : > { %2229 = vmatpush2.bf16.msra.mxu0 %v3126_v56  ;;  %v3222_v56 = vld [vmem:[%s4264_s1 + $0x6d0] ss:$8 sps:$4 sm:$0xff]  }
  0xba   : > { %2272 = vmatpush2.bf16.msra.mxu1 %v3129_v57  ;;  %2230 = vmatprep.subr.bf16.mxu0 %v3134_v58  ;;  %v3225_v57 = vld [vmem:[%s4264_s1 + $0x7d0] ss:$8 sps:$4 sm:$0xff]   ;;  %v3230_v58 = vld [vmem:[%s4264_s1 + $0x6c4] ss:$8 sps:$4 sm:$0xff]  }
  0xbb   : > { %2273 = vmatprep.subr.bf16.mxu1 %v3137_v59  ;;  %v3233_v59 = vld [vmem:[%s4264_s1 + $0x7c4] ss:$8 sps:$4 sm:$0xff]  }
  0xbd   : > { %2231 = vmatpush2.bf16.msra.mxu0 %v3132_v60  ;;  %v3228_v60 = vld [vmem:[%s4264_s1 + $0x6c0] ss:$8 sps:$4 sm:$0xff]  }
  0xbe   : > { %2274 = vmatpush2.bf16.msra.mxu1 %v3135_v61  ;;  %2232 = vmatprep.subr.bf16.mxu0 %v3140_v62  ;;  %v3231_v61 = vld [vmem:[%s4264_s1 + $0x7c0] ss:$8 sps:$4 sm:$0xff]   ;;  %v3236_v62 = vld [vmem:[%s4264_s1 + $0x6b4] ss:$8 sps:$4 sm:$0xff]  }
  0xbf   : > { %2275 = vmatprep.subr.bf16.mxu1 %v3143_v63  ;;  %v3239_v63 = vld [vmem:[%s4264_s1 + $0x7b4] ss:$8 sps:$4 sm:$0xff]  }
  0xc1   : > { %2233 = vmatpush2.bf16.msra.mxu0 %v3138_v0  ;;  %v3234_v0 = vld [vmem:[%s4264_s1 + $0x6b0] ss:$8 sps:$4 sm:$0xff]  }
  0xc2   : > { %2276 = vmatpush2.bf16.msra.mxu1 %v3141_v1  ;;  %2234 = vmatprep.subr.bf16.mxu0 %v3146_v2  ;;  %v3237_v1 = vld [vmem:[%s4264_s1 + $0x7b0] ss:$8 sps:$4 sm:$0xff]   ;;  %v3242_v2 = vld [vmem:[%s4264_s1 + $0x6a4] ss:$8 sps:$4 sm:$0xff]  }
  0xc3   : > { %2277 = vmatprep.subr.bf16.mxu1 %v3149_v3  ;;  %v3245_v3 = vld [vmem:[%s4264_s1 + $0x7a4] ss:$8 sps:$4 sm:$0xff]  }
  0xc5   : > { %2235 = vmatpush2.bf16.msra.mxu0 %v3144_v4  ;;  %v3240_v4 = vld [vmem:[%s4264_s1 + $0x6a0] ss:$8 sps:$4 sm:$0xff]  }
  0xc6   : > { %2278 = vmatpush2.bf16.msra.mxu1 %v3147_v5  ;;  %2236 = vmatprep.subr.bf16.mxu0 %v3152_v6  ;;  %v3243_v5 = vld [vmem:[%s4264_s1 + $0x7a0] ss:$8 sps:$4 sm:$0xff]   ;;  %v3248_v6 = vld [vmem:[%s4264_s1 + $0x694] ss:$8 sps:$4 sm:$0xff]  }
  0xc7   : > { %2279 = vmatprep.subr.bf16.mxu1 %v3155_v7  ;;  %v3251_v7 = vld [vmem:[%s4264_s1 + $0x794] ss:$8 sps:$4 sm:$0xff]  }
  0xc9   : > { %2237 = vmatpush2.bf16.msra.mxu0 %v3150_v8  ;;  %v3246_v8 = vld [vmem:[%s4264_s1 + $0x690] ss:$8 sps:$4 sm:$0xff]  }
  0xca   : > { %2280 = vmatpush2.bf16.msra.mxu1 %v3153_v9  ;;  %2292 = vmatprep.subr.bf16.mxu0 %v3161_v10  ;;  %v3249_v9 = vld [vmem:[%s4264_s1 + $0x790] ss:$8 sps:$4 sm:$0xff]   ;;  %v3254_v10 = vld [vmem:[%s4264_s1 + $0x684] ss:$8 sps:$4 sm:$0xff]  }
  0xcb   : > { %2335 = vmatprep.subr.bf16.mxu1 %v3167_v11  ;;  %v3257_v11 = vld [vmem:[%s4264_s1 + $0x784] ss:$8 sps:$4 sm:$0xff]  }
  0xcc   : > { %2239 = vmatmul.mubr.bf16.vlgmr.msra.gmra.mxu0 %v3156_v12  ;;  %v3252_v12 = vld [vmem:[%s4264_s1 + $0x680] ss:$8 sps:$4 sm:$0xff]  }
  0xcd   : > { %2282 = vmatmul.mubr.bf16.vlgmr.msra.gmra.mxu1 %v3162_v14  ;;  %2293 = vmatpush1.bf16.msra.mxu0 %v3159_v13  ;;  %v3255_v13 = vld [vmem:[%s4264_s1 + $0x780] ss:$8 sps:$4 sm:$0xff]   ;;  %v3263_v14 = vld [vmem:[%s4264_s1 + $0x874] ss:$8 sps:$4 sm:$0xff]  }
  0xce   : > { %2336 = vmatpush1.bf16.msra.mxu1 %v3165_v15  ;;  %2294 = vmatprep.subr.bf16.mxu0 %v3170_v16  ;;  %v3258_v15 = vld [vmem:[%s3501_s12 + $0x30] ss:$72 sps:$4 sm:$0xff]  }
  0xcf   : > { %2337 = vmatprep.subr.bf16.mxu1 %v3173_v17  ;;  %2324 = vmatprep.mubr.bf16.mxu0 %v3260_v18  ;;  %v3264_v16 = vld [vmem:[%s3501_s12 + $0x38] ss:$72 sps:$4 sm:$0xff]   ;;  %v3314_v18 = vld [vmem:[%s3501_s12 + $0x44] ss:$72 sps:$4 sm:$0xff]  }
  0xd0   : > { %2367 = vmatprep.mubr.bf16.mxu1 %v3266_v19  ;;  %v3261_v17 = vld [vmem:[%s4264_s1 + $0x870] ss:$8 sps:$4 sm:$0xff]   ;;  %v3269_v19 = vld [vmem:[%s4264_s1 + $0x864] ss:$8 sps:$4 sm:$0xff]  }
  0xd1   : > { %2295 = vmatpush1.bf16.msra.mxu0 %v3168_v20  ;;  %v3267_v20 = vld [vmem:[%s4264_s1 + $0x860] ss:$8 sps:$4 sm:$0xff]  }
  0xd2   : > { %2338 = vmatpush1.bf16.msra.mxu1 %v3171_v21  ;;  %2296 = vmatprep.subr.bf16.mxu0 %v3176_v22  ;;  %v3272_v21 = vld [vmem:[%s4264_s1 + $0x854] ss:$8 sps:$4 sm:$0xff]   ;;  %v3270_v22 = vld [vmem:[%s4264_s1 + $0x850] ss:$8 sps:$4 sm:$0xff]  }
  0xd3   : > { %2339 = vmatprep.subr.bf16.mxu1 %v3179_v23  ;;  %v3275_v23 = vld [vmem:[%s4264_s1 + $0x844] ss:$8 sps:$4 sm:$0xff]  }
  0xd5   : > { %2297 = vmatpush1.bf16.msra.mxu0 %v3174_v24  ;;  %v3273_v24 = vld [vmem:[%s4264_s1 + $0x840] ss:$8 sps:$4 sm:$0xff]  }
  0xd6   : > { %2340 = vmatpush1.bf16.msra.mxu1 %v3177_v25  ;;  %2298 = vmatprep.subr.bf16.mxu0 %v3182_v26  ;;  %v3278_v25 = vld [vmem:[%s4264_s1 + $0x834] ss:$8 sps:$4 sm:$0xff]   ;;  %v3276_v26 = vld [vmem:[%s4264_s1 + $0x830] ss:$8 sps:$4 sm:$0xff]  }
  0xd7   : > { %2341 = vmatprep.subr.bf16.mxu1 %v3185_v27  ;;  %v3281_v27 = vld [vmem:[%s4264_s1 + $0x824] ss:$8 sps:$4 sm:$0xff]  }
  0xd9   : > { %2299 = vmatpush1.bf16.msra.mxu0 %v3180_v28  ;;  %v3279_v28 = vld [vmem:[%s4264_s1 + $0x820] ss:$8 sps:$4 sm:$0xff]  }
  0xda   : > { %2342 = vmatpush1.bf16.msra.mxu1 %v3183_v29  ;;  %2300 = vmatprep.subr.bf16.mxu0 %v3188_v30  ;;  %v3284_v29 = vld [vmem:[%s4264_s1 + $0x814] ss:$8 sps:$4 sm:$0xff]   ;;  %v3282_v30 = vld [vmem:[%s4264_s1 + $0x810] ss:$8 sps:$4 sm:$0xff]  }
  0xdb   : > { %2343 = vmatprep.subr.bf16.mxu1 %v3191_v31  ;;  %v3287_v31 = vld [vmem:[%s4264_s1 + $0x804] ss:$8 sps:$4 sm:$0xff]  }
  0xdd   : > { %2301 = vmatpush1.bf16.msra.mxu0 %v3186_v32  ;;  %v3285_v32 = vld [vmem:[%s4264_s1 + $0x800] ss:$8 sps:$4 sm:$0xff]  }
  0xde   : > { %2344 = vmatpush1.bf16.msra.mxu1 %v3189_v33  ;;  %2302 = vmatprep.subr.bf16.mxu0 %v3194_v34  ;;  %v3290_v33 = vld [vmem:[%s4264_s1 + $0x8f4] ss:$8 sps:$4 sm:$0xff]   ;;  %v3288_v34 = vld [vmem:[%s4264_s1 + $0x8f0] ss:$8 sps:$4 sm:$0xff]  }
  0xdf   : > { %2345 = vmatprep.subr.bf16.mxu1 %v3197_v35  ;;  %v3293_v35 = vld [vmem:[%s4264_s1 + $0x8e4] ss:$8 sps:$4 sm:$0xff]  }
  0xe1   : > { %2303 = vmatpush1.bf16.msra.mxu0 %v3192_v36  ;;  %v3291_v36 = vld [vmem:[%s4264_s1 + $0x8e0] ss:$8 sps:$4 sm:$0xff]  }
  0xe2   : > { %2346 = vmatpush1.bf16.msra.mxu1 %v3195_v37  ;;  %2304 = vmatprep.subr.bf16.mxu0 %v3200_v38  ;;  %v3296_v37 = vld [vmem:[%s4264_s1 + $0x8d4] ss:$8 sps:$4 sm:$0xff]   ;;  %v3294_v38 = vld [vmem:[%s4264_s1 + $0x8d0] ss:$8 sps:$4 sm:$0xff]  }
  0xe3   : > { %2347 = vmatprep.subr.bf16.mxu1 %v3203_v39  ;;  %v3299_v39 = vld [vmem:[%s4264_s1 + $0x8c4] ss:$8 sps:$4 sm:$0xff]  }
  0xe5   : > { %2305 = vmatpush1.bf16.msra.mxu0 %v3198_v40  ;;  %v3297_v40 = vld [vmem:[%s4264_s1 + $0x8c0] ss:$8 sps:$4 sm:$0xff]  }
  0xe6   : > { %2348 = vmatpush1.bf16.msra.mxu1 %v3201_v41  ;;  %2306 = vmatprep.subr.bf16.mxu0 %v3206_v42  ;;  %v3302_v41 = vld [vmem:[%s4264_s1 + $0x8b4] ss:$8 sps:$4 sm:$0xff]   ;;  %v3300_v42 = vld [vmem:[%s4264_s1 + $0x8b0] ss:$8 sps:$4 sm:$0xff]  }
  0xe7   : > { %2349 = vmatprep.subr.bf16.mxu1 %v3209_v43  ;;  %v3305_v43 = vld [vmem:[%s4264_s1 + $0x8a4] ss:$8 sps:$4 sm:$0xff]  }
  0xe9   : > { %2307 = vmatpush1.bf16.msra.mxu0 %v3204_v44  ;;  %v3303_v44 = vld [vmem:[%s4264_s1 + $0x8a0] ss:$8 sps:$4 sm:$0xff]  }
  0xea   : > { %2350 = vmatpush1.bf16.msra.mxu1 %v3207_v45  ;;  %2308 = vmatprep.subr.bf16.mxu0 %v3212_v46  ;;  %v3308_v45 = vld [vmem:[%s4264_s1 + $0x894] ss:$8 sps:$4 sm:$0xff]   ;;  %v3306_v46 = vld [vmem:[%s4264_s1 + $0x890] ss:$8 sps:$4 sm:$0xff]  }
  0xeb   : > { %2351 = vmatprep.subr.bf16.mxu1 %v3215_v47  ;;  %v3311_v47 = vld [vmem:[%s4264_s1 + $0x884] ss:$8 sps:$4 sm:$0xff]  }
  0xed   : > { %2309 = vmatpush2.bf16.msra.mxu0 %v3210_v48  ;;  %v3309_v48 = vld [vmem:[%s4264_s1 + $0x880] ss:$8 sps:$4 sm:$0xff]  }
  0xee   : > { %2352 = vmatpush2.bf16.msra.mxu1 %v3213_v49  ;;  %2310 = vmatprep.subr.bf16.mxu0 %v3218_v50  ;;  %v3312_v49 = vld [vmem:[%s3501_s12 + $0x40] ss:$72 sps:$4 sm:$0xff]  }
  0xef   : > { %2353 = vmatprep.subr.bf16.mxu1 %v3221_v51 }
  0xf1   : > { %2311 = vmatpush2.bf16.msra.mxu0 %v3216_v52 }
  0xf2   : > { %2354 = vmatpush2.bf16.msra.mxu1 %v3219_v53  ;;  %2312 = vmatprep.subr.bf16.mxu0 %v3224_v54 }
  0xf3   : > { %2355 = vmatprep.subr.bf16.mxu1 %v3227_v55 }
  0xf5   : > { %2313 = vmatpush2.bf16.msra.mxu0 %v3222_v56 }
  0xf6   : > { %2356 = vmatpush2.bf16.msra.mxu1 %v3225_v57  ;;  %2314 = vmatprep.subr.bf16.mxu0 %v3230_v58 }
  0xf7   : > { %2357 = vmatprep.subr.bf16.mxu1 %v3233_v59 }
  0xf9   : > { %2315 = vmatpush2.bf16.msra.mxu0 %v3228_v60 }
  0xfa   : > { %2358 = vmatpush2.bf16.msra.mxu1 %v3231_v61  ;;  %2316 = vmatprep.subr.bf16.mxu0 %v3236_v62 }
  0xfb   : > { %2359 = vmatprep.subr.bf16.mxu1 %v3239_v63 }
  0xfd   : > { %2317 = vmatpush2.bf16.msra.mxu0 %v3234_v0 }
  0xfe   : > { %2360 = vmatpush2.bf16.msra.mxu1 %v3237_v1  ;;  %2318 = vmatprep.subr.bf16.mxu0 %v3242_v2 }
  0xff   : > { %2361 = vmatprep.subr.bf16.mxu1 %v3245_v3 }
 0x101   : > { %2319 = vmatpush2.bf16.msra.mxu0 %v3240_v4 }
 0x102   : > { %2362 = vmatpush2.bf16.msra.mxu1 %v3243_v5  ;;  %2320 = vmatprep.subr.bf16.mxu0 %v3248_v6 }
 0x103   : > { %2363 = vmatprep.subr.bf16.mxu1 %v3251_v7 }
 0x105   : > { %2321 = vmatpush2.bf16.msra.mxu0 %v3246_v8 }
 0x106   : > { %2364 = vmatpush2.bf16.msra.mxu1 %v3249_v9  ;;  %2322 = vmatprep.subr.bf16.mxu0 %v3254_v10 }
 0x107   : > { %2365 = vmatprep.subr.bf16.mxu1 %v3257_v11 }
 0x109   : > { %2323 = vmatpush2.bf16.msra.mxu0 %v3252_v12 }
 0x10a   : > { %2366 = vmatpush2.bf16.msra.mxu1 %v3255_v13  ;;  %2378 = vmatprep.subr.bf16.mxu0 %v3263_v14 }
 0x10c   : > { %2325 = vmatmul.mubr.bf16.vlgmr.msra.gmra.mxu0 %v3258_v15  ;;  %v2068_v50 = vpop.f32.mrf.mxu0 }
 0x10d   : > { %2368 = vmatmul.mubr.bf16.vlgmr.msra.gmra.mxu1 %v3264_v16  ;;  %2379 = vmatpush1.bf16.msra.mxu0 %v3261_v17  ;;  %v2111_v51 = vpop.f32.mrf.mxu1 }
 0x10e   : > { %2410 = vmatprep.mubr.bf16.mxu0 %v3314_v18  ;;  %2380 = vmatprep.subr.bf16.mxu0 %v3269_v19  ;;  %v2070_v52 = vpop.f32.mrf.mxu0  ;;  %v2112_v7 = vadd.f32 %v2111_v51, %v2068_v50  ;;  %v2423_v18 = vlaneseq }
 0x10f   : > { %v2113_v53 = vpop.f32.mrf.mxu1 }
 0x110   : > { %v2072_v54 = vpop.f32.mrf.mxu0  ;;  %v2114_v8 = vadd.f32 %v2113_v53, %v2070_v52 }
 0x111   : > { %2381 = vmatpush1.bf16.msra.mxu0 %v3267_v20  ;;  %v2115_v55 = vpop.f32.mrf.mxu1 }
 0x112   : > { %2382 = vmatprep.subr.bf16.mxu0 %v3272_v21  ;;  %v2074_v56 = vpop.f32.mrf.mxu0  ;;  %v2116_v12 = vadd.f32 %v2115_v55, %v2072_v54 }
 0x113   : > { %v2117_v58 = vpop.f32.mrf.mxu1 }
 0x114   : > { %v2118_v15 = vadd.f32 %v2117_v58, %v2074_v56 }
 0x115   : > { %2383 = vmatpush1.bf16.msra.mxu0 %v3270_v22 }
 0x116   : > { %2384 = vmatprep.subr.bf16.mxu0 %v3275_v23 }
 0x119   : > { %2385 = vmatpush1.bf16.msra.mxu0 %v3273_v24 }
 0x11a   : > { %2386 = vmatprep.subr.bf16.mxu0 %v3278_v25 }
 0x11d   : > { %2387 = vmatpush1.bf16.msra.mxu0 %v3276_v26 }
 0x11e   : > { %2388 = vmatprep.subr.bf16.mxu0 %v3281_v27  ;;  %v2424_v27 = vshrl.u32 %v2423_v18, 7 }
 0x121   : > { %2389 = vmatpush1.bf16.msra.mxu0 %v3279_v28 }
 0x122   : > { %2390 = vmatprep.subr.bf16.mxu0 %v3284_v29 }
 0x125   : > { %2391 = vmatpush1.bf16.msra.mxu0 %v3282_v30 }
 0x126   : > { %2392 = vmatprep.subr.bf16.mxu0 %v3287_v31 }
 0x129   : > { %2393 = vmatpush1.bf16.msra.mxu0 %v3285_v32 }
 0x12a   : > { %2394 = vmatprep.subr.bf16.mxu0 %v3290_v33 }
 0x12d   : > { %2395 = vmatpush2.bf16.msra.mxu0 %v3288_v34 }
 0x12e   : > { %2396 = vmatprep.subr.bf16.mxu0 %v3293_v35 }
 0x131   : > { %2397 = vmatpush2.bf16.msra.mxu0 %v3291_v36  ;;  %v2425_v36 = vsub.s32 0, %v2424_v27 }
 0x132   : > { %2398 = vmatprep.subr.bf16.mxu0 %v3296_v37  ;;  %v2421_v37 = vld [vmem:[%s4265_s2] sm:$0x3] }
 0x135   : > { %2399 = vmatpush2.bf16.msra.mxu0 %v3294_v38 }
 0x136   : > { %2400 = vmatprep.subr.bf16.mxu0 %v3299_v39 }
 0x139   : > { %2401 = vmatpush2.bf16.msra.mxu0 %v3297_v40  ;;  %v2437_v40 = vld [vmem:[%s4266_s3] sm:$0x3] }
 0x13a   : > { %2402 = vmatprep.subr.bf16.mxu0 %v3302_v41  ;;  %v2429_v41 = vsub.s32 1, %v2424_v27 }
 0x13c   : > { %v2430_v53 = vrot.slane %v2421_v37, %v2429_v41 }
 0x13d   : > { %2403 = vmatpush2.bf16.msra.mxu0 %v3300_v42 }
 0x13e   : > { %2404 = vmatprep.subr.bf16.mxu0 %v3305_v43 }
 0x141   : > { %2405 = vmatpush2.bf16.msra.mxu0 %v3303_v44 }
 0x142   : > { %2406 = vmatprep.subr.bf16.mxu0 %v3308_v45 }
 0x145   : > { %2407 = vmatpush2.bf16.msra.mxu0 %v3306_v46 }
 0x146   : > { %2408 = vmatprep.subr.bf16.mxu0 %v3311_v47  ;;  %v2426_v47 = vrot.slane %v2421_v37, %v2425_v36 }
 0x149   : > { %2409 = vmatpush2.bf16.msra.mxu0 %v3309_v48 }
 0x14c   : > { %2411 = vmatmul.mubr.bf16.vlgmr.msra.gmra.mxu0 %v3312_v49  ;;  %v2154_v57 = vpop.f32.mrf.mxu0  ;;  %v2442_v49 = vrot.slane %v2437_v40, %v2425_v36 }
 0x14d   : > { %v2197_v60 = vpop.f32.mrf.mxu1  ;;  %v2155_v9 = vadd.f32 %v2154_v57, %v2112_v7 }
 0x14e   : > { %v2156_v59 = vpop.f32.mrf.mxu0 }
 0x14f   : > { %v2199_v62 = vpop.f32.mrf.mxu1  ;;  %v2157_v13 = vadd.f32 %v2156_v59, %v2114_v8  ;;  %v2198_v16 = vadd.f32 %v2197_v60, %v2155_v9  ;;  %v2446_v59 = vrot.slane %v2437_v40, %v2429_v41 }
 0x150   : > { %v2158_v61 = vpop.f32.mrf.mxu0 }
 0x151   : > { %v2201_v0 = vpop.f32.mrf.mxu1  ;;  %v2159_v17 = vadd.f32 %v2158_v61, %v2116_v12  ;;  %v2200_v20 = vadd.f32 %v2199_v62, %v2157_v13 }
 0x152   : > { %v2160_v63 = vpop.f32.mrf.mxu0 }
 0x153   : > { %v2203_v2 = vpop.f32.mrf.mxu1  ;;  %v2161_v21 = vadd.f32 %v2160_v63, %v2118_v15  ;;  %v2202_v25 = vadd.f32 %v2201_v0, %v2159_v17 }
 0x155   : > { %v2204_v28 = vadd.f32 %v2203_v2, %v2161_v21 }
 0x18c   : > { %v2240_v1 = vpop.f32.mrf.mxu0 }
 0x18d   : > { %v2283_v4 = vpop.f32.mrf.mxu1  ;;  %v2241_v22 = vadd.f32 %v2240_v1, %v2198_v16 }
 0x18e   : > { %v2242_v3 = vpop.f32.mrf.mxu0 }
 0x18f   : > { %v2285_v6 = vpop.f32.mrf.mxu1  ;;  %v2243_v26 = vadd.f32 %v2242_v3, %v2200_v20  ;;  %v2284_v29 = vadd.f32 %v2283_v4, %v2241_v22 }
 0x190   : > { %v2244_v5 = vpop.f32.mrf.mxu0 }
 0x191   : > { %v2287_v11 = vpop.f32.mrf.mxu1  ;;  %v2245_v30 = vadd.f32 %v2244_v5, %v2202_v25  ;;  %v2286_v33 = vadd.f32 %v2285_v6, %v2243_v26 }
 0x192   : > { %v2246_v10 = vpop.f32.mrf.mxu0 }
 0x193   : > { %v2289_v19 = vpop.f32.mrf.mxu1  ;;  %v2247_v34 = vadd.f32 %v2246_v10, %v2204_v28  ;;  %v2288_v38 = vadd.f32 %v2287_v11, %v2245_v30 }
 0x195   : > { %v2290_v44 = vadd.f32 %v2289_v19, %v2247_v34 }
 0x1cc   : > { %v2326_v14 = vpop.f32.mrf.mxu0 }
 0x1cd   : > { %v2369_v24 = vpop.f32.mrf.mxu1  ;;  %v2327_v35 = vadd.f32 %v2326_v14, %v2284_v29 }
 0x1ce   : > { %v2328_v23 = vpop.f32.mrf.mxu0 }
 0x1cf   : > { %v2371_v32 = vpop.f32.mrf.mxu1  ;;  %v2329_v39 = vadd.f32 %v2328_v23, %v2286_v33  ;;  %v2370_v45 = vadd.f32 %v2369_v24, %v2327_v35 }
 0x1d0   : > { %v2330_v31 = vpop.f32.mrf.mxu0 }
 0x1d1   : > { %v2373_v43 = vpop.f32.mrf.mxu1  ;;  %v2331_v46 = vadd.f32 %v2330_v31, %v2288_v38  ;;  %v2372_v50 = vadd.f32 %v2371_v32, %v2329_v39 }
 0x1d2   : > { %v2332_v42 = vpop.f32.mrf.mxu0 }
 0x1d3   : > { %v2333_v51 = vadd.f32 %v2332_v42, %v2290_v44  ;;  %v2375_v54 = vpop.f32.mrf.mxu1  ;;  %v2374_v56 = vadd.f32 %v2373_v43, %v2331_v46 }
 0x1d5   : > { %v2376_v61 = vadd.f32 %v2375_v54, %v2333_v51 }
 0x20c   : > { %v2412_v48 = vpop.f32.mrf.mxu0 }
 0x20d   : > { %v2413_v52 = vadd.f32 %v2412_v48, %v2370_v45 }
 0x20e   : > { %v2414_v55 = vpop.f32.mrf.mxu0 }
 0x20f   : > { %v2433_v57 = vmul.f32 %v2426_v47, %v2413_v52  ;;  %v2415_v58 = vadd.f32 %v2414_v55, %v2372_v50 }
 0x210   : > { %v2416_v60 = vpop.f32.mrf.mxu0 }
 0x211   : > { %v2449_v62 = vadd.f32 %v2442_v49, %v2433_v57  ;;  %v2434_v63 = vmul.f32 %v2430_v53, %v2415_v58  ;;  %v2417_v0 = vadd.f32 %v2416_v60, %v2374_v56 }
 0x212   : > { %v2418_v1 = vpop.f32.mrf.mxu0 }
 0x213   : > { %v2450_v2 = vadd.f32 %v2446_v59, %v2434_v63  ;;  %v2435_v3 = vmul.f32 %v2426_v47, %v2417_v0  ;;  %v2419_v4 = vadd.f32 %v2418_v1, %v2376_v61  ;;  %v2453_v5 = vmax.f32 %v2449_v62, 0.0 }
 0x215   : > { %v2454_v6 = vmax.f32 %v2450_v2, 0.0  ;;  %v2451_v7 = vadd.f32 %v2442_v49, %v2435_v3  ;;  %v2436_v8 = vmul.f32 %v2430_v53, %v2419_v4 }
 0x217   : > { %v2845_v9 = vpack.c.bf16 %v2454_v6, %v2453_v5  ;;  %v2452_v10 = vadd.f32 %v2446_v59, %v2436_v8  ;;  %v2455_v11 = vmax.f32 %v2451_v7, 0.0 }
 0x219   : > { %2469 = vst [vmem:[%s197_s24] sm:$0xff] %v2845_v9  ;;  %v2456_v12 = vmax.f32 %v2452_v10, 0.0 }
 0x21b   : > { %v2846_v13 = vpack.c.bf16 %v2456_v12, %v2455_v11 }
 0x21d   : > { %2470 = vst [vmem:[%s197_s24 + $0x8] sm:$0xff] %v2846_v13 }
 0x21e PF: > { %s14_s15 = sadd.s32 1, %s3321_s15  }
 0x21f   : > { %p11_p4 = scmp.ge.s32.totalorder %s14_s15, 4  }
 0x221   :  { %13 = sbr.rel (!%p11_p4) target bundleno = 1 (0x1), region = 66 }

// kernel: feature_net.7
= control target key start
LH: loop header
LB: loop body
LE: loop exit
PB: predicated region body
PF: predicated region fallthrough
CT: control target
= control target key end

     0   :  { %v547_v28 = vlaneseq  ;;  %v3856_v36 = vmov 1966171168   ;;  %s4710_s0 = inlined_call_operand.vmem [shape: bf16[2,4096], index: 0, kind: input, shape index: {}]   ;;  %s4711_s1 = inlined_call_operand.vmem [shape: bf16[4096,128], index: 1, kind: input, shape index: {}]   ;;  %s4712_s2 = inlined_call_operand.vmem [shape: f32[1,128], index: 2, kind: input, shape index: {}]   ;;  %s4713_s3 = inlined_call_operand.hbm [shape: f32[2,128], index: 3, kind: output, shape index: {}]  }
   0x1   :  { %v3574_v0 = vld [vmem:[%s4711_s1 + $0x78] sm:$0xff]   ;;  %v3578_v4 = vld [vmem:[%s4711_s1 + $0x70] sm:$0xff]   ;;  %v3582_v8 = vld [vmem:[%s4711_s1 + $0x68] sm:$0xff]   ;;  %v545_v37 = vunpack.c.l.s4 %v3856_v36 }
   0x2   :  { %v3575_v1 = vld [vmem:[%s4711_s1 + $0xf8] sm:$0xff]   ;;  %3220 = vmatprep.subr.bf16.mxu0 %v3574_v0  ;;  %v3579_v5 = vld [vmem:[%s4711_s1 + $0xf0] sm:$0xff]   ;;  %v3583_v9 = vld [vmem:[%s4711_s1 + $0xe8] sm:$0xff]   ;;  %v548_v33 = vshrl.u32 %v547_v28, 7 }
   0x3   :  { %v3576_v2 = vld [vmem:[%s4711_s1 + $0x38] sm:$0xff]   ;;  %3242 = vmatprep.subr.bf16.mxu1 %v3575_v1  ;;  %v3580_v6 = vld [vmem:[%s4711_s1 + $0x30] sm:$0xff]   ;;  %v3584_v10 = vld [vmem:[%s4711_s1 + $0x28] sm:$0xff]   ;;  %v546_v40 = vunpack.c.0.s8 %v545_v37 }
   0x4   :  { %v3577_v3 = vld [vmem:[%s4711_s1 + $0xb8] sm:$0xff]   ;;  %3221 = vmatpush3.bf16.msra.mxu0 %v3576_v2  ;;  %v3581_v7 = vld [vmem:[%s4711_s1 + $0xb0] sm:$0xff]   ;;  %v3585_v11 = vld [vmem:[%s4711_s1 + $0xa8] sm:$0xff]  }
   0x5   :  { %3243 = vmatpush3.bf16.msra.mxu1 %v3577_v3  ;;  %3222 = vmatprep.subr.bf16.mxu0 %v3578_v4  ;;  %v3586_v12 = vld [vmem:[%s4711_s1 + $0x60] sm:$0xff]   ;;  %v3590_v16 = vld [vmem:[%s4711_s1 + $0x58] sm:$0xff]   ;;  %v3594_v20 = vld [vmem:[%s4711_s1 + $0x50] sm:$0xff]   ;;  %v3983_v41 = vsub.s32 %v546_v40, %v548_v33 }
   0x6   :  { %3244 = vmatprep.subr.bf16.mxu1 %v3579_v5  ;;  %v3587_v13 = vld [vmem:[%s4711_s1 + $0xe0] sm:$0xff]   ;;  %v3591_v17 = vld [vmem:[%s4711_s1 + $0xd8] sm:$0xff]   ;;  %v3595_v21 = vld [vmem:[%s4711_s1 + $0xd0] sm:$0xff]  }
   0x7   :  { %v3588_v14 = vld [vmem:[%s4711_s1 + $0x20] sm:$0xff]   ;;  %v3592_v18 = vld [vmem:[%s4711_s1 + $0x18] sm:$0xff]   ;;  %v3596_v22 = vld [vmem:[%s4711_s1 + $0x10] sm:$0xff]  }
   0x8   :  { %3223 = vmatpush3.bf16.msra.mxu0 %v3580_v6  ;;  %v3589_v15 = vld [vmem:[%s4711_s1 + $0xa0] sm:$0xff]   ;;  %v3593_v19 = vld [vmem:[%s4711_s1 + $0x98] sm:$0xff]   ;;  %v3597_v23 = vld [vmem:[%s4711_s1 + $0x90] sm:$0xff]  }
   0x9   :  { %3245 = vmatpush3.bf16.msra.mxu1 %v3581_v7  ;;  %3224 = vmatprep.subr.bf16.mxu0 %v3582_v8  ;;  %v3598_v24 = vld [vmem:[%s4711_s1 + $0x48] sm:$0xff]   ;;  %v3602_v29 = vld [vmem:[%s4711_s1 + $0x40] sm:$0xff]   ;;  %v3607_v35 = vld [vmem:[%s4711_s1 + $0x178] sm:$0xff]  }
   0xa   :  { %3246 = vmatprep.subr.bf16.mxu1 %v3583_v9  ;;  %v3599_v25 = vld [vmem:[%s4711_s1 + $0xc8] sm:$0xff]   ;;  %v3603_v30 = vld [vmem:[%s4711_s1 + $0xc0] sm:$0xff]   ;;  %v3608_v38 = vld [vmem:[%s4711_s1 + $0x1f8] sm:$0xff]  }
   0xb   :  { %v3600_v26 = vld [vmem:[%s4711_s1 + $0x8] sm:$0xff]   ;;  %v3604_v31 = vld [vmem:[%s4711_s1] sm:$0xff]   ;;  %v3609_v47 = vld [vmem:[%s4711_s1 + $0x138] sm:$0xff]  }
   0xc   :  { %3225 = vmatpush3.bf16.msra.mxu0 %v3584_v10  ;;  %v3601_v27 = vld [vmem:[%s4711_s1 + $0x88] sm:$0xff]   ;;  %v3605_v32 = vld [vmem:[%s4711_s1 + $0x80] sm:$0xff]   ;;  %v3610_v49 = vld [vmem:[%s4711_s1 + $0x1b8] sm:$0xff]  }
   0xd   :  { %3247 = vmatpush3.bf16.msra.mxu1 %v3585_v11  ;;  %3226 = vmatprep.subr.bf16.mxu0 %v3586_v12  ;;  %v16_v34 = vld [vmem:[%s4710_s0] sm:$0xff]  ;;  %v3611_v52 = vld [vmem:[%s4711_s1 + $0x170] sm:$0xff]   ;;  %v3615_v58 = vld [vmem:[%s4711_s1 + $0x168] sm:$0xff]  }
   0xe   :  { %3248 = vmatprep.subr.bf16.mxu1 %v3587_v13  ;;  %v543_v39 = vcombine.high %v16_v34, %v16_v34  ;;  %v550_v42 = vrot.slane %v16_v34, %v3983_v41  ;;  %v3612_v54 = vld [vmem:[%s4711_s1 + $0x1f0] sm:$0xff]   ;;  %v3616_v59 = vld [vmem:[%s4711_s1 + $0x1e8] sm:$0xff]   ;;  %v3619_v62 = vld [vmem:[%s4711_s1 + $0x160] sm:$0xff]  }
   0xf   :  { %v3613_v55 = vld [vmem:[%s4711_s1 + $0x130] sm:$0xff]   ;;  %v3617_v60 = vld [vmem:[%s4711_s1 + $0x128] sm:$0xff]   ;;  %v3620_v63 = vld [vmem:[%s4711_s1 + $0x1e0] sm:$0xff]  }
  0x10   :  { %3227 = vmatpush3.bf16.msra.mxu0 %v3588_v14  ;;  %v3987_v43 = vrot.slane %v543_v39, %v3983_v41  ;;  %v558_v44 = vcombine.high %v550_v42, %v550_v42  ;;  %v566_v45 = vrot.slane %v550_v42, %v3983_v41  ;;  %v3614_v57 = vld [vmem:[%s4711_s1 + $0x1b0] sm:$0xff]   ;;  %v3618_v61 = vld [vmem:[%s4711_s1 + $0x1a8] sm:$0xff]   ;;  %v3621_v0 = vld [vmem:[%s4711_s1 + $0x120] sm:$0xff]  }
  0x11   :  { %3249 = vmatpush3.bf16.msra.mxu1 %v3589_v15  ;;  %3228 = vmatprep.subr.bf16.mxu0 %v3590_v16  ;;  %v3622_v1 = vld [vmem:[%s4711_s1 + $0x1a0] sm:$0xff]   ;;  %v3623_v2 = vld [vmem:[%s4711_s1 + $0x158] sm:$0xff]   ;;  %v3627_v6 = vld [vmem:[%s4711_s1 + $0x150] sm:$0xff]  }
  0x12   :  { %3250 = vmatprep.subr.bf16.mxu1 %v3591_v17  ;;  %v559_v46 = vcombine.high %v3987_v43, %v3987_v43  ;;  %v580_v48 = vrot.slane %v558_v44, %v3983_v41  ;;  %v588_v51 = vcombine.high %v566_v45, %v566_v45  ;;  %v3624_v3 = vld [vmem:[%s4711_s1 + $0x1d8] sm:$0xff]   ;;  %v3628_v7 = vld [vmem:[%s4711_s1 + $0x1d0] sm:$0xff]   ;;  %v3631_v10 = vld [vmem:[%s4711_s1 + $0x148] sm:$0xff]  }
  0x13   :  { %v3625_v4 = vld [vmem:[%s4711_s1 + $0x118] sm:$0xff]   ;;  %v3629_v8 = vld [vmem:[%s4711_s1 + $0x110] sm:$0xff]   ;;  %v3632_v11 = vld [vmem:[%s4711_s1 + $0x1c8] sm:$0xff]  }
  0x14   :  { %3229 = vmatpush3.bf16.msra.mxu0 %v3592_v18  ;;  %v587_v50 = vrot.slane %v559_v46, %v3983_v41  ;;  %2339 = vmatprep.mubr.bf16.mxu0 %v580_v48  ;;  %v590_v53 = vcombine.high %v580_v48, %v580_v48  ;;  %v3626_v5 = vld [vmem:[%s4711_s1 + $0x198] sm:$0xff]   ;;  %v3630_v9 = vld [vmem:[%s4711_s1 + $0x190] sm:$0xff]   ;;  %v3633_v12 = vld [vmem:[%s4711_s1 + $0x108] sm:$0xff]   ;;  %v573_v18 = vrot.slane %v3987_v43, %v3983_v41 }
  0x15   :  { %3251 = vmatpush3.bf16.msra.mxu1 %v3593_v19  ;;  %3230 = vmatprep.subr.bf16.mxu0 %v3594_v20  ;;  %v3634_v13 = vld [vmem:[%s4711_s1 + $0x188] sm:$0xff]   ;;  %v3635_v14 = vld [vmem:[%s4711_s1 + $0x140] sm:$0xff]   ;;  %v3639_v19 = vld [vmem:[%s4711_s1 + $0x278] sm:$0xff]  }
  0x16   :  { %3252 = vmatprep.subr.bf16.mxu1 %v3595_v21  ;;  %v591_v56 = vcombine.high %v587_v50, %v587_v50  ;;  %2379 = vmatprep.mubr.bf16.mxu1 %v590_v53  ;;  %v3636_v15 = vld [vmem:[%s4711_s1 + $0x1c0] sm:$0xff]   ;;  %v3640_v20 = vld [vmem:[%s4711_s1 + $0x2f8] sm:$0xff]   ;;  %v3647_v28 = vld [vmem:[%s4711_s1 + $0x268] sm:$0xff]  }
  0x17   :  { %v3637_v16 = vld [vmem:[%s4711_s1 + $0x100] sm:$0xff]   ;;  %v3641_v21 = vld [vmem:[%s4711_s1 + $0x238] sm:$0xff]   ;;  %v3659_v40 = vld [vmem:[%s4711_s1 + $0x250] sm:$0xff]  }
  0x18   :  { %3231 = vmatpush3.bf16.msra.mxu0 %v3596_v22  ;;  %v3638_v17 = vld [vmem:[%s4711_s1 + $0x180] sm:$0xff]   ;;  %v3642_v22 = vld [vmem:[%s4711_s1 + $0x2b8] sm:$0xff]   ;;  %v3660_v42 = vld [vmem:[%s4711_s1 + $0x2d0] sm:$0xff]  }
  0x19   :  { %3253 = vmatpush3.bf16.msra.mxu1 %v3597_v23  ;;  %3232 = vmatprep.subr.bf16.mxu0 %v3598_v24  ;;  %v589_v23 = vcombine.high %v573_v18, %v573_v18  ;;  %v3643_v24 = vld [vmem:[%s4711_s1 + $0x270] sm:$0xff]   ;;  %v3652_v33 = vld [vmem:[%s4711_s1 + $0x2e0] sm:$0xff]   ;;  %v3655_v36 = vld [vmem:[%s4711_s1 + $0x258] sm:$0xff]  }
  0x1a   :  { %3254 = vmatprep.subr.bf16.mxu1 %v3599_v25  ;;  %v3644_v25 = vld [vmem:[%s4711_s1 + $0x2f0] sm:$0xff]   ;;  %v3653_v34 = vld [vmem:[%s4711_s1 + $0x220] sm:$0xff]   ;;  %v3656_v37 = vld [vmem:[%s4711_s1 + $0x2d8] sm:$0xff]  }
  0x1b   :  { %v3658_v39 = vld [vmem:[%s4711_s1 + $0x298] sm:$0xff]   ;;  %v3661_v43 = vld [vmem:[%s4711_s1 + $0x210] sm:$0xff]   ;;  %v17_v46 = vld [vmem:[%s4710_s0 + $0x8] sm:$0xff] }
  0x1c   :  { %3233 = vmatpush3.bf16.msra.mxu0 %v3600_v26  ;;  %v3645_v26 = vld [vmem:[%s4711_s1 + $0x230] sm:$0xff]   ;;  %v599_v48 = vrot.slane %v17_v46, %v3983_v41 }
  0x1d   :  { %3255 = vmatpush3.bf16.msra.mxu1 %v3601_v27  ;;  %3234 = vmatprep.subr.bf16.mxu0 %v3602_v29  ;;  %v3646_v27 = vld [vmem:[%s4711_s1 + $0x2b0] sm:$0xff]   ;;  %v3648_v29 = vld [vmem:[%s4711_s1 + $0x2e8] sm:$0xff]  }
  0x1e   :  { %3256 = vmatprep.subr.bf16.mxu1 %v3603_v30  ;;  %v3649_v30 = vld [vmem:[%s4711_s1 + $0x228] sm:$0xff]   ;;  %v3662_v44 = vld [vmem:[%s4711_s1 + $0x290] sm:$0xff]  }
  0x20   :  { %3235 = vmatpush3.bf16.msra.mxu0 %v3604_v31  ;;  %v3650_v31 = vld [vmem:[%s4711_s1 + $0x2a8] sm:$0xff]  }
  0x21   :  { %3257 = vmatpush3.bf16.msra.mxu1 %v3605_v32  ;;  %3264 = vmatprep.subr.bf16.mxu0 %v3607_v35  ;;  %v3651_v32 = vld [vmem:[%s4711_s1 + $0x260] sm:$0xff]  }
  0x22   :  { %3286 = vmatprep.subr.bf16.mxu1 %v3608_v38  ;;  %v3654_v35 = vld [vmem:[%s4711_s1 + $0x2a0] sm:$0xff]   ;;  %v3657_v38 = vld [vmem:[%s4711_s1 + $0x218] sm:$0xff]  }
  0x23   :  { %2340 = vmatmul.mubr.bf16.vlgmr.msra.gmra.mxu0 %v566_v45  ;;  %v3663_v45 = vld [vmem:[%s4711_s1 + $0x248] sm:$0xff]  }
  0x24   :  { %3265 = vmatpush3.bf16.msra.mxu0 %v3609_v47  ;;  %2380 = vmatmul.mubr.bf16.vlgmr.msra.gmra.mxu1 %v588_v51  ;;  %v3664_v47 = vld [vmem:[%s4711_s1 + $0x2c8] sm:$0xff]  }
  0x25   :  { %3266 = vmatprep.subr.bf16.mxu0 %v3611_v52  ;;  %3287 = vmatpush3.bf16.msra.mxu1 %v3610_v49  ;;  %v592_v49 = vcombine.high %v17_v46, %v17_v46  ;;  %v3666_v51 = vld [vmem:[%s4711_s1 + $0x288] sm:$0xff]   ;;  %v607_v52 = vcombine.high %v599_v48, %v599_v48 }
  0x26   :  { %2419 = vmatprep.mubr.bf16.mxu0 %v587_v50  ;;  %3288 = vmatprep.subr.bf16.mxu1 %v3612_v54  ;;  %v3665_v50 = vld [vmem:[%s4711_s1 + $0x208] sm:$0xff]   ;;  %v3667_v54 = vld [vmem:[%s4711_s1 + $0x240] sm:$0xff]  }
  0x27   :  { %2459 = vmatprep.mubr.bf16.mxu1 %v591_v56  ;;  %v4175_v53 = vrot.slane %v592_v49, %v3983_v41  ;;  %v629_v56 = vrot.slane %v607_v52, %v3983_v41  ;;  %v3714_v46 = vld [vmem:[%s4711_s1 + $0x428] sm:$0xff]   ;;  %v3717_v49 = vld [vmem:[%s4711_s1 + $0x4e0] sm:$0xff]   ;;  %v3720_v52 = vld [vmem:[%s4711_s1 + $0x458] sm:$0xff]  }
  0x28   :  { %3267 = vmatpush3.bf16.msra.mxu0 %v3613_v55  ;;  %v3668_v55 = vld [vmem:[%s4711_s1 + $0x2c0] sm:$0xff]  }
  0x29   :  { %3268 = vmatprep.subr.bf16.mxu0 %v3615_v58  ;;  %3289 = vmatpush3.bf16.msra.mxu1 %v3614_v57  ;;  %v608_v57 = vcombine.high %v4175_v53, %v4175_v53  ;;  %v3669_v58 = vld [vmem:[%s4711_s1 + $0x200] sm:$0xff]  }
  0x2a   :  { %3290 = vmatprep.subr.bf16.mxu1 %v3616_v59  ;;  %v3670_v59 = vld [vmem:[%s4711_s1 + $0x280] sm:$0xff]  }
  0x2c   :  { %3269 = vmatpush3.bf16.msra.mxu0 %v3617_v60  ;;  %v639_v60 = vcombine.high %v629_v56, %v629_v56 }
  0x2d   :  { %3270 = vmatprep.subr.bf16.mxu0 %v3619_v62  ;;  %3291 = vmatpush3.bf16.msra.mxu1 %v3618_v61  ;;  %v615_v61 = vrot.slane %v599_v48, %v3983_v41  ;;  %v3671_v62 = vld [vmem:[%s4711_s1 + $0x378] sm:$0xff]   ;;  %v3716_v48 = vld [vmem:[%s4711_s1 + $0x460] sm:$0xff]  }
  0x2e   :  { %3292 = vmatprep.subr.bf16.mxu1 %v3620_v63  ;;  %v3672_v63 = vld [vmem:[%s4711_s1 + $0x3f8] sm:$0xff]  }
  0x30   :  { %3271 = vmatpush3.bf16.msra.mxu0 %v3621_v0  ;;  %v636_v0 = vrot.slane %v608_v57, %v3983_v41  ;;  %v3725_v57 = vld [vmem:[%s4711_s1 + $0x4d0] sm:$0xff]  }
  0x31   :  { %3272 = vmatprep.subr.bf16.mxu0 %v3623_v2  ;;  %3293 = vmatpush3.bf16.msra.mxu1 %v3622_v1  ;;  %v3673_v1 = vld [vmem:[%s4711_s1 + $0x338] sm:$0xff]  }
  0x32   :  { %3294 = vmatprep.subr.bf16.mxu1 %v3624_v3  ;;  %v3674_v2 = vld [vmem:[%s4711_s1 + $0x3b8] sm:$0xff]   ;;  %v637_v3 = vcombine.high %v615_v61, %v615_v61 }
  0x34   :  { %3273 = vmatpush3.bf16.msra.mxu0 %v3625_v4  ;;  %v3675_v4 = vld [vmem:[%s4711_s1 + $0x370] sm:$0xff]  }
  0x35   :  { %3274 = vmatprep.subr.bf16.mxu0 %v3627_v6  ;;  %3295 = vmatpush3.bf16.msra.mxu1 %v3626_v5  ;;  %v3676_v5 = vld [vmem:[%s4711_s1 + $0x3f0] sm:$0xff]   ;;  %v640_v6 = vcombine.high %v636_v0, %v636_v0 }
  0x36   :  { %3296 = vmatprep.subr.bf16.mxu1 %v3628_v7  ;;  %v3677_v7 = vld [vmem:[%s4711_s1 + $0x330] sm:$0xff]  }
  0x38   :  { %3275 = vmatpush3.bf16.msra.mxu0 %v3629_v8  ;;  %v3678_v8 = vld [vmem:[%s4711_s1 + $0x3b0] sm:$0xff]  }
  0x39   :  { %3276 = vmatprep.subr.bf16.mxu0 %v3631_v10  ;;  %3297 = vmatpush3.bf16.msra.mxu1 %v3630_v9  ;;  %v3679_v9 = vld [vmem:[%s4711_s1 + $0x368] sm:$0xff]  }
  0x3a   :  { %3298 = vmatprep.subr.bf16.mxu1 %v3632_v11  ;;  %v3680_v10 = vld [vmem:[%s4711_s1 + $0x3e8] sm:$0xff]  }
  0x3b   :  { %v3681_v11 = vld [vmem:[%s4711_s1 + $0x328] sm:$0xff]  }
  0x3c   :  { %3277 = vmatpush3.bf16.msra.mxu0 %v3633_v12  ;;  %v3682_v12 = vld [vmem:[%s4711_s1 + $0x3a8] sm:$0xff]  }
  0x3d   :  { %3278 = vmatprep.subr.bf16.mxu0 %v3635_v14  ;;  %3299 = vmatpush3.bf16.msra.mxu1 %v3634_v13  ;;  %v3683_v13 = vld [vmem:[%s4711_s1 + $0x360] sm:$0xff]  }
  0x3e   :  { %3300 = vmatprep.subr.bf16.mxu1 %v3636_v15  ;;  %v3684_v14 = vld [vmem:[%s4711_s1 + $0x3e0] sm:$0xff]  }
  0x3f   :  { %v3685_v15 = vld [vmem:[%s4711_s1 + $0x320] sm:$0xff]  }
  0x40   :  { %3279 = vmatpush3.bf16.msra.mxu0 %v3637_v16  ;;  %v3686_v16 = vld [vmem:[%s4711_s1 + $0x3a0] sm:$0xff]  }
  0x41   :  { %3308 = vmatprep.subr.bf16.mxu0 %v3639_v19  ;;  %3301 = vmatpush3.bf16.msra.mxu1 %v3638_v17  ;;  %v3687_v17 = vld [vmem:[%s4711_s1 + $0x358] sm:$0xff]  }
  0x42   :  { %3330 = vmatprep.subr.bf16.mxu1 %v3640_v20  ;;  %v3689_v19 = vld [vmem:[%s4711_s1 + $0x318] sm:$0xff]  }
  0x43   :  { %2420 = vmatmul.mubr.bf16.vlgmr.msra.gmra.mxu0 %v573_v18  ;;  %v3688_v18 = vld [vmem:[%s4711_s1 + $0x3d8] sm:$0xff]  }
  0x44   :  { %3309 = vmatpush3.bf16.msra.mxu0 %v3641_v21  ;;  %2460 = vmatmul.mubr.bf16.vlgmr.msra.gmra.mxu1 %v589_v23  ;;  %v3690_v20 = vld [vmem:[%s4711_s1 + $0x398] sm:$0xff]   ;;  %v3691_v21 = vld [vmem:[%s4711_s1 + $0x350] sm:$0xff]  }
  0x45   :  { %3310 = vmatprep.subr.bf16.mxu0 %v3643_v24  ;;  %3331 = vmatpush3.bf16.msra.mxu1 %v3642_v22  ;;  %v3692_v22 = vld [vmem:[%s4711_s1 + $0x3d0] sm:$0xff]  }
  0x46   :  { %3332 = vmatprep.subr.bf16.mxu1 %v3644_v25  ;;  %2499 = vmatprep.mubr.bf16.mxu0 %v629_v56  ;;  %v3693_v23 = vld [vmem:[%s4711_s1 + $0x310] sm:$0xff]   ;;  %v3695_v25 = vld [vmem:[%s4711_s1 + $0x348] sm:$0xff]  }
  0x47   :  { %2539 = vmatprep.mubr.bf16.mxu1 %v639_v60  ;;  %v3694_v24 = vld [vmem:[%s4711_s1 + $0x390] sm:$0xff]   ;;  %v3728_v60 = vld [vmem:[%s4711_s1 + $0x448] sm:$0xff]  }
  0x48   :  { %3311 = vmatpush3.bf16.msra.mxu0 %v3645_v26  ;;  %v3696_v26 = vld [vmem:[%s4711_s1 + $0x3c8] sm:$0xff]   ;;  %v3724_v56 = vld [vmem:[%s4711_s1 + $0x450] sm:$0xff]  }
  0x49   :  { %3312 = vmatprep.subr.bf16.mxu0 %v3647_v28  ;;  %3333 = vmatpush3.bf16.msra.mxu1 %v3646_v27  ;;  %v3697_v27 = vld [vmem:[%s4711_s1 + $0x308] sm:$0xff]  }
  0x4a   :  { %3334 = vmatprep.subr.bf16.mxu1 %v3648_v29  ;;  %v3698_v28 = vld [vmem:[%s4711_s1 + $0x388] sm:$0xff]   ;;  %v3699_v29 = vld [vmem:[%s4711_s1 + $0x340] sm:$0xff]  }
  0x4c   :  { %3313 = vmatpush3.bf16.msra.mxu0 %v3649_v30  ;;  %v3700_v30 = vld [vmem:[%s4711_s1 + $0x3c0] sm:$0xff]  }
  0x4d   :  { %3314 = vmatprep.subr.bf16.mxu0 %v3651_v32  ;;  %3335 = vmatpush3.bf16.msra.mxu1 %v3650_v31  ;;  %v3701_v31 = vld [vmem:[%s4711_s1 + $0x300] sm:$0xff]  }
  0x4e   :  { %3336 = vmatprep.subr.bf16.mxu1 %v3652_v33  ;;  %v3702_v32 = vld [vmem:[%s4711_s1 + $0x380] sm:$0xff]   ;;  %v622_v33 = vrot.slane %v4175_v53, %v3983_v41  ;;  %v3721_v53 = vld [vmem:[%s4711_s1 + $0x4d8] sm:$0xff]  }
  0x50   :  { %3315 = vmatpush3.bf16.msra.mxu0 %v3653_v34  ;;  %v3704_v34 = vld [vmem:[%s4711_s1 + $0x478] sm:$0xff]  }
  0x51   :  { %3316 = vmatprep.subr.bf16.mxu0 %v3655_v36  ;;  %3337 = vmatpush3.bf16.msra.mxu1 %v3654_v35  ;;  %v3705_v35 = vld [vmem:[%s4711_s1 + $0x4f8] sm:$0xff]  }
  0x52   :  { %3338 = vmatprep.subr.bf16.mxu1 %v3656_v37  ;;  %v3706_v36 = vld [vmem:[%s4711_s1 + $0x438] sm:$0xff]  }
  0x53   :  { %v3707_v37 = vld [vmem:[%s4711_s1 + $0x4b8] sm:$0xff]  }
  0x54   :  { %3317 = vmatpush3.bf16.msra.mxu0 %v3657_v38  ;;  %v638_v38 = vcombine.high %v622_v33, %v622_v33 }
  0x55   :  { %3318 = vmatprep.subr.bf16.mxu0 %v3659_v40  ;;  %3339 = vmatpush3.bf16.msra.mxu1 %v3658_v39  ;;  %v3708_v39 = vld [vmem:[%s4711_s1 + $0x470] sm:$0xff]  }
  0x56   :  { %3340 = vmatprep.subr.bf16.mxu1 %v3660_v42  ;;  %v3709_v40 = vld [vmem:[%s4711_s1 + $0x4f0] sm:$0xff]  }
  0x57   :  { %v3710_v42 = vld [vmem:[%s4711_s1 + $0x430] sm:$0xff]  }
  0x58   :  { %3319 = vmatpush3.bf16.msra.mxu0 %v3661_v43  ;;  %v3711_v43 = vld [vmem:[%s4711_s1 + $0x4b0] sm:$0xff]  }
  0x59   :  { %3320 = vmatprep.subr.bf16.mxu0 %v3663_v45  ;;  %3341 = vmatpush3.bf16.msra.mxu1 %v3662_v44  ;;  %v3712_v44 = vld [vmem:[%s4711_s1 + $0x468] sm:$0xff]  }
  0x5a   :  { %3342 = vmatprep.subr.bf16.mxu1 %v3664_v47  ;;  %v3713_v45 = vld [vmem:[%s4711_s1 + $0x4e8] sm:$0xff]  }
  0x5b   :  { %v3715_v47 = vld [vmem:[%s4711_s1 + $0x4a8] sm:$0xff]  }
  0x5c   :  { %3321 = vmatpush3.bf16.msra.mxu0 %v3665_v50  ;;  %v3718_v50 = vld [vmem:[%s4711_s1 + $0x420] sm:$0xff]  }
  0x5d   :  { %3322 = vmatprep.subr.bf16.mxu0 %v3667_v54  ;;  %3343 = vmatpush3.bf16.msra.mxu1 %v3666_v51  ;;  %v3719_v51 = vld [vmem:[%s4711_s1 + $0x4a0] sm:$0xff]   ;;  %v3722_v54 = vld [vmem:[%s4711_s1 + $0x418] sm:$0xff]  }
  0x5e   :  { %3344 = vmatprep.subr.bf16.mxu1 %v3668_v55  ;;  %v3723_v55 = vld [vmem:[%s4711_s1 + $0x498] sm:$0xff]  }
  0x60   :  { %3323 = vmatpush3.bf16.msra.mxu0 %v3669_v58  ;;  %v3726_v58 = vld [vmem:[%s4711_s1 + $0x410] sm:$0xff]  }
  0x61   :  { %3352 = vmatprep.subr.bf16.mxu0 %v3671_v62  ;;  %3345 = vmatpush3.bf16.msra.mxu1 %v3670_v59  ;;  %v3727_v59 = vld [vmem:[%s4711_s1 + $0x490] sm:$0xff]   ;;  %v3729_v62 = vld [vmem:[%s4711_s1 + $0x4c8] sm:$0xff]  }
  0x62   :  { %3374 = vmatprep.subr.bf16.mxu1 %v3672_v63 }
  0x63   :  { %2500 = vmatmul.mubr.bf16.vlgmr.msra.gmra.mxu0 %v615_v61  ;;  %v18_v61 = vld [vmem:[%s4710_s0 + $0x10] sm:$0xff] }
  0x64   :  { %3353 = vmatpush3.bf16.msra.mxu0 %v3673_v1  ;;  %2579 = vmatprep.mubr.bf16.mxu0 %v636_v0  ;;  %v648_v63 = vrot.slane %v18_v61, %v3983_v41  ;;  %v641_v0 = vcombine.high %v18_v61, %v18_v61  ;;  %v3730_v1 = vld [vmem:[%s4711_s1 + $0x408] sm:$0xff]  }
  0x65   :  { %2540 = vmatmul.mubr.bf16.vlgmr.msra.gmra.mxu1 %v637_v3  ;;  %3354 = vmatprep.subr.bf16.mxu0 %v3675_v4  ;;  %v3779_v61 = vld [vmem:[%s4711_s1 + $0x628] sm:$0xff]  }
  0x66   :  { %3375 = vmatpush3.bf16.msra.mxu1 %v3674_v2  ;;  %2619 = vmatprep.mubr.bf16.mxu1 %v640_v6  ;;  %v3731_v2 = vld [vmem:[%s4711_s1 + $0x488] sm:$0xff]   ;;  %v656_v3 = vcombine.high %v648_v63, %v648_v63  ;;  %v4381_v4 = vrot.slane %v641_v0, %v3983_v41  ;;  %v3733_v6 = vld [vmem:[%s4711_s1 + $0x4c0] sm:$0xff]  }
  0x67   :  { %3376 = vmatprep.subr.bf16.mxu1 %v3676_v5  ;;  %v3732_v5 = vld [vmem:[%s4711_s1 + $0x440] sm:$0xff]  }
  0x68   :  { %3355 = vmatpush3.bf16.msra.mxu0 %v3677_v7  ;;  %v678_v7 = vrot.slane %v656_v3, %v3983_v41  ;;  %v3782_v0 = vld [vmem:[%s4711_s1 + $0x6e0] sm:$0xff]   ;;  %v3785_v3 = vld [vmem:[%s4711_s1 + $0x658] sm:$0xff]  }
  0x69   :  { %3356 = vmatprep.subr.bf16.mxu0 %v3679_v9  ;;  %v3734_v9 = vld [vmem:[%s4711_s1 + $0x400] sm:$0xff]  }
  0x6a   :  { %3377 = vmatpush3.bf16.msra.mxu1 %v3678_v8  ;;  %v657_v8 = vcombine.high %v4381_v4, %v4381_v4 }
  0x6b   :  { %3378 = vmatprep.subr.bf16.mxu1 %v3680_v10  ;;  %v3735_v10 = vld [vmem:[%s4711_s1 + $0x480] sm:$0xff]  }
  0x6c   :  { %3357 = vmatpush3.bf16.msra.mxu0 %v3681_v11  ;;  %v688_v11 = vcombine.high %v678_v7, %v678_v7 }
  0x6d   :  { %3358 = vmatprep.subr.bf16.mxu0 %v3683_v13  ;;  %v3736_v13 = vld [vmem:[%s4711_s1 + $0x578] sm:$0xff]  }
  0x6e   :  { %3379 = vmatpush3.bf16.msra.mxu1 %v3682_v12  ;;  %v664_v12 = vrot.slane %v648_v63, %v3983_v41  ;;  %v3781_v63 = vld [vmem:[%s4711_s1 + $0x660] sm:$0xff]  }
  0x6f   :  { %3380 = vmatprep.subr.bf16.mxu1 %v3684_v14  ;;  %v3737_v14 = vld [vmem:[%s4711_s1 + $0x5f8] sm:$0xff]  }
  0x70   :  { %3359 = vmatpush3.bf16.msra.mxu0 %v3685_v15  ;;  %v685_v15 = vrot.slane %v657_v8, %v3983_v41  ;;  %v3790_v8 = vld [vmem:[%s4711_s1 + $0x6d0] sm:$0xff]  }
  0x71   :  { %3360 = vmatprep.subr.bf16.mxu0 %v3687_v17  ;;  %v3739_v17 = vld [vmem:[%s4711_s1 + $0x5b8] sm:$0xff]  }
  0x72   :  { %3381 = vmatpush3.bf16.msra.mxu1 %v3686_v16  ;;  %v3738_v16 = vld [vmem:[%s4711_s1 + $0x538] sm:$0xff]  }
  0x73   :  { %3382 = vmatprep.subr.bf16.mxu1 %v3688_v18  ;;  %v686_v18 = vcombine.high %v664_v12, %v664_v12 }
  0x74   :  { %3361 = vmatpush3.bf16.msra.mxu0 %v3689_v19  ;;  %v3740_v19 = vld [vmem:[%s4711_s1 + $0x570] sm:$0xff]  }
  0x75   :  { %3362 = vmatprep.subr.bf16.mxu0 %v3691_v21  ;;  %v689_v21 = vcombine.high %v685_v15, %v685_v15 }
  0x76   :  { %3383 = vmatpush3.bf16.msra.mxu1 %v3690_v20  ;;  %v3741_v20 = vld [vmem:[%s4711_s1 + $0x5f0] sm:$0xff]  }
  0x77   :  { %3384 = vmatprep.subr.bf16.mxu1 %v3692_v22  ;;  %v3742_v22 = vld [vmem:[%s4711_s1 + $0x530] sm:$0xff]  }
  0x78   :  { %3363 = vmatpush3.bf16.msra.mxu0 %v3693_v23  ;;  %v3743_v23 = vld [vmem:[%s4711_s1 + $0x5b0] sm:$0xff]  }
  0x79   :  { %3364 = vmatprep.subr.bf16.mxu0 %v3695_v25  ;;  %v3745_v25 = vld [vmem:[%s4711_s1 + $0x5e8] sm:$0xff]  }
  0x7a   :  { %3385 = vmatpush3.bf16.msra.mxu1 %v3694_v24  ;;  %v3744_v24 = vld [vmem:[%s4711_s1 + $0x568] sm:$0xff]  }
  0x7b   :  { %3386 = vmatprep.subr.bf16.mxu1 %v3696_v26  ;;  %v3746_v26 = vld [vmem:[%s4711_s1 + $0x528] sm:$0xff]  }
  0x7c   :  { %3365 = vmatpush3.bf16.msra.mxu0 %v3697_v27  ;;  %v3747_v27 = vld [vmem:[%s4711_s1 + $0x5a8] sm:$0xff]  }
  0x7d   :  { %3366 = vmatprep.subr.bf16.mxu0 %v3699_v29  ;;  %v3749_v29 = vld [vmem:[%s4711_s1 + $0x5e0] sm:$0xff]  }
  0x7e   :  { %3387 = vmatpush3.bf16.msra.mxu1 %v3698_v28  ;;  %v3748_v28 = vld [vmem:[%s4711_s1 + $0x560] sm:$0xff]  }
  0x7f   :  { %3388 = vmatprep.subr.bf16.mxu1 %v3700_v30  ;;  %v3750_v30 = vld [vmem:[%s4711_s1 + $0x520] sm:$0xff]  }
  0x80   :  { %3367 = vmatpush3.bf16.msra.mxu0 %v3701_v31  ;;  %v3751_v31 = vld [vmem:[%s4711_s1 + $0x5a0] sm:$0xff]  }
  0x81   :  { %3396 = vmatprep.subr.bf16.mxu0 %v3704_v34  ;;  %v3754_v34 = vld [vmem:[%s4711_s1 + $0x518] sm:$0xff]  }
  0x82   :  { %3389 = vmatpush3.bf16.msra.mxu1 %v3702_v32  ;;  %v3752_v32 = vld [vmem:[%s4711_s1 + $0x558] sm:$0xff]  }
  0x83   :  { %2580 = vmatmul.mubr.bf16.vlgmr.msra.gmra.mxu0 %v622_v33  ;;  %3418 = vmatprep.subr.bf16.mxu1 %v3705_v35  ;;  %v3753_v33 = vld [vmem:[%s4711_s1 + $0x5d8] sm:$0xff]  }
  0x84   :  { %3397 = vmatpush3.bf16.msra.mxu0 %v3706_v36  ;;  %2659 = vmatprep.mubr.bf16.mxu0 %v678_v7  ;;  %v3755_v35 = vld [vmem:[%s4711_s1 + $0x598] sm:$0xff]   ;;  %v3756_v36 = vld [vmem:[%s4711_s1 + $0x550] sm:$0xff]  }
  0x85   :  { %2620 = vmatmul.mubr.bf16.vlgmr.msra.gmra.mxu1 %v638_v38  ;;  %3398 = vmatprep.subr.bf16.mxu0 %v3708_v39  ;;  %v3758_v38 = vld [vmem:[%s4711_s1 + $0x510] sm:$0xff]  }
  0x86   :  { %3419 = vmatpush3.bf16.msra.mxu1 %v3707_v37  ;;  %2699 = vmatprep.mubr.bf16.mxu1 %v688_v11  ;;  %v3757_v37 = vld [vmem:[%s4711_s1 + $0x5d0] sm:$0xff]   ;;  %v3793_v11 = vld [vmem:[%s4711_s1 + $0x648] sm:$0xff]  }
  0x87   :  { %3420 = vmatprep.subr.bf16.mxu1 %v3709_v40  ;;  %v3759_v39 = vld [vmem:[%s4711_s1 + $0x590] sm:$0xff]   ;;  %v3760_v40 = vld [vmem:[%s4711_s1 + $0x548] sm:$0xff]  }
  0x88   :  { %3399 = vmatpush3.bf16.msra.mxu0 %v3710_v42  ;;  %v3761_v42 = vld [vmem:[%s4711_s1 + $0x5c8] sm:$0xff]   ;;  %v3789_v7 = vld [vmem:[%s4711_s1 + $0x650] sm:$0xff]  }
  0x89   :  { %3400 = vmatprep.subr.bf16.mxu0 %v3712_v44  ;;  %v3763_v44 = vld [vmem:[%s4711_s1 + $0x588] sm:$0xff]  }
  0x8a   :  { %3421 = vmatpush3.bf16.msra.mxu1 %v3711_v43  ;;  %v3762_v43 = vld [vmem:[%s4711_s1 + $0x508] sm:$0xff]  }
  0x8b   :  { %3422 = vmatprep.subr.bf16.mxu1 %v3713_v45  ;;  %v3764_v45 = vld [vmem:[%s4711_s1 + $0x540] sm:$0xff]  }
  0x8c   :  { %3401 = vmatpush3.bf16.msra.mxu0 %v3714_v46  ;;  %v3765_v46 = vld [vmem:[%s4711_s1 + $0x5c0] sm:$0xff]  }
  0x8d   :  { %3402 = vmatprep.subr.bf16.mxu0 %v3716_v48  ;;  %v3767_v48 = vld [vmem:[%s4711_s1 + $0x580] sm:$0xff]  }
  0x8e   :  { %3423 = vmatpush3.bf16.msra.mxu1 %v3715_v47  ;;  %v3766_v47 = vld [vmem:[%s4711_s1 + $0x500] sm:$0xff]  }
  0x8f   :  { %3424 = vmatprep.subr.bf16.mxu1 %v3717_v49  ;;  %v671_v49 = vrot.slane %v4381_v4, %v3983_v41  ;;  %v3786_v4 = vld [vmem:[%s4711_s1 + $0x6d8] sm:$0xff]  }
  0x90   :  { %3403 = vmatpush3.bf16.msra.mxu0 %v3718_v50  ;;  %v3769_v50 = vld [vmem:[%s4711_s1 + $0x678] sm:$0xff]  }
  0x91   :  { %3404 = vmatprep.subr.bf16.mxu0 %v3720_v52  ;;  %v3771_v52 = vld [vmem:[%s4711_s1 + $0x638] sm:$0xff]  }
  0x92   :  { %3425 = vmatpush3.bf16.msra.mxu1 %v3719_v51  ;;  %v3770_v51 = vld [vmem:[%s4711_s1 + $0x6f8] sm:$0xff]  }
  0x93   :  { %3426 = vmatprep.subr.bf16.mxu1 %v3721_v53  ;;  %v3772_v53 = vld [vmem:[%s4711_s1 + $0x6b8] sm:$0xff]  }
  0x94   :  { %3405 = vmatpush3.bf16.msra.mxu0 %v3722_v54  ;;  %v687_v54 = vcombine.high %v671_v49, %v671_v49 }
  0x95   :  { %3406 = vmatprep.subr.bf16.mxu0 %v3724_v56  ;;  %v3774_v56 = vld [vmem:[%s4711_s1 + $0x6f0] sm:$0xff]  }
  0x96   :  { %3427 = vmatpush3.bf16.msra.mxu1 %v3723_v55  ;;  %v3773_v55 = vld [vmem:[%s4711_s1 + $0x670] sm:$0xff]  }
  0x97   :  { %3428 = vmatprep.subr.bf16.mxu1 %v3725_v57  ;;  %v3775_v57 = vld [vmem:[%s4711_s1 + $0x630] sm:$0xff]  }
  0x98   :  { %3407 = vmatpush3.bf16.msra.mxu0 %v3726_v58  ;;  %v3776_v58 = vld [vmem:[%s4711_s1 + $0x6b0] sm:$0xff]  }
  0x99   :  { %3408 = vmatprep.subr.bf16.mxu0 %v3728_v60  ;;  %v3778_v60 = vld [vmem:[%s4711_s1 + $0x6e8] sm:$0xff]  }
  0x9a   :  { %3429 = vmatpush3.bf16.msra.mxu1 %v3727_v59  ;;  %v3777_v59 = vld [vmem:[%s4711_s1 + $0x668] sm:$0xff]  }
  0x9b   :  { %3430 = vmatprep.subr.bf16.mxu1 %v3729_v62  ;;  %v3780_v62 = vld [vmem:[%s4711_s1 + $0x6a8] sm:$0xff]  }
  0x9c   :  { %3409 = vmatpush3.bf16.msra.mxu0 %v3730_v1  ;;  %v3783_v1 = vld [vmem:[%s4711_s1 + $0x620] sm:$0xff]  }
  0x9d   :  { %3410 = vmatprep.subr.bf16.mxu0 %v3732_v5  ;;  %v3787_v5 = vld [vmem:[%s4711_s1 + $0x618] sm:$0xff]  }
  0x9e   :  { %3431 = vmatpush3.bf16.msra.mxu1 %v3731_v2  ;;  %v3784_v2 = vld [vmem:[%s4711_s1 + $0x6a0] sm:$0xff]  }
  0x9f   :  { %3432 = vmatprep.subr.bf16.mxu1 %v3733_v6  ;;  %v3788_v6 = vld [vmem:[%s4711_s1 + $0x698] sm:$0xff]  }
  0xa0   :  { %3411 = vmatpush3.bf16.msra.mxu0 %v3734_v9  ;;  %v3791_v9 = vld [vmem:[%s4711_s1 + $0x610] sm:$0xff]  }
  0xa1   :  { %3440 = vmatprep.subr.bf16.mxu0 %v3736_v13  ;;  %v3794_v13 = vld [vmem:[%s4711_s1 + $0x6c8] sm:$0xff]  }
  0xa2   :  { %3433 = vmatpush3.bf16.msra.mxu1 %v3735_v10  ;;  %v3792_v10 = vld [vmem:[%s4711_s1 + $0x690] sm:$0xff]  }
  0xa3   :  { %2660 = vmatmul.mubr.bf16.vlgmr.msra.gmra.mxu0 %v664_v12  ;;  %3462 = vmatprep.subr.bf16.mxu1 %v3737_v14  ;;  %v19_v12 = vld [vmem:[%s4710_s0 + $0x18] sm:$0xff] }
  0xa4   :  { %3441 = vmatpush3.bf16.msra.mxu0 %v3738_v16  ;;  %2739 = vmatprep.mubr.bf16.mxu0 %v685_v15  ;;  %v697_v14 = vrot.slane %v19_v12, %v3983_v41  ;;  %v690_v15 = vcombine.high %v19_v12, %v19_v12  ;;  %v3795_v16 = vld [vmem:[%s4711_s1 + $0x608] sm:$0xff]  }
  0xa5   :  { %2700 = vmatmul.mubr.bf16.vlgmr.msra.gmra.mxu1 %v686_v18  ;;  %3442 = vmatprep.subr.bf16.mxu0 %v3740_v19 }
  0xa6   :  { %3463 = vmatpush3.bf16.msra.mxu1 %v3739_v17  ;;  %2779 = vmatprep.mubr.bf16.mxu1 %v689_v21  ;;  %v3797_v17 = vld [vmem:[%s4711_s1 + $0x640] sm:$0xff]   ;;  %v705_v18 = vcombine.high %v697_v14, %v697_v14  ;;  %v4587_v19 = vrot.slane %v690_v15, %v3983_v41 }
  0xa7   :  { %3464 = vmatprep.subr.bf16.mxu1 %v3741_v20  ;;  %v3796_v20 = vld [vmem:[%s4711_s1 + $0x688] sm:$0xff]   ;;  %v3798_v21 = vld [vmem:[%s4711_s1 + $0x6c0] sm:$0xff]  }
  0xa8   :  { %3443 = vmatpush3.bf16.msra.mxu0 %v3742_v22  ;;  %v727_v22 = vrot.slane %v705_v18, %v3983_v41 }
  0xa9   :  { %3444 = vmatprep.subr.bf16.mxu0 %v3744_v24  ;;  %v3799_v24 = vld [vmem:[%s4711_s1 + $0x600] sm:$0xff]  }
  0xaa   :  { %3465 = vmatpush3.bf16.msra.mxu1 %v3743_v23  ;;  %v706_v23 = vcombine.high %v4587_v19, %v4587_v19 }
  0xab   :  { %3466 = vmatprep.subr.bf16.mxu1 %v3745_v25  ;;  %v737_v25 = vcombine.high %v727_v22, %v727_v22 }
  0xac   :  { %3445 = vmatpush3.bf16.msra.mxu0 %v3746_v26  ;;  %v713_v26 = vrot.slane %v697_v14, %v3983_v41 }
  0xad   :  { %3446 = vmatprep.subr.bf16.mxu0 %v3748_v28  ;;  %v3800_v28 = vld [vmem:[%s4711_s1 + $0x680] sm:$0xff]  }
  0xae   :  { %3467 = vmatpush3.bf16.msra.mxu1 %v3747_v27  ;;  %v3801_v27 = vld [vmem:[%s4711_s1 + $0x778] sm:$0xff]  }
  0xaf   :  { %3468 = vmatprep.subr.bf16.mxu1 %v3749_v29  ;;  %v734_v29 = vrot.slane %v706_v23, %v3983_v41 }
  0xb0   :  { %3447 = vmatpush3.bf16.msra.mxu0 %v3750_v30  ;;  %v3802_v30 = vld [vmem:[%s4711_s1 + $0x7f8] sm:$0xff]  }
  0xb1   :  { %3448 = vmatprep.subr.bf16.mxu0 %v3752_v32  ;;  %v735_v32 = vcombine.high %v713_v26, %v713_v26 }
  0xb2   :  { %3469 = vmatpush3.bf16.msra.mxu1 %v3751_v31  ;;  %v3803_v31 = vld [vmem:[%s4711_s1 + $0x738] sm:$0xff]  }
  0xb3   :  { %3470 = vmatprep.subr.bf16.mxu1 %v3753_v33  ;;  %v3805_v33 = vld [vmem:[%s4711_s1 + $0x770] sm:$0xff]  }
  0xb4   :  { %3449 = vmatpush3.bf16.msra.mxu0 %v3754_v34  ;;  %v3804_v34 = vld [vmem:[%s4711_s1 + $0x7b8] sm:$0xff]  }
  0xb5   :  { %3450 = vmatprep.subr.bf16.mxu0 %v3756_v36 }
  0xb6   :  { %3471 = vmatpush3.bf16.msra.mxu1 %v3755_v35  ;;  %v738_v35 = vcombine.high %v734_v29, %v734_v29 }
  0xb7   :  { %3472 = vmatprep.subr.bf16.mxu1 %v3757_v37  ;;  %v2963_v37 = vld [vmem:[%s4712_s2] ss:$0 sm:$0xff] }
  0xb8   :  { %3451 = vmatpush3.bf16.msra.mxu0 %v3758_v38  ;;  %v3806_v38 = vld [vmem:[%s4711_s1 + $0x7f0] sm:$0xff]  }
  0xb9   :  { %3452 = vmatprep.subr.bf16.mxu0 %v3760_v40 }
  0xba   :  { %3473 = vmatpush3.bf16.msra.mxu1 %v3759_v39  ;;  %v3807_v39 = vld [vmem:[%s4711_s1 + $0x730] sm:$0xff]  }
  0xbb   :  { %3474 = vmatprep.subr.bf16.mxu1 %v3761_v42 }
  0xbc   :  { %3453 = vmatpush3.bf16.msra.mxu0 %v3762_v43  ;;  %v3809_v43 = vld [vmem:[%s4711_s1 + $0x768] sm:$0xff]  }
  0xbd   :  { %3454 = vmatprep.subr.bf16.mxu0 %v3764_v45  ;;  %v3808_v45 = vld [vmem:[%s4711_s1 + $0x7b0] sm:$0xff]  }
  0xbe   :  { %3475 = vmatpush3.bf16.msra.mxu1 %v3763_v44 }
  0xbf   :  { %3476 = vmatprep.subr.bf16.mxu1 %v3765_v46 }
  0xc0   :  { %3455 = vmatpush3.bf16.msra.mxu0 %v3766_v47 }
  0xc1   :  { %3484 = vmatprep.subr.bf16.mxu0 %v3769_v50 }
  0xc2   :  { %3477 = vmatpush3.bf16.msra.mxu1 %v3767_v48  ;;  %v3810_v48 = vld [vmem:[%s4711_s1 + $0x7e8] sm:$0xff]  }
  0xc3   :  { %2740 = vmatmul.mubr.bf16.vlgmr.msra.gmra.mxu0 %v671_v49  ;;  %3506 = vmatprep.subr.bf16.mxu1 %v3770_v51  ;;  %v3811_v51 = vld [vmem:[%s4711_s1 + $0x728] sm:$0xff]  }
  0xc4   :  { %3485 = vmatpush3.bf16.msra.mxu0 %v3771_v52  ;;  %2819 = vmatprep.mubr.bf16.mxu0 %v727_v22 }
  0xc5   :  { %2780 = vmatmul.mubr.bf16.vlgmr.msra.gmra.mxu1 %v687_v54  ;;  %3486 = vmatprep.subr.bf16.mxu0 %v3773_v55  ;;  %v3813_v54 = vld [vmem:[%s4711_s1 + $0x760] sm:$0xff]  }
  0xc6   :  { %3507 = vmatpush3.bf16.msra.mxu1 %v3772_v53  ;;  %2859 = vmatprep.mubr.bf16.mxu1 %v737_v25 }
  0xc7   :  { %3508 = vmatprep.subr.bf16.mxu1 %v3774_v56  ;;  %v3812_v56 = vld [vmem:[%s4711_s1 + $0x7a8] sm:$0xff]  }
  0xc8   :  { %3487 = vmatpush3.bf16.msra.mxu0 %v3775_v57 }
  0xc9   :  { %3488 = vmatprep.subr.bf16.mxu0 %v3777_v59  ;;  %v3815_v59 = vld [vmem:[%s4711_s1 + $0x720] sm:$0xff]  }
  0xca   :  { %3509 = vmatpush3.bf16.msra.mxu1 %v3776_v58  ;;  %v3814_v58 = vld [vmem:[%s4711_s1 + $0x7e0] sm:$0xff]  }
  0xcb   :  { %3510 = vmatprep.subr.bf16.mxu1 %v3778_v60  ;;  %v3817_v60 = vld [vmem:[%s4711_s1 + $0x758] sm:$0xff]  }
  0xcc   :  { %3489 = vmatpush3.bf16.msra.mxu0 %v3779_v61  ;;  %v3816_v61 = vld [vmem:[%s4711_s1 + $0x7a0] sm:$0xff]  }
  0xcd   :  { %3490 = vmatprep.subr.bf16.mxu0 %v3781_v63  ;;  %v3819_v63 = vld [vmem:[%s4711_s1 + $0x718] sm:$0xff]  }
  0xce   :  { %3511 = vmatpush3.bf16.msra.mxu1 %v3780_v62  ;;  %v3818_v62 = vld [vmem:[%s4711_s1 + $0x7d8] sm:$0xff]  }
  0xcf   :  { %3512 = vmatprep.subr.bf16.mxu1 %v3782_v0  ;;  %v3821_v0 = vld [vmem:[%s4711_s1 + $0x750] sm:$0xff]  }
  0xd0   :  { %3491 = vmatpush3.bf16.msra.mxu0 %v3783_v1  ;;  %v3820_v1 = vld [vmem:[%s4711_s1 + $0x798] sm:$0xff]  }
  0xd1   :  { %3492 = vmatprep.subr.bf16.mxu0 %v3785_v3  ;;  %v3823_v3 = vld [vmem:[%s4711_s1 + $0x710] sm:$0xff]  }
  0xd2   :  { %3513 = vmatpush3.bf16.msra.mxu1 %v3784_v2  ;;  %v3822_v2 = vld [vmem:[%s4711_s1 + $0x7d0] sm:$0xff]  }
  0xd3   :  { %3514 = vmatprep.subr.bf16.mxu1 %v3786_v4  ;;  %v3825_v4 = vld [vmem:[%s4711_s1 + $0x748] sm:$0xff]  }
  0xd4   :  { %3493 = vmatpush3.bf16.msra.mxu0 %v3787_v5  ;;  %v3824_v5 = vld [vmem:[%s4711_s1 + $0x790] sm:$0xff]  }
  0xd5   :  { %3494 = vmatprep.subr.bf16.mxu0 %v3789_v7 }
  0xd6   :  { %3515 = vmatpush3.bf16.msra.mxu1 %v3788_v6 }
  0xd7   :  { %3516 = vmatprep.subr.bf16.mxu1 %v3790_v8 }
  0xd8   :  { %3495 = vmatpush3.bf16.msra.mxu0 %v3791_v9 }
  0xd9   :  { %3496 = vmatprep.subr.bf16.mxu0 %v3793_v11 }
  0xda   :  { %3517 = vmatpush3.bf16.msra.mxu1 %v3792_v10 }
  0xdb   :  { %3518 = vmatprep.subr.bf16.mxu1 %v3794_v13 }
  0xdc   :  { %3497 = vmatpush3.bf16.msra.mxu0 %v3795_v16 }
  0xdd   :  { %3498 = vmatprep.subr.bf16.mxu0 %v3797_v17 }
  0xde   :  { %3519 = vmatpush3.bf16.msra.mxu1 %v3796_v20 }
  0xdf   :  { %3520 = vmatprep.subr.bf16.mxu1 %v3798_v21 }
  0xe0   :  { %3499 = vmatpush3.bf16.msra.mxu0 %v3799_v24 }
  0xe1   :  { %3528 = vmatprep.subr.bf16.mxu0 %v3801_v27 }
  0xe2   :  { %3521 = vmatpush3.bf16.msra.mxu1 %v3800_v28 }
  0xe3   :  { %v3236_v36 = vpop.f32.mrf.mxu0  ;;  %2820 = vmatmul.mubr.bf16.vlgmr.msra.gmra.mxu0 %v713_v26  ;;  %3550 = vmatprep.subr.bf16.mxu1 %v3802_v30 }
  0xe4   :  { %3529 = vmatpush3.bf16.msra.mxu0 %v3803_v31  ;;  %2899 = vmatprep.mubr.bf16.mxu0 %v734_v29  ;;  %v3258_v40 = vpop.f32.mrf.mxu1 }
  0xe5   :  { %2860 = vmatmul.mubr.bf16.vlgmr.msra.gmra.mxu1 %v735_v32  ;;  %v3237_v42 = vpop.f32.mrf.mxu0  ;;  %3530 = vmatprep.subr.bf16.mxu0 %v3805_v33 }
  0xe6   :  { %3551 = vmatpush3.bf16.msra.mxu1 %v3804_v34  ;;  %v3238_v44 = vadd.f32 %v3237_v42, %v3236_v36  ;;  %2939 = vmatprep.mubr.bf16.mxu1 %v738_v35  ;;  %v3259_v46 = vpop.f32.mrf.mxu1 }
  0xe7   :  { %v3239_v47 = vpop.f32.mrf.mxu0  ;;  %3552 = vmatprep.subr.bf16.mxu1 %v3806_v38  ;;  %v3260_v50 = vadd.f32 %v3259_v46, %v3258_v40 }
  0xe8   :  { %v2342_v49 = vadd.f32 %v3238_v44, %v2963_v37  ;;  %3531 = vmatpush3.bf16.msra.mxu0 %v3807_v39  ;;  %v3261_v52 = vpop.f32.mrf.mxu1 }
  0xe9   :  { %v3240_v53 = vpop.f32.mrf.mxu0  ;;  %3532 = vmatprep.subr.bf16.mxu0 %v3809_v43 }
  0xea   :  { %v2382_v55 = vadd.f32 %v3260_v50, %v2342_v49  ;;  %3553 = vmatpush3.bf16.msra.mxu1 %v3808_v45  ;;  %v3262_v57 = vpop.f32.mrf.mxu1 }
  0xeb   :  { %3554 = vmatprep.subr.bf16.mxu1 %v3810_v48 }
  0xec   :  { %3533 = vmatpush3.bf16.msra.mxu0 %v3811_v51 }
  0xed   :  { %3534 = vmatprep.subr.bf16.mxu0 %v3813_v54 }
  0xee   :  { %3555 = vmatpush3.bf16.msra.mxu1 %v3812_v56 }
  0xef   :  { %3556 = vmatprep.subr.bf16.mxu1 %v3814_v58 }
  0xf0   :  { %3535 = vmatpush3.bf16.msra.mxu0 %v3815_v59 }
  0xf1   :  { %3536 = vmatprep.subr.bf16.mxu0 %v3817_v60 }
  0xf2   :  { %3557 = vmatpush3.bf16.msra.mxu1 %v3816_v61 }
  0xf3   :  { %3558 = vmatprep.subr.bf16.mxu1 %v3818_v62 }
  0xf4   :  { %3537 = vmatpush3.bf16.msra.mxu0 %v3819_v63 }
  0xf5   :  { %3538 = vmatprep.subr.bf16.mxu0 %v3821_v0 }
  0xf6   :  { %3559 = vmatpush3.bf16.msra.mxu1 %v3820_v1 }
  0xf7   :  { %8 = vsyncpa [#allocation3], 0  ;;  %3560 = vmatprep.subr.bf16.mxu1 %v3822_v2  ;;  %v3826_v6 = vld [vmem:[%s4711_s1 + $0x7c8] sm:$0xff]   ;;  %v3829_v8 = vld [vmem:[%s4711_s1 + $0x740] sm:$0xff]   ;;  %v720_v12 = vrot.slane %v4587_v19, %v3983_v41 }
  0xf8   :  { %3539 = vmatpush3.bf16.msra.mxu0 %v3823_v3  ;;  %v3827_v7 = vld [vmem:[%s4711_s1 + $0x708] sm:$0xff]   ;;  %v3830_v10 = vld [vmem:[%s4711_s1 + $0x7c0] sm:$0xff]  }
  0xf9   :  { %3540 = vmatprep.subr.bf16.mxu0 %v3825_v4  ;;  %v3828_v9 = vld [vmem:[%s4711_s1 + $0x788] sm:$0xff]   ;;  %v3831_v11 = vld [vmem:[%s4711_s1 + $0x700] sm:$0xff]   ;;  %v736_v14 = vcombine.high %v720_v12, %v720_v12 }
  0xfa   :  { %3561 = vmatpush3.bf16.msra.mxu1 %v3824_v5  ;;  %v3832_v13 = vld [vmem:[%s4711_s1 + $0x780] sm:$0xff]   ;;  %s3857_s1 = smov [#allocation2]  }
  0xfb   :  { %3562 = vmatprep.subr.bf16.mxu1 %v3826_v6  ;;  %s2955_s16 = sshll.u32 %s3857_s1, 4  ;;  %s2956_s16 = int_to_ptr.vmem [resolvable:$true] %s2955_s16 }
  0xfc   :  { %3541 = vmatpush3.bf16.msra.mxu0 %v3827_v7  ;;  %s3834_s17 = scalar_lea.vmem %s2956_s16, 32  ;;  %p3839_p1 = scmp.lt.s32.totalorder %s2956_s16, %s2956_s16 }
  0xfd   :  { %3542 = vmatprep.subr.bf16.mxu0 %v3829_v8  ;;  %p3835_p0 = scmp.ne.s32.totalorder %s2956_s16, %s3834_s17  ;;  %p3840_p2 = scmp.lt.s32.totalorder %s3834_s17, %s3834_s17 }
  0xfe   :  { %3563 = vmatpush3.bf16.msra.mxu1 %v3828_v9 }
  0xff   :  { %3564 = vmatprep.subr.bf16.mxu1 %v3830_v10  ;;  %p3841_p3 = por %p3840_p2, %p3839_p1 }
 0x100   :  { %3543 = vmatpush3.bf16.msra.mxu0 %v3831_v11 }
 0x101   :  { %p3842_p4 = pnand %p3841_p3, %p3835_p0 }
 0x102   :  { %3565 = vmatpush3.bf16.msra.mxu1 %v3832_v13 }
 0x103   :  { %v3280_v15 = vpop.f32.mrf.mxu0  ;;  %2900 = vmatmul.mubr.bf16.vlgmr.msra.gmra.mxu0 %v720_v12 }
 0x104   :  { %v3302_v16 = vpop.f32.mrf.mxu1 }
 0x105   :  { %2940 = vmatmul.mubr.bf16.vlgmr.msra.gmra.mxu1 %v736_v14  ;;  %v3281_v17 = vpop.f32.mrf.mxu0 }
 0x106   :  { %v3282_v18 = vadd.f32 %v3281_v17, %v3280_v15  ;;  %v3303_v20 = vpop.f32.mrf.mxu1 }
 0x107   :  { %v3283_v21 = vpop.f32.mrf.mxu0  ;;  %v3304_v23 = vadd.f32 %v3303_v20, %v3302_v16 }
 0x108   :  { %v2422_v22 = vadd.f32 %v3282_v18, %v2382_v55  ;;  %v3305_v41 = vpop.f32.mrf.mxu1 }
 0x109   :  { %v3284_v19 = vpop.f32.mrf.mxu0 }
 0x10a   :  { %v2462_v24 = vadd.f32 %v3304_v23, %v2422_v22  ;;  %v3306_v25 = vpop.f32.mrf.mxu1 }
 0x123   :  { %v3324_v26 = vpop.f32.mrf.mxu0 }
 0x125   :  { %v3346_v27 = vpop.f32.mrf.mxu1  ;;  %v3325_v28 = vpop.f32.mrf.mxu0 }
 0x126   :  { %v3326_v29 = vadd.f32 %v3325_v28, %v3324_v26 }
 0x127   :  { %v3347_v30 = vpop.f32.mrf.mxu1  ;;  %v3327_v31 = vpop.f32.mrf.mxu0 }
 0x128   :  { %v2502_v32 = vadd.f32 %v3326_v29, %v2462_v24  ;;  %v3348_v33 = vadd.f32 %v3347_v30, %v3346_v27 }
 0x129   :  { %v3349_v34 = vpop.f32.mrf.mxu1  ;;  %v3328_v35 = vpop.f32.mrf.mxu0 }
 0x12a   :  { %v2542_v36 = vadd.f32 %v3348_v33, %v2502_v32 }
 0x12b   :  { %v3350_v37 = vpop.f32.mrf.mxu1 }
 0x143   :  { %v3368_v38 = vpop.f32.mrf.mxu0 }
 0x145   :  { %v3390_v39 = vpop.f32.mrf.mxu1  ;;  %v3369_v40 = vpop.f32.mrf.mxu0 }
 0x146   :  { %v3370_v42 = vadd.f32 %v3369_v40, %v3368_v38 }
 0x147   :  { %v3391_v43 = vpop.f32.mrf.mxu1  ;;  %v3371_v44 = vpop.f32.mrf.mxu0 }
 0x148   :  { %v2582_v45 = vadd.f32 %v3370_v42, %v2542_v36  ;;  %v3392_v46 = vadd.f32 %v3391_v43, %v3390_v39 }
 0x149   :  { %v3393_v47 = vpop.f32.mrf.mxu1  ;;  %v3372_v48 = vpop.f32.mrf.mxu0 }
 0x14a   :  { %v2622_v49 = vadd.f32 %v3392_v46, %v2582_v45 }
 0x14b   :  { %v3394_v50 = vpop.f32.mrf.mxu1 }
 0x163   :  { %v3412_v51 = vpop.f32.mrf.mxu0 }
 0x165   :  { %v3434_v52 = vpop.f32.mrf.mxu1  ;;  %v3413_v53 = vpop.f32.mrf.mxu0 }
 0x166   :  { %v3414_v54 = vadd.f32 %v3413_v53, %v3412_v51 }
 0x167   :  { %v3435_v55 = vpop.f32.mrf.mxu1  ;;  %v3415_v56 = vpop.f32.mrf.mxu0 }
 0x168   :  { %v2662_v57 = vadd.f32 %v3414_v54, %v2622_v49  ;;  %v3436_v58 = vadd.f32 %v3435_v55, %v3434_v52 }
 0x169   :  { %v3437_v59 = vpop.f32.mrf.mxu1  ;;  %v3416_v60 = vpop.f32.mrf.mxu0 }
 0x16a   :  { %v2702_v61 = vadd.f32 %v3436_v58, %v2662_v57 }
 0x16b   :  { %v3438_v62 = vpop.f32.mrf.mxu1 }
 0x183   :  { %v3456_v63 = vpop.f32.mrf.mxu0 }
 0x185   :  { %v3478_v0 = vpop.f32.mrf.mxu1  ;;  %v3457_v1 = vpop.f32.mrf.mxu0 }
 0x186   :  { %v3458_v15 = vadd.f32 %v3457_v1, %v3456_v63 }
 0x187   :  { %v3479_v2 = vpop.f32.mrf.mxu1  ;;  %v3459_v3 = vpop.f32.mrf.mxu0 }
 0x188   :  { %v2742_v16 = vadd.f32 %v3458_v15, %v2702_v61  ;;  %v3480_v17 = vadd.f32 %v3479_v2, %v3478_v0 }
 0x189   :  { %v3481_v4 = vpop.f32.mrf.mxu1  ;;  %v3460_v5 = vpop.f32.mrf.mxu0 }
 0x18a   :  { %v2782_v20 = vadd.f32 %v3480_v17, %v2742_v16 }
 0x18b   :  { %v3482_v6 = vpop.f32.mrf.mxu1 }
 0x1a3   :  { %v3500_v7 = vpop.f32.mrf.mxu0 }
 0x1a5   :  { %v3522_v8 = vpop.f32.mrf.mxu1  ;;  %v3501_v9 = vpop.f32.mrf.mxu0 }
 0x1a6   :  { %v3502_v18 = vadd.f32 %v3501_v9, %v3500_v7 }
 0x1a7   :  { %v3523_v10 = vpop.f32.mrf.mxu1  ;;  %v3503_v11 = vpop.f32.mrf.mxu0 }
 0x1a8   :  { %v2822_v21 = vadd.f32 %v3502_v18, %v2782_v20  ;;  %v3524_v22 = vadd.f32 %v3523_v10, %v3522_v8 }
 0x1a9   :  { %v3525_v12 = vpop.f32.mrf.mxu1  ;;  %v3504_v13 = vpop.f32.mrf.mxu0 }
 0x1aa   :  { %v2862_v24 = vadd.f32 %v3524_v22, %v2822_v21 }
 0x1ab   :  { %v3526_v14 = vpop.f32.mrf.mxu1 }
 0x1c3   :  { %v3544_v23 = vpop.f32.mrf.mxu0 }
 0x1c5   :  { %v3566_v41 = vpop.f32.mrf.mxu1  ;;  %v3545_v19 = vpop.f32.mrf.mxu0 }
 0x1c6   :  { %v3546_v25 = vadd.f32 %v3545_v19, %v3544_v23 }
 0x1c7   :  { %v3567_v26 = vpop.f32.mrf.mxu1  ;;  %v3547_v27 = vpop.f32.mrf.mxu0 }
 0x1c8   :  { %v2902_v28 = vadd.f32 %v3546_v25, %v2862_v24  ;;  %v3568_v29 = vadd.f32 %v3567_v26, %v3566_v41 }
 0x1c9   :  { %v3569_v30 = vpop.f32.mrf.mxu1  ;;  %v3548_v31 = vpop.f32.mrf.mxu0 }
 0x1ca   :  { %v2942_v32 = vadd.f32 %v3568_v29, %v2902_v28 }
 0x1cb   :  { %v3570_v33 = vpop.f32.mrf.mxu1 }
 0x1cc   :  { %v2947_v34 = vmax.f32 %v2942_v32, 0.0 }
 0x1ce   :  { %2948 = vst [vmem:[#allocation2] sm:$0x3] %v2947_v34 }
 0x1cf   :  { %3845 = shalt.err (!%p3842_p4)
}
 0x1d0   :  { %2958 = dma.vmem_to_hbm [thread:$0]  %s2956_s16, 32, %s4713_s3, [#allocation3]  }
 0x1d1   :  { %3854 = dma.done.wait [#allocation3], 32  }
 0x1d2   :  { %3855 = vsyncadd [#allocation3], 4294967264 }
 0x1d3   :  { %2962 = vsyncpa [#allocation3], 1 }

</bundles_post_ra>
